<compile_context>
chip_gen: v5e
topology: v5e:2x2
jax: 0.10.0
libtpu: 0.0.40
codegen_flags: <defaults>
</compile_context>

<pallas_src>
import jax
import jax.numpy as jnp
from jax.experimental import pallas as pl
from jax.experimental.pallas import tpu as pltpu

EPS = 1e-5
NEG_SLOPE = 0.2
HIDDEN = 512
OUT_PAD = 128  # lane-dense padded width of the final layer / output


def actor_kernel(
    # --- VMEM-resident inputs (auto-DMA'd before the body runs) ---
    x_ref,                       # [B, S]         bf16
    w1_ref,                      # [S, 512]       bf16
    g1_ref, be1_ref,             # [1, 512]       f32
    s2_ref, g2_ref, be2_ref,     # [1, 512]       f32 (s = int8 dequant scale)
    s3_ref, g3_ref, be3_ref,
    s4_ref, g4_ref, be4_ref,
    b5_ref,                      # [1, OUT_PAD]   f32
    # --- HBM-resident inputs (manual DMA, overlapped with compute) ---
    w2_hbm, w3_hbm, w4_hbm,      # [512, 512]     int8
    w5_hbm,                      # [512, OUT_PAD] bf16
    # --- output ---
    out_ref,                     # [B, OUT_PAD]   f32
    # --- scratch ---
    w2_buf, w3_buf, w4_buf, w5_buf, dma_sem,
):
    # Kick off all large weight copies immediately; each layer waits only on
    # its own weight just before its matmul, so the streaming of w_{i+1}..w5
    # runs under the compute of layer i.
    cp2 = pltpu.make_async_copy(w2_hbm, w2_buf, dma_sem.at[0])
    cp3 = pltpu.make_async_copy(w3_hbm, w3_buf, dma_sem.at[1])
    cp4 = pltpu.make_async_copy(w4_hbm, w4_buf, dma_sem.at[2])
    cp5 = pltpu.make_async_copy(w5_hbm, w5_buf, dma_sem.at[3])
    cp2.start()
    cp3.start()
    cp4.start()
    cp5.start()

    batch = x_ref.shape[0]
    inv_b = jnp.float32(1.0 / batch)

    def mm(a_bf16, w_bf16):
        # bf16 x bf16 MXU matmul with f32 accumulation.
        return jnp.dot(a_bf16, w_bf16, preferred_element_type=jnp.float32)

    def bn_act(h_q, dq_scale, g_ref, be_ref):
        """Training-mode BatchNorm1d + leaky_relu(0.2).

        h_q is the raw matmul result against the (possibly int8-quantized)
        weight; the true pre-BN activation is h_q * dq_scale per output
        channel.  The dequant scale is folded into the BN stats/affine so the
        only per-element work is one multiply-add + the leaky-relu max.
        Linear biases are elided: the per-feature mean subtraction of
        training-mode BN cancels them exactly.
        """
        mean_q = jnp.sum(h_q, axis=0, keepdims=True) * inv_b
        d = h_q - mean_q                                   # reused for norm
        var_q = jnp.sum(d * d, axis=0, keepdims=True) * inv_b  # two-pass var
        if dq_scale is None:
            eff = g_ref[...] * jax.lax.rsqrt(var_q + EPS)
        else:
            var = var_q * (dq_scale * dq_scale)
            eff = g_ref[...] * dq_scale * jax.lax.rsqrt(var + EPS)
        y = d * eff + be_ref[...]
        y = jnp.maximum(y, NEG_SLOPE * y)                  # leaky_relu(0.2)
        return y.astype(jnp.bfloat16)                      # bf16 activations

    a = x_ref[...]                                         # bf16 from wrapper
    a = bn_act(mm(a, w1_ref[...]), None, g1_ref, be1_ref)  # l1 + b1 + lrelu

    cp2.wait()
    a = bn_act(mm(a, w2_buf[...].astype(jnp.bfloat16)),    # l2 + b2 + lrelu
               s2_ref[...], g2_ref, be2_ref)
    cp3.wait()
    a = bn_act(mm(a, w3_buf[...].astype(jnp.bfloat16)),    # l3 + b3 + lrelu
               s3_ref[...], g3_ref, be3_ref)
    cp4.wait()
    a = bn_act(mm(a, w4_buf[...].astype(jnp.bfloat16)),    # l4 + b4 + lrelu
               s4_ref[...], g4_ref, be4_ref)

    cp5.wait()
    out_ref[...] = jnp.tanh(mm(a, w5_buf[...]) + b5_ref[...])   # l5 + tanh


def actor_forward(state, params, action_dim):
    """state: [B, state_size] float32. params: dict from init_actor_params."""
    B, state_size = state.shape
    if B < 2:
        # PyTorch BatchNorm1d raises on batch=1 in training mode.
        raise ValueError(f"training-mode BatchNorm1d needs batch >= 2, got {B}")

    vmem_inputs = (
        state.astype(jnp.bfloat16),
        params["w1"],
        params["g1"], params["be1"],
        params["s2"], params["g2"], params["be2"],
        params["s3"], params["g3"], params["be3"],
        params["s4"], params["g4"], params["be4"],
        params["b5"],
    )
    hbm_inputs = (params["w2"], params["w3"], params["w4"], params["w5"])
    inputs = vmem_inputs + hbm_inputs

    in_specs = (
        [pl.BlockSpec(memory_space=pltpu.MemorySpace.VMEM)] * len(vmem_inputs)
        + [pl.BlockSpec(memory_space=pl.ANY)] * len(hbm_inputs)
    )

    flops = 2 * B * (state_size * HIDDEN + 3 * HIDDEN * HIDDEN + HIDDEN * OUT_PAD)
    bytes_accessed = (
        int(sum(int(x.size) * x.dtype.itemsize for x in inputs)) + B * OUT_PAD * 4
    )

    out = pl.pallas_call(
        actor_kernel,
        out_shape=jax.ShapeDtypeStruct((B, OUT_PAD), jnp.float32),
        in_specs=in_specs,
        out_specs=pl.BlockSpec(memory_space=pltpu.MemorySpace.VMEM),
        scratch_shapes=[
            pltpu.VMEM((HIDDEN, HIDDEN), jnp.int8),       # w2 buffer
            pltpu.VMEM((HIDDEN, HIDDEN), jnp.int8),       # w3 buffer
            pltpu.VMEM((HIDDEN, HIDDEN), jnp.int8),       # w4 buffer
            pltpu.VMEM((HIDDEN, OUT_PAD), jnp.bfloat16),  # w5 buffer
            pltpu.SemaphoreType.DMA((4,)),
        ],
        compiler_params=pltpu.CompilerParams(vmem_limit_bytes=32 * 1024 * 1024),
        cost_estimate=pl.CostEstimate(
            flops=flops, transcendentals=B * OUT_PAD, bytes_accessed=bytes_accessed),
    )(*inputs)

    # Lane-dense output is padded to 128; slice + torch-style `.squeeze()` here.
    return jnp.squeeze(out[:, :action_dim])


def _quantize_per_channel(w):
    """Symmetric per-output-channel int8 quantization of w: [in, out] f32."""
    amax = jnp.max(jnp.abs(w), axis=0, keepdims=True)            # [1, out]
    scale = jnp.maximum(amax, 1e-8) / 127.0
    w_q = jnp.clip(jnp.round(w / scale), -127, 127).astype(jnp.int8)
    return w_q, scale.astype(jnp.float32)


def init_actor_params(key, state_size, action_dim, hidden=HIDDEN):
    """Synthetic init matching nn.Linear defaults.

    Weights are stored pre-transposed [in, out].  w1/w5 are bf16; w2..w4 are
    int8 + per-output-channel scales (intentional quantization of the fp32
    PyTorch weights; the dequant scale folds into the BN affine inside the
    kernel).  b1..b4 are kept (fp32) only for the pure-JAX reference — the
    kernel drops them because training-mode BN cancels them exactly.
    """
    ks = jax.random.split(key, 10)

    def lin(k, fan_in, fan_out):
        bound = 1.0 / jnp.sqrt(fan_in)
        kw, kb = jax.random.split(k)
        w = jax.random.uniform(kw, (fan_in, fan_out), jnp.float32, -bound, bound)
        b = jax.random.uniform(kb, (1, fan_out), jnp.float32, -bound, bound)
        return w, b

    p = {}
    # l1: bf16 (small, and needed before any DMA/compute overlap can start).
    w1, b1 = lin(ks[0], state_size, hidden)
    p["w1"] = w1.astype(jnp.bfloat16)
    p["b1"] = b1  # fp32; reference-only (dead under training-mode BN)

    # l2..l4: int8 weights + per-channel scales.
    for i, k in zip(range(2, 5), ks[1:4]):
        w, b = lin(k, hidden, hidden)
        wq, s = _quantize_per_channel(w)
        p[f"w{i}"] = wq
        p[f"s{i}"] = s
        p[f"b{i}"] = b  # fp32; reference-only

    # l5: bf16, padded to OUT_PAD columns so the final matmul / output store
    # are lane-dense.
    w5, b5 = lin(ks[4], hidden, action_dim)
    w5p = jnp.zeros((hidden, OUT_PAD), jnp.float32).at[:, :action_dim].set(w5)
    b5p = jnp.zeros((1, OUT_PAD), jnp.float32).at[:, :action_dim].set(b5)
    p["w5"] = w5p.astype(jnp.bfloat16)
    p["b5"] = b5p  # added post-dot in fp32

    # BatchNorm affine params (PyTorch default gamma=1, beta=0) perturbed
    # deterministically so they actually matter.
    for i, k in zip(range(1, 5), ks[5:9]):
        kg, kb = jax.random.split(k)
        p[f"g{i}"] = 1.0 + 0.1 * jax.random.normal(kg, (1, hidden), jnp.float32)
        p[f"be{i}"] = 0.1 * jax.random.normal(kb, (1, hidden), jnp.float32)
    return p


def actor_reference(state, params, action_dim):
    """Pure-JAX reference using the SAME (quantized) weights.

    Keeps the b1..b4 bias adds and applies the dequant scale explicitly before
    BatchNorm (faithful to the PyTorch structure), which validates both the
    in-kernel bias elision and the fold of the dequant scale into the BN row.
    """
    a = state.astype(jnp.float32)

    def bn_lrelu(h, g, be):
        mean = jnp.mean(h, axis=0, keepdims=True)
        var = jnp.mean((h - mean) ** 2, axis=0, keepdims=True)
        h = (h - mean) / jnp.sqrt(var + EPS) * g + be
        h = jnp.where(h >= 0, h, NEG_SLOPE * h)
        # Mirror the kernel's bf16 inter-layer activations.
        return h.astype(jnp.bfloat16).astype(jnp.float32)

    # Layer 1 (bf16 weight).
    h = jnp.dot(a.astype(jnp.bfloat16), params["w1"],
                preferred_element_type=jnp.float32) + params["b1"]
    a = bn_lrelu(h, params["g1"], params["be1"])

    # Layers 2..4 (int8 weight, explicit dequant scale).
    for i in range(2, 5):
        wq_bf16 = params[f"w{i}"].astype(jnp.bfloat16)   # exact: |q| <= 127
        h = jnp.dot(a.astype(jnp.bfloat16), wq_bf16,
                    preferred_element_type=jnp.float32)
        h = h * params[f"s{i}"] + params[f"b{i}"]
        a = bn_lrelu(h, params[f"g{i}"], params[f"be{i}"])

    # Layer 5 + tanh.
    h = jnp.dot(a.astype(jnp.bfloat16), params["w5"],
                preferred_element_type=jnp.float32) + params["b5"]
    return jnp.squeeze(jnp.tanh(h)[:, :action_dim])


if __name__ == "__main__":
    key = jax.random.PRNGKey(0)
    k_param, k_state = jax.random.split(key)

    batch = 8
    state_size = 32
    action_dim = 8

    params = init_actor_params(k_param, state_size, action_dim)
    state = jax.random.normal(k_state, (batch, state_size), jnp.float32)

    out = jax.block_until_ready(actor_forward(state, params, action_dim))
    ref = jax.block_until_ready(actor_reference(state, params, action_dim))

    assert out.shape == (batch, action_dim), out.shape
    max_err = float(jnp.max(jnp.abs(out - ref)))
    assert jnp.allclose(out, ref, atol=1e-4, rtol=1e-4), max_err

    print("KERNEL_OK")
</pallas_src>

<mosaic_0001>
module attributes {stable_mosaic.version = 11 : i64} {
  func.func @actor_kernel(%arg0: memref<8x32xbf16, #tpu.memory_space<vmem>>, %arg1: memref<32x512xbf16, #tpu.memory_space<vmem>>, %arg2: memref<1x512xf32, #tpu.memory_space<vmem>>, %arg3: memref<1x512xf32, #tpu.memory_space<vmem>>, %arg4: memref<1x512xf32, #tpu.memory_space<vmem>>, %arg5: memref<1x512xf32, #tpu.memory_space<vmem>>, %arg6: memref<1x512xf32, #tpu.memory_space<vmem>>, %arg7: memref<1x512xf32, #tpu.memory_space<vmem>>, %arg8: memref<1x512xf32, #tpu.memory_space<vmem>>, %arg9: memref<1x512xf32, #tpu.memory_space<vmem>>, %arg10: memref<1x512xf32, #tpu.memory_space<vmem>>, %arg11: memref<1x512xf32, #tpu.memory_space<vmem>>, %arg12: memref<1x512xf32, #tpu.memory_space<vmem>>, %arg13: memref<1x128xf32, #tpu.memory_space<vmem>>, %arg14: memref<512x512xi8, #tpu.memory_space<any>>, %arg15: memref<512x512xi8, #tpu.memory_space<any>>, %arg16: memref<512x512xi8, #tpu.memory_space<any>>, %arg17: memref<512x128xbf16, #tpu.memory_space<any>>, %arg18: memref<8x128xf32, #tpu.memory_space<vmem>>, %arg19: memref<512x512xi8, #tpu.memory_space<vmem>>, %arg20: memref<512x512xi8, #tpu.memory_space<vmem>>, %arg21: memref<512x512xi8, #tpu.memory_space<vmem>>, %arg22: memref<512x128xbf16, #tpu.memory_space<vmem>>, %arg23: memref<4x!tpu.dma_semaphore, #tpu.memory_space<semaphore_mem>>) attributes {dimension_semantics = [], scalar_prefetch = 0 : i64, scratch_operands = 5 : i64, tpu.core_type = #tpu.core_type<tc>} {
    %c0_i32 = arith.constant 0 : i32
    %0 = tpu.memref_slice %arg23[%c0_i32] : memref<4x!tpu.dma_semaphore, #tpu.memory_space<semaphore_mem>> -> memref<1x!tpu.dma_semaphore, #tpu.memory_space<semaphore_mem>>
    %1 = tpu.memref_squeeze %0 : memref<1x!tpu.dma_semaphore, #tpu.memory_space<semaphore_mem>> -> memref<!tpu.dma_semaphore, #tpu.memory_space<semaphore_mem>>
    tpu.enqueue_dma source(%arg14 : memref<512x512xi8, #tpu.memory_space<any>>) target(%arg19 : memref<512x512xi8, #tpu.memory_space<vmem>>) target_semaphore(%1 : memref<!tpu.dma_semaphore, #tpu.memory_space<semaphore_mem>>)
    %c1_i32 = arith.constant 1 : i32
    %2 = tpu.memref_slice %arg23[%c1_i32] : memref<4x!tpu.dma_semaphore, #tpu.memory_space<semaphore_mem>> -> memref<1x!tpu.dma_semaphore, #tpu.memory_space<semaphore_mem>>
    %3 = tpu.memref_squeeze %2 : memref<1x!tpu.dma_semaphore, #tpu.memory_space<semaphore_mem>> -> memref<!tpu.dma_semaphore, #tpu.memory_space<semaphore_mem>>
    tpu.enqueue_dma source(%arg15 : memref<512x512xi8, #tpu.memory_space<any>>) target(%arg20 : memref<512x512xi8, #tpu.memory_space<vmem>>) target_semaphore(%3 : memref<!tpu.dma_semaphore, #tpu.memory_space<semaphore_mem>>)
    %c2_i32 = arith.constant 2 : i32
    %4 = tpu.memref_slice %arg23[%c2_i32] : memref<4x!tpu.dma_semaphore, #tpu.memory_space<semaphore_mem>> -> memref<1x!tpu.dma_semaphore, #tpu.memory_space<semaphore_mem>>
    %5 = tpu.memref_squeeze %4 : memref<1x!tpu.dma_semaphore, #tpu.memory_space<semaphore_mem>> -> memref<!tpu.dma_semaphore, #tpu.memory_space<semaphore_mem>>
    tpu.enqueue_dma source(%arg16 : memref<512x512xi8, #tpu.memory_space<any>>) target(%arg21 : memref<512x512xi8, #tpu.memory_space<vmem>>) target_semaphore(%5 : memref<!tpu.dma_semaphore, #tpu.memory_space<semaphore_mem>>)
    %c3_i32 = arith.constant 3 : i32
    %6 = tpu.memref_slice %arg23[%c3_i32] : memref<4x!tpu.dma_semaphore, #tpu.memory_space<semaphore_mem>> -> memref<1x!tpu.dma_semaphore, #tpu.memory_space<semaphore_mem>>
    %7 = tpu.memref_squeeze %6 : memref<1x!tpu.dma_semaphore, #tpu.memory_space<semaphore_mem>> -> memref<!tpu.dma_semaphore, #tpu.memory_space<semaphore_mem>>
    tpu.enqueue_dma source(%arg17 : memref<512x128xbf16, #tpu.memory_space<any>>) target(%arg22 : memref<512x128xbf16, #tpu.memory_space<vmem>>) target_semaphore(%7 : memref<!tpu.dma_semaphore, #tpu.memory_space<semaphore_mem>>)
    %c0 = arith.constant 0 : index
    %c0_0 = arith.constant 0 : index
    %8 = vector.load %arg0[%c0, %c0_0] : memref<8x32xbf16, #tpu.memory_space<vmem>>, vector<8x32xbf16>
    %c0_1 = arith.constant 0 : index
    %c0_2 = arith.constant 0 : index
    %9 = vector.load %arg1[%c0_1, %c0_2] : memref<32x512xbf16, #tpu.memory_space<vmem>>, vector<32x512xbf16>
    %cst = arith.constant dense<0.000000e+00> : vector<8x512xf32>
    %10 = tpu.matmul %8, %9, %cst {dimension_numbers = #tpu.dot_dimension_numbers<[1], [0], [0], [1], [0, 0, 1, 1], [], []>} : vector<8x32xbf16>, vector<32x512xbf16>, vector<8x512xf32> -> vector<8x512xf32>
    %cst_3 = arith.constant dense<0.000000e+00> : vector<512xf32>
    %11 = vector.multi_reduction <add>, %10, %cst_3 [0] : vector<8x512xf32> to vector<512xf32>
    %12 = vector.shape_cast %11 : vector<512xf32> to vector<1x512xf32>
    %cst_4 = arith.constant 1.250000e-01 : f32
    %13 = vector.broadcast %cst_4 : f32 to vector<1x512xf32>
    %14 = arith.mulf %12, %13 : vector<1x512xf32>
    %15 = vector.broadcast %14 : vector<1x512xf32> to vector<8x512xf32>
    %16 = arith.subf %10, %15 : vector<8x512xf32>
    %17 = arith.mulf %16, %16 : vector<8x512xf32>
    %cst_5 = arith.constant dense<0.000000e+00> : vector<512xf32>
    %18 = vector.multi_reduction <add>, %17, %cst_5 [0] : vector<8x512xf32> to vector<512xf32>
    %19 = vector.shape_cast %18 : vector<512xf32> to vector<1x512xf32>
    %cst_6 = arith.constant 1.250000e-01 : f32
    %20 = vector.broadcast %cst_6 : f32 to vector<1x512xf32>
    %21 = arith.mulf %19, %20 : vector<1x512xf32>
    %c0_7 = arith.constant 0 : index
    %c0_8 = arith.constant 0 : index
    %22 = vector.load %arg2[%c0_7, %c0_8] : memref<1x512xf32, #tpu.memory_space<vmem>>, vector<1x512xf32>
    %cst_9 = arith.constant 9.99999974E-6 : f32
    %23 = vector.broadcast %cst_9 : f32 to vector<1x512xf32>
    %24 = arith.addf %21, %23 : vector<1x512xf32>
    %25 = math.rsqrt %24 : vector<1x512xf32>
    %26 = arith.mulf %22, %25 : vector<1x512xf32>
    %27 = vector.broadcast %26 : vector<1x512xf32> to vector<8x512xf32>
    %28 = arith.mulf %16, %27 : vector<8x512xf32>
    %c0_10 = arith.constant 0 : index
    %c0_11 = arith.constant 0 : index
    %29 = vector.load %arg3[%c0_10, %c0_11] : memref<1x512xf32, #tpu.memory_space<vmem>>, vector<1x512xf32>
    %30 = vector.broadcast %29 : vector<1x512xf32> to vector<8x512xf32>
    %31 = arith.addf %28, %30 : vector<8x512xf32>
    %cst_12 = arith.constant 2.000000e-01 : f32
    %32 = vector.broadcast %cst_12 : f32 to vector<8x512xf32>
    %33 = arith.mulf %32, %31 : vector<8x512xf32>
    %34 = arith.maximumf %31, %33 : vector<8x512xf32>
    %35 = arith.truncf %34 : vector<8x512xf32> to vector<8x512xbf16>
    %c0_i32_13 = arith.constant 0 : i32
    %36 = tpu.memref_slice %arg23[%c0_i32_13] : memref<4x!tpu.dma_semaphore, #tpu.memory_space<semaphore_mem>> -> memref<1x!tpu.dma_semaphore, #tpu.memory_space<semaphore_mem>>
    %37 = tpu.memref_squeeze %36 : memref<1x!tpu.dma_semaphore, #tpu.memory_space<semaphore_mem>> -> memref<!tpu.dma_semaphore, #tpu.memory_space<semaphore_mem>>
    tpu.wait_dma2 semaphore(%37 : memref<!tpu.dma_semaphore, #tpu.memory_space<semaphore_mem>>) src(%arg14 : memref<512x512xi8, #tpu.memory_space<any>>) dst(%arg19 : memref<512x512xi8, #tpu.memory_space<vmem>>)
    %c0_14 = arith.constant 0 : index
    %c0_15 = arith.constant 0 : index
    %38 = vector.load %arg19[%c0_14, %c0_15] : memref<512x512xi8, #tpu.memory_space<vmem>>, vector<512x512xi8>
    %39 = arith.sitofp %38 : vector<512x512xi8> to vector<512x512xbf16>
    %cst_16 = arith.constant dense<0.000000e+00> : vector<8x512xf32>
    %40 = tpu.matmul %35, %39, %cst_16 {dimension_numbers = #tpu.dot_dimension_numbers<[1], [0], [0], [1], [0, 0, 1, 1], [], []>} : vector<8x512xbf16>, vector<512x512xbf16>, vector<8x512xf32> -> vector<8x512xf32>
    %c0_17 = arith.constant 0 : index
    %c0_18 = arith.constant 0 : index
    %41 = vector.load %arg4[%c0_17, %c0_18] : memref<1x512xf32, #tpu.memory_space<vmem>>, vector<1x512xf32>
    %cst_19 = arith.constant dense<0.000000e+00> : vector<512xf32>
    %42 = vector.multi_reduction <add>, %40, %cst_19 [0] : vector<8x512xf32> to vector<512xf32>
    %43 = vector.shape_cast %42 : vector<512xf32> to vector<1x512xf32>
    %cst_20 = arith.constant 1.250000e-01 : f32
    %44 = vector.broadcast %cst_20 : f32 to vector<1x512xf32>
    %45 = arith.mulf %43, %44 : vector<1x512xf32>
    %46 = vector.broadcast %45 : vector<1x512xf32> to vector<8x512xf32>
    %47 = arith.subf %40, %46 : vector<8x512xf32>
    %48 = arith.mulf %47, %47 : vector<8x512xf32>
    %cst_21 = arith.constant dense<0.000000e+00> : vector<512xf32>
    %49 = vector.multi_reduction <add>, %48, %cst_21 [0] : vector<8x512xf32> to vector<512xf32>
    %50 = vector.shape_cast %49 : vector<512xf32> to vector<1x512xf32>
    %cst_22 = arith.constant 1.250000e-01 : f32
    %51 = vector.broadcast %cst_22 : f32 to vector<1x512xf32>
    %52 = arith.mulf %50, %51 : vector<1x512xf32>
    %53 = arith.mulf %41, %41 : vector<1x512xf32>
    %54 = arith.mulf %52, %53 : vector<1x512xf32>
    %c0_23 = arith.constant 0 : index
    %c0_24 = arith.constant 0 : index
    %55 = vector.load %arg5[%c0_23, %c0_24] : memref<1x512xf32, #tpu.memory_space<vmem>>, vector<1x512xf32>
    %56 = arith.mulf %55, %41 : vector<1x512xf32>
    %cst_25 = arith.constant 9.99999974E-6 : f32
    %57 = vector.broadcast %cst_25 : f32 to vector<1x512xf32>
    %58 = arith.addf %54, %57 : vector<1x512xf32>
    %59 = math.rsqrt %58 : vector<1x512xf32>
    %60 = arith.mulf %56, %59 : vector<1x512xf32>
    %61 = vector.broadcast %60 : vector<1x512xf32> to vector<8x512xf32>
    %62 = arith.mulf %47, %61 : vector<8x512xf32>
    %c0_26 = arith.constant 0 : index
    %c0_27 = arith.constant 0 : index
    %63 = vector.load %arg6[%c0_26, %c0_27] : memref<1x512xf32, #tpu.memory_space<vmem>>, vector<1x512xf32>
    %64 = vector.broadcast %63 : vector<1x512xf32> to vector<8x512xf32>
    %65 = arith.addf %62, %64 : vector<8x512xf32>
    %cst_28 = arith.constant 2.000000e-01 : f32
    %66 = vector.broadcast %cst_28 : f32 to vector<8x512xf32>
    %67 = arith.mulf %66, %65 : vector<8x512xf32>
    %68 = arith.maximumf %65, %67 : vector<8x512xf32>
    %69 = arith.truncf %68 : vector<8x512xf32> to vector<8x512xbf16>
    %c1_i32_29 = arith.constant 1 : i32
    %70 = tpu.memref_slice %arg23[%c1_i32_29] : memref<4x!tpu.dma_semaphore, #tpu.memory_space<semaphore_mem>> -> memref<1x!tpu.dma_semaphore, #tpu.memory_space<semaphore_mem>>
    %71 = tpu.memref_squeeze %70 : memref<1x!tpu.dma_semaphore, #tpu.memory_space<semaphore_mem>> -> memref<!tpu.dma_semaphore, #tpu.memory_space<semaphore_mem>>
    tpu.wait_dma2 semaphore(%71 : memref<!tpu.dma_semaphore, #tpu.memory_space<semaphore_mem>>) src(%arg15 : memref<512x512xi8, #tpu.memory_space<any>>) dst(%arg20 : memref<512x512xi8, #tpu.memory_space<vmem>>)
    %c0_30 = arith.constant 0 : index
    %c0_31 = arith.constant 0 : index
    %72 = vector.load %arg20[%c0_30, %c0_31] : memref<512x512xi8, #tpu.memory_space<vmem>>, vector<512x512xi8>
    %73 = arith.sitofp %72 : vector<512x512xi8> to vector<512x512xbf16>
    %cst_32 = arith.constant dense<0.000000e+00> : vector<8x512xf32>
    %74 = tpu.matmul %69, %73, %cst_32 {dimension_numbers = #tpu.dot_dimension_numbers<[1], [0], [0], [1], [0, 0, 1, 1], [], []>} : vector<8x512xbf16>, vector<512x512xbf16>, vector<8x512xf32> -> vector<8x512xf32>
    %c0_33 = arith.constant 0 : index
    %c0_34 = arith.constant 0 : index
    %75 = vector.load %arg7[%c0_33, %c0_34] : memref<1x512xf32, #tpu.memory_space<vmem>>, vector<1x512xf32>
    %cst_35 = arith.constant dense<0.000000e+00> : vector<512xf32>
    %76 = vector.multi_reduction <add>, %74, %cst_35 [0] : vector<8x512xf32> to vector<512xf32>
    %77 = vector.shape_cast %76 : vector<512xf32> to vector<1x512xf32>
    %cst_36 = arith.constant 1.250000e-01 : f32
    %78 = vector.broadcast %cst_36 : f32 to vector<1x512xf32>
    %79 = arith.mulf %77, %78 : vector<1x512xf32>
    %80 = vector.broadcast %79 : vector<1x512xf32> to vector<8x512xf32>
    %81 = arith.subf %74, %80 : vector<8x512xf32>
    %82 = arith.mulf %81, %81 : vector<8x512xf32>
    %cst_37 = arith.constant dense<0.000000e+00> : vector<512xf32>
    %83 = vector.multi_reduction <add>, %82, %cst_37 [0] : vector<8x512xf32> to vector<512xf32>
    %84 = vector.shape_cast %83 : vector<512xf32> to vector<1x512xf32>
    %cst_38 = arith.constant 1.250000e-01 : f32
    %85 = vector.broadcast %cst_38 : f32 to vector<1x512xf32>
    %86 = arith.mulf %84, %85 : vector<1x512xf32>
    %87 = arith.mulf %75, %75 : vector<1x512xf32>
    %88 = arith.mulf %86, %87 : vector<1x512xf32>
    %c0_39 = arith.constant 0 : index
    %c0_40 = arith.constant 0 : index
    %89 = vector.load %arg8[%c0_39, %c0_40] : memref<1x512xf32, #tpu.memory_space<vmem>>, vector<1x512xf32>
    %90 = arith.mulf %89, %75 : vector<1x512xf32>
    %cst_41 = arith.constant 9.99999974E-6 : f32
    %91 = vector.broadcast %cst_41 : f32 to vector<1x512xf32>
    %92 = arith.addf %88, %91 : vector<1x512xf32>
    %93 = math.rsqrt %92 : vector<1x512xf32>
    %94 = arith.mulf %90, %93 : vector<1x512xf32>
    %95 = vector.broadcast %94 : vector<1x512xf32> to vector<8x512xf32>
    %96 = arith.mulf %81, %95 : vector<8x512xf32>
    %c0_42 = arith.constant 0 : index
    %c0_43 = arith.constant 0 : index
    %97 = vector.load %arg9[%c0_42, %c0_43] : memref<1x512xf32, #tpu.memory_space<vmem>>, vector<1x512xf32>
    %98 = vector.broadcast %97 : vector<1x512xf32> to vector<8x512xf32>
    %99 = arith.addf %96, %98 : vector<8x512xf32>
    %cst_44 = arith.constant 2.000000e-01 : f32
    %100 = vector.broadcast %cst_44 : f32 to vector<8x512xf32>
    %101 = arith.mulf %100, %99 : vector<8x512xf32>
    %102 = arith.maximumf %99, %101 : vector<8x512xf32>
    %103 = arith.truncf %102 : vector<8x512xf32> to vector<8x512xbf16>
    %c2_i32_45 = arith.constant 2 : i32
    %104 = tpu.memref_slice %arg23[%c2_i32_45] : memref<4x!tpu.dma_semaphore, #tpu.memory_space<semaphore_mem>> -> memref<1x!tpu.dma_semaphore, #tpu.memory_space<semaphore_mem>>
    %105 = tpu.memref_squeeze %104 : memref<1x!tpu.dma_semaphore, #tpu.memory_space<semaphore_mem>> -> memref<!tpu.dma_semaphore, #tpu.memory_space<semaphore_mem>>
    tpu.wait_dma2 semaphore(%105 : memref<!tpu.dma_semaphore, #tpu.memory_space<semaphore_mem>>) src(%arg16 : memref<512x512xi8, #tpu.memory_space<any>>) dst(%arg21 : memref<512x512xi8, #tpu.memory_space<vmem>>)
    %c0_46 = arith.constant 0 : index
    %c0_47 = arith.constant 0 : index
    %106 = vector.load %arg21[%c0_46, %c0_47] : memref<512x512xi8, #tpu.memory_space<vmem>>, vector<512x512xi8>
    %107 = arith.sitofp %106 : vector<512x512xi8> to vector<512x512xbf16>
    %cst_48 = arith.constant dense<0.000000e+00> : vector<8x512xf32>
    %108 = tpu.matmul %103, %107, %cst_48 {dimension_numbers = #tpu.dot_dimension_numbers<[1], [0], [0], [1], [0, 0, 1, 1], [], []>} : vector<8x512xbf16>, vector<512x512xbf16>, vector<8x512xf32> -> vector<8x512xf32>
    %c0_49 = arith.constant 0 : index
    %c0_50 = arith.constant 0 : index
    %109 = vector.load %arg10[%c0_49, %c0_50] : memref<1x512xf32, #tpu.memory_space<vmem>>, vector<1x512xf32>
    %cst_51 = arith.constant dense<0.000000e+00> : vector<512xf32>
    %110 = vector.multi_reduction <add>, %108, %cst_51 [0] : vector<8x512xf32> to vector<512xf32>
    %111 = vector.shape_cast %110 : vector<512xf32> to vector<1x512xf32>
    %cst_52 = arith.constant 1.250000e-01 : f32
    %112 = vector.broadcast %cst_52 : f32 to vector<1x512xf32>
    %113 = arith.mulf %111, %112 : vector<1x512xf32>
    %114 = vector.broadcast %113 : vector<1x512xf32> to vector<8x512xf32>
    %115 = arith.subf %108, %114 : vector<8x512xf32>
    %116 = arith.mulf %115, %115 : vector<8x512xf32>
    %cst_53 = arith.constant dense<0.000000e+00> : vector<512xf32>
    %117 = vector.multi_reduction <add>, %116, %cst_53 [0] : vector<8x512xf32> to vector<512xf32>
    %118 = vector.shape_cast %117 : vector<512xf32> to vector<1x512xf32>
    %cst_54 = arith.constant 1.250000e-01 : f32
    %119 = vector.broadcast %cst_54 : f32 to vector<1x512xf32>
    %120 = arith.mulf %118, %119 : vector<1x512xf32>
    %121 = arith.mulf %109, %109 : vector<1x512xf32>
    %122 = arith.mulf %120, %121 : vector<1x512xf32>
    %c0_55 = arith.constant 0 : index
    %c0_56 = arith.constant 0 : index
    %123 = vector.load %arg11[%c0_55, %c0_56] : memref<1x512xf32, #tpu.memory_space<vmem>>, vector<1x512xf32>
    %124 = arith.mulf %123, %109 : vector<1x512xf32>
    %cst_57 = arith.constant 9.99999974E-6 : f32
    %125 = vector.broadcast %cst_57 : f32 to vector<1x512xf32>
    %126 = arith.addf %122, %125 : vector<1x512xf32>
    %127 = math.rsqrt %126 : vector<1x512xf32>
    %128 = arith.mulf %124, %127 : vector<1x512xf32>
    %129 = vector.broadcast %128 : vector<1x512xf32> to vector<8x512xf32>
    %130 = arith.mulf %115, %129 : vector<8x512xf32>
    %c0_58 = arith.constant 0 : index
    %c0_59 = arith.constant 0 : index
    %131 = vector.load %arg12[%c0_58, %c0_59] : memref<1x512xf32, #tpu.memory_space<vmem>>, vector<1x512xf32>
    %132 = vector.broadcast %131 : vector<1x512xf32> to vector<8x512xf32>
    %133 = arith.addf %130, %132 : vector<8x512xf32>
    %cst_60 = arith.constant 2.000000e-01 : f32
    %134 = vector.broadcast %cst_60 : f32 to vector<8x512xf32>
    %135 = arith.mulf %134, %133 : vector<8x512xf32>
    %136 = arith.maximumf %133, %135 : vector<8x512xf32>
    %137 = arith.truncf %136 : vector<8x512xf32> to vector<8x512xbf16>
    %c3_i32_61 = arith.constant 3 : i32
    %138 = tpu.memref_slice %arg23[%c3_i32_61] : memref<4x!tpu.dma_semaphore, #tpu.memory_space<semaphore_mem>> -> memref<1x!tpu.dma_semaphore, #tpu.memory_space<semaphore_mem>>
    %139 = tpu.memref_squeeze %138 : memref<1x!tpu.dma_semaphore, #tpu.memory_space<semaphore_mem>> -> memref<!tpu.dma_semaphore, #tpu.memory_space<semaphore_mem>>
    tpu.wait_dma2 semaphore(%139 : memref<!tpu.dma_semaphore, #tpu.memory_space<semaphore_mem>>) src(%arg17 : memref<512x128xbf16, #tpu.memory_space<any>>) dst(%arg22 : memref<512x128xbf16, #tpu.memory_space<vmem>>)
    %c0_62 = arith.constant 0 : index
    %c0_63 = arith.constant 0 : index
    %140 = vector.load %arg22[%c0_62, %c0_63] : memref<512x128xbf16, #tpu.memory_space<vmem>>, vector<512x128xbf16>
    %cst_64 = arith.constant dense<0.000000e+00> : vector<8x128xf32>
    %141 = tpu.matmul %137, %140, %cst_64 {dimension_numbers = #tpu.dot_dimension_numbers<[1], [0], [0], [1], [0, 0, 1, 1], [], []>} : vector<8x512xbf16>, vector<512x128xbf16>, vector<8x128xf32> -> vector<8x128xf32>
    %c0_65 = arith.constant 0 : index
    %c0_66 = arith.constant 0 : index
    %142 = vector.load %arg13[%c0_65, %c0_66] : memref<1x128xf32, #tpu.memory_space<vmem>>, vector<1x128xf32>
    %143 = vector.broadcast %142 : vector<1x128xf32> to vector<8x128xf32>
    %144 = arith.addf %141, %143 : vector<8x128xf32>
    %145 = math.tanh %144 : vector<8x128xf32>
    %c0_67 = arith.constant 0 : index
    %c0_68 = arith.constant 0 : index
    %146 = vector.load %arg18[%c0_67, %c0_68] : memref<8x128xf32, #tpu.memory_space<vmem>>, vector<8x128xf32>
    tpu.vector_store %arg18[%c0_67, %c0_68], %145 {strides = array<i32>} : memref<8x128xf32, #tpu.memory_space<vmem>>, vector<8x128xf32>,
    return
  }
}

</mosaic_0001>

<bundles_post_ra>
// kernel: tpu_custom_call.1
= control target key start
LH: loop header
LB: loop body
LE: loop exit
PB: predicated region body
PF: predicated region fallthrough
CT: control target
= control target key end

     0   :  { %s5222_s0 = inlined_call_operand.hbm [shape: bf16[8,32], index: 0, kind: input, shape index: {}]   ;;  %s5223_s1 = inlined_call_operand.hbm [shape: bf16[32,512], index: 1, kind: input, shape index: {}]   ;;  %s5224_s2 = inlined_call_operand.hbm [shape: f32[1,512], index: 2, kind: input, shape index: {}]   ;;  %s5225_s3 = inlined_call_operand.hbm [shape: f32[1,512], index: 3, kind: input, shape index: {}]   ;;  %s5226_s4 = inlined_call_operand.hbm [shape: f32[1,512], index: 4, kind: input, shape index: {}]   ;;  %s5227_s5 = inlined_call_operand.vmem [shape: f32[1,512], index: 5, kind: input, shape index: {}]   ;;  %s5228_s6 = inlined_call_operand.hbm [shape: f32[1,512], index: 6, kind: input, shape index: {}]   ;;  %s5229_s7 = inlined_call_operand.hbm [shape: f32[1,512], index: 7, kind: input, shape index: {}]   ;;  %s5230_s8 = inlined_call_operand.hbm [shape: f32[1,512], index: 8, kind: input, shape index: {}]   ;;  %s5231_s9 = inlined_call_operand.vmem [shape: f32[1,512], index: 9, kind: input, shape index: {}]   ;;  %s5232_s10 = inlined_call_operand.hbm [shape: f32[1,512], index: 10, kind: input, shape index: {}]   ;;  %s5233_s11 = inlined_call_operand.hbm [shape: f32[1,512], index: 11, kind: input, shape index: {}]   ;;  %s5234_s12 = inlined_call_operand.hbm [shape: f32[1,512], index: 12, kind: input, shape index: {}]   ;;  %s5235_s13 = inlined_call_operand.vmem [shape: f32[1,128], index: 13, kind: input, shape index: {}]   ;;  %s5236_s14 = inlined_call_operand.hbm [shape: s8[512,512], index: 14, kind: input, shape index: {}]   ;;  %s5237_s15 = inlined_call_operand.hbm [shape: s8[512,512], index: 15, kind: input, shape index: {}]   ;;  %s5238_s16 = inlined_call_operand.hbm [shape: s8[512,512], index: 16, kind: input, shape index: {}]   ;;  %s5239_s17 = inlined_call_operand.hbm [shape: bf16[512,128], index: 17, kind: input, shape index: {}]   ;;  %s5240_s18 = inlined_call_operand.hbm [shape: f32[8,128], index: 18, kind: output, shape index: {}]  }
   0x1   :  { %5241 = sst [smem:[#allocation47_spill]] %s5222_s0 }
   0x2   :  { %5242 = sst [smem:[#allocation48_spill]] %s5223_s1 }
   0x3   :  { %5243 = sst [smem:[#allocation49_spill]] %s5224_s2 }
   0x4   :  { %5244 = sst [smem:[#allocation50_spill]] %s5240_s18 }
   0x5   :  { %23 = vsyncpa [#allocation8], 0 }
   0x6   :  { %24 = vsyncpa [#allocation11], 0 }
   0x7   :  { %25 = vsyncpa [#allocation14], 0 }
   0x8   :  { %26 = vsyncpa [#allocation17], 0 }
   0x9   :  { %27 = vsyncpa [#allocation20], 0 }
   0xa   :  { %28 = vsyncpa [#allocation23], 0  ;;  %s5245_s29 = sld [smem:[#allocation48_spill]] }
  0x10   :  { %s45_s30 = sshll.u32 %s5245_s29, 4  ;;  %s46_s30 = int_to_ptr.hbm [resolvable:$true] %s45_s30 }
  0x11   :  { %29 = vsyncpa [#allocation9], 0  ;;  %s4833_s0 = smov [#allocation10]   ;;  %s70_s21 = sshll.u32 %s5225_s3, 4  ;;  %s71_s21 = int_to_ptr.hbm [resolvable:$true] %s70_s21 }
  0x12   :  { %s47_s19 = sshll.u32 %s4833_s0, 4  ;;  %s4834_s22 = smov 256   ;;  %s48_s19 = int_to_ptr.vmem [resolvable:$true] %s47_s19 }
  0x13   :  { %s4835_s2 = smov 16   ;;  %s4836_s23 = smov [#allocation13]  }
  0x14   :  { %53 = dma.hbm_to_vmem [thread:$0]  %s46_s30, 1024, %s48_s19, [#allocation11], %s4834_s22, %s4834_s22, %s4835_s2  }
  0x15   :  { %s72_s24 = sshll.u32 %s4836_s23, 4  ;;  %s94_s27 = sshll.u32 %s5228_s6, 4  ;;  %s73_s24 = int_to_ptr.vmem [resolvable:$true] %s72_s24  ;;  %s95_s27 = int_to_ptr.hbm [resolvable:$true] %s94_s27 }
  0x16   :  { %75 = dma.hbm_to_vmem [thread:$0]  %s71_s21, 64, %s73_s24, [#allocation14]  }
  0x17   :  { %s116_s0 = sshll.u32 %s5230_s8, 4  ;;  %s4837_s18 = smov [#allocation16]   ;;  %s117_s0 = int_to_ptr.hbm [resolvable:$true] %s116_s0 }
  0x18   :  { %s96_s1 = sshll.u32 %s4837_s18, 4  ;;  %s4838_s3 = smov [#allocation19]   ;;  %s97_s1 = int_to_ptr.vmem [resolvable:$true] %s96_s1 }
  0x19   :  { %99 = dma.hbm_to_vmem [thread:$0]  %s95_s27, 64, %s97_s1, [#allocation17]  }
  0x1a   :  { %s118_s30 = sshll.u32 %s4838_s3, 4  ;;  %s140_s22 = sshll.u32 %s5233_s11, 4  ;;  %s119_s30 = int_to_ptr.vmem [resolvable:$true] %s118_s30  ;;  %s141_s22 = int_to_ptr.hbm [resolvable:$true] %s140_s22 }
  0x1b   :  { %121 = dma.hbm_to_vmem [thread:$0]  %s117_s0, 64, %s119_s30, [#allocation20]  }
  0x1c   :  { %s5246_s2 = sld [smem:[#allocation47_spill]]  ;;  %s4839_s24 = smov [#allocation22]  }
  0x1d   :  { %s142_s8 = sshll.u32 %s4839_s24, 4  ;;  %s4840_s18 = smov [#allocation7]   ;;  %s143_s8 = int_to_ptr.vmem [resolvable:$true] %s142_s8 }
  0x1e   :  { %145 = dma.hbm_to_vmem [thread:$0]  %s141_s22, 64, %s143_s8, [#allocation23]  }
  0x1f   :  { %s37_s25 = sshll.u32 %s4840_s18, 4  ;;  %s5247_s28 = sld [smem:[#allocation49_spill]]  ;;  %s38_s25 = int_to_ptr.vmem [resolvable:$true] %s37_s25 }
  0x20   :  { %s81_s1 = sshll.u32 %s5226_s4, 4  ;;  %s4841_s3 = smov [#allocation12]   ;;  %s82_s1 = int_to_ptr.hbm [resolvable:$true] %s81_s1 }
  0x21   :  { %s61_s30 = sshll.u32 %s4841_s3, 4  ;;  %s4842_s19 = smov [#allocation15]   ;;  %s62_s30 = int_to_ptr.vmem [resolvable:$true] %s61_s30 }
  0x22   :  { %s35_s23 = sshll.u32 %s5246_s2, 4  ;;  %s83_s20 = sshll.u32 %s4842_s19, 4  ;;  %s36_s23 = int_to_ptr.hbm [resolvable:$true] %s35_s23  ;;  %s84_s20 = int_to_ptr.vmem [resolvable:$true] %s83_s20 }
  0x23   :  { %40 = dma.hbm_to_vmem [thread:$0]  %s36_s23, 64, %s38_s25, [#allocation8]  }
  0x24   :  { %s105_s21 = sshll.u32 %s5229_s7, 4  ;;  %s129_s24 = sshll.u32 %s5232_s10, 4  ;;  %s106_s21 = int_to_ptr.hbm [resolvable:$true] %s105_s21  ;;  %s130_s24 = int_to_ptr.hbm [resolvable:$true] %s129_s24 }
  0x25   :  { %s59_s29 = sshll.u32 %s5247_s28, 4  ;;  %s4843_s8 = smov [#allocation18]   ;;  %s60_s29 = int_to_ptr.hbm [resolvable:$true] %s59_s29 }
  0x26   :  { %64 = dma.hbm_to_vmem [thread:$0]  %s60_s29, 64, %s62_s30, [#allocation11]  }
  0x27   :  { %86 = dma.hbm_to_vmem [thread:$0]  %s82_s1, 64, %s84_s20, [#allocation14]  }
  0x28   :  { %s107_s4 = sshll.u32 %s4843_s8, 4  ;;  %s4844_s18 = smov [#allocation21]   ;;  %s108_s4 = int_to_ptr.vmem [resolvable:$true] %s107_s4 }
  0x29   :  { %110 = dma.hbm_to_vmem [thread:$0]  %s106_s21, 64, %s108_s4, [#allocation17]  }
  0x2a   :  { %s131_s25 = sshll.u32 %s4844_s18, 4  ;;  %s151_s28 = sshll.u32 %s5234_s12, 4  ;;  %s132_s25 = int_to_ptr.vmem [resolvable:$true] %s131_s25  ;;  %s152_s28 = int_to_ptr.hbm [resolvable:$true] %s151_s28 }
  0x2b   :  { %134 = dma.hbm_to_vmem [thread:$0]  %s130_s24, 64, %s132_s25, [#allocation20]  }
  0x2c   :  { %s4845_s7 = smov [#allocation24]  }
  0x2d   :  { %s153_s29 = sshll.u32 %s4845_s7, 4  ;;  %s154_s29 = int_to_ptr.vmem [resolvable:$true] %s153_s29 }
  0x2e   :  { %156 = dma.hbm_to_vmem [thread:$0]  %s152_s28, 64, %s154_s29, [#allocation23]  }
  0x2f   :  { %4811 = dma.done.wait [#allocation8], 64  }
  0x30   :  { %4812 = vsyncadd [#allocation8], 4294967232 }
  0x31   :  { %4813 = dma.done.wait [#allocation11], 1088  }
  0x32   :  { %4814 = vsyncadd [#allocation11], 4294966208 }
  0x33   :  { %4815 = dma.done.wait [#allocation14], 128  }
  0x34   :  { %4816 = vsyncadd [#allocation14], 4294967168 }
  0x35   :  { %4817 = dma.done.wait [#allocation17], 128  }
  0x36   :  { %4818 = vsyncadd [#allocation17], 4294967168 }
  0x37   :  { %4819 = dma.done.wait [#allocation20], 128  }
  0x38   :  { %4820 = vsyncadd [#allocation20], 4294967168 }
  0x39   :  { %4821 = dma.done.wait [#allocation23], 128  }
  0x3a   :  { %4822 = vsyncadd [#allocation23], 4294967168  ;;  %v4184_v0 = vld [vmem:[#allocation10 + $0x20] sm:$0xf]  ;;  %v4340_v1 = vld [vmem:[#allocation10 + $0x2c] sm:$0xf0] }
  0x3b   :  { %v4338_v2 = vld [vmem:[#allocation10 + $0x24] sm:$0xf]  ;;  %v4185_v3 = vor.u32 %v4340_v1, %v4184_v0  ;;  %v4186_v4 = vld [vmem:[#allocation10 + $0x30] sm:$0xf0]  ;;  %v4192_v5 = vld [vmem:[#allocation10 + $0x28] sm:$0xf] }
  0x3c   :  { %v4341_v6 = vld [vmem:[#allocation10 + $0x34] sm:$0xf0]  ;;  %v4189_v7 = vor.u32 %v4338_v2, %v4186_v4  ;;  %v4339_v9 = vld [vmem:[#allocation10 + $0x2c] sm:$0xf]  ;;  %v4194_v10 = vld [vmem:[#allocation10 + $0x38] sm:$0xf0] }
  0x3d   :  { %v4193_v8 = vor.u32 %v4341_v6, %v4192_v5  ;;  %v4168_v11 = vld [vmem:[#allocation10] sm:$0xf]  ;;  %318 = vmatpush.bf16.msra.mxu0 %v4185_v3  ;;  %v4197_v12 = vor.u32 %v4339_v9, %v4194_v10  ;;  %v4336_v13 = vld [vmem:[#allocation10 + $0xc] sm:$0xf0]  ;;  %v4334_v14 = vld [vmem:[#allocation10 + $0x4] sm:$0xf] }
  0x3e   :  { %v4170_v15 = vld [vmem:[#allocation10 + $0x10] sm:$0xf0]  ;;  %331 = vmatpush.bf16.msra.mxu1 %v4189_v7  ;;  %v4169_v16 = vor.u32 %v4336_v13, %v4168_v11  ;;  %v4176_v18 = vld [vmem:[#allocation10 + $0x8] sm:$0xf]  ;;  %v4337_v19 = vld [vmem:[#allocation10 + $0x14] sm:$0xf0] }
  0x3f   :  { %344 = vmatpush.bf16.msra.mxu2 %v4193_v8  ;;  %v4173_v17 = vor.u32 %v4334_v14, %v4170_v15  ;;  %v4335_v20 = vld [vmem:[#allocation10 + $0xc] sm:$0xf]  ;;  %357 = vmatpush.bf16.msra.mxu3 %v4197_v12  ;;  %v4177_v21 = vor.u32 %v4337_v19, %v4176_v18  ;;  %v4178_v22 = vld [vmem:[#allocation10 + $0x18] sm:$0xf0]  ;;  %vm308_vm0 = vcmask 261120   ;;  %s211_s11 = sshll.u32 %s5236_s14, 4  ;;  %s212_s11 = int_to_ptr.hbm [resolvable:$true] %s211_s11 }
  0x40   :  { %v4181_v23 = vor.u32 %v4335_v20, %v4178_v22  ;;  %v259_v24 = vld [vmem:[#allocation7] sm:$0xf]  ;;  %s4846_s0 = smov [#allocation2]   ;;  %s225_s19 = sshll.u32 %s5237_s15, 4  ;;  %vm480_vm11 = vcmask 1040384   ;;  %vm482_vm13 = vcmask 1042434   ;;  %s226_s19 = int_to_ptr.hbm [resolvable:$true] %s225_s19 }
  0x41   :  { %319 = vmatpush.bf16.msra.mxu0 %v4169_v16  ;;  %s213_s1 = sshll.u32 %s4846_s0, 4  ;;  %s4847_s20 = smov [#allocation3]   ;;  %vm484_vm15 = vcmask 1041408   ;;  %s214_s1 = int_to_ptr.vmem [resolvable:$true] %s213_s1 }
  0x42   :  { %332 = vmatpush.bf16.msra.mxu1 %v4173_v17  ;;  %216 = dma.hbm_to_vmem [thread:$0]  %s212_s11, 8192, %s214_s1, [#allocation6] }
  0x43   :  { %345 = vmatpush.bf16.msra.mxu2 %v4177_v21  ;;  %358 = vmatpush.bf16.msra.mxu3 %v4181_v23  ;;  %s227_s22 = sshll.u32 %s4847_s20, 4  ;;  %s239_s2 = sshll.u32 %s5238_s16, 4  ;;  %s228_s22 = int_to_ptr.vmem [resolvable:$true] %s227_s22  ;;  %s240_s2 = int_to_ptr.hbm [resolvable:$true] %s239_s2 }
  0x44   :  { %4198 = vmatmul.msk.bf16.vlgmr.msra.gmra.mxu0 %vm308_vm0, %v259_v24  ;;  %230 = dma.hbm_to_vmem [thread:$0]  %s226_s19, 8192, %s228_s22, [#allocation6 + $0x1] }
  0x45   :  { %4199 = vmatmul.msk.bf16.vlgmr.msra.gmra.mxu1 %vm308_vm0, %v259_v24  ;;  %s4848_s14 = smov [#allocation4]   ;;  %s253_s4 = sshll.u32 %s5239_s17, 4  ;;  %s254_s4 = int_to_ptr.hbm [resolvable:$true] %s253_s4 }
  0x46   :  { %4200 = vmatmul.msk.bf16.vlgmr.msra.gmra.mxu2 %vm308_vm0, %v259_v24  ;;  %4201 = vmatmul.msk.bf16.vlgmr.msra.gmra.mxu3 %vm308_vm0, %v259_v24  ;;  %s241_s23 = sshll.u32 %s4848_s14, 4  ;;  %s4849_s15 = smov [#allocation5]   ;;  %s242_s23 = int_to_ptr.vmem [resolvable:$true] %s241_s23 }
  0x47   :  { %244 = dma.hbm_to_vmem [thread:$0]  %s240_s2, 8192, %s242_s23, [#allocation6 + $0x2] }
  0x48   :  { %s255_s18 = sshll.u32 %s4849_s15, 4  ;;  %s256_s18 = int_to_ptr.vmem [resolvable:$true] %s255_s18 }
  0x49   :  { %258 = dma.hbm_to_vmem [thread:$0]  %s254_s4, 4096, %s256_s18, [#allocation6 + $0x3] }
  0xc1   :  { %v321_v25 = vpop.f32.mrf.mxu0 }
  0xc2   :  { %v364_v26 = vrot.slane %v321_v25, 4  ;;  %v334_v27 = vpop.f32.mrf.mxu1 }
  0xc3   :  { %v370_v28 = vrot.slane %v334_v27, 4 }
  0xc4   :  { %v365_v29 = vadd.f32 %v364_v26, %v321_v25 }
  0xc5   :  { %v371_v30 = vadd.f32 %v370_v28, %v334_v27 }
  0xc6   :  { %v366_v31 = vrot.slane %v365_v29, 2 }
  0xc7   :  { %v372_v32 = vrot.slane %v371_v30, 2 }
  0xc8   :  { %v367_v33 = vadd.f32 %v366_v31, %v365_v29 }
  0xc9   :  { %v347_v34 = vpop.f32.mrf.mxu2  ;;  %v373_v35 = vadd.f32 %v372_v32, %v371_v30  ;;  %v360_v37 = vpop.f32.mrf.mxu3 }
  0xca   :  { %v376_v36 = vrot.slane %v347_v34, 4  ;;  %v323_v38 = vpop.f32.mrf.mxu0  ;;  %v368_v39 = vrot.slane %v367_v33, 1  ;;  %v382_v40 = vrot.slane %v360_v37, 4  ;;  %v336_v41 = vpop.f32.mrf.mxu1 }
  0xcb   :  { %v374_v42 = vrot.slane %v373_v35, 1 }
  0xcc   :  { %v377_v43 = vadd.f32 %v376_v36, %v347_v34  ;;  %v369_v44 = vadd.f32 %v368_v39, %v367_v33  ;;  %v383_v45 = vadd.f32 %v382_v40, %v360_v37 }
  0xcd   :  { %v375_v46 = vadd.f32 %v374_v42, %v373_v35 }
  0xce   :  { %v378_v47 = vrot.slane %v377_v43, 2  ;;  %v388_v48 = vmul.f32 0.125, %v369_v44  ;;  %v384_v49 = vrot.slane %v383_v45, 2 }
  0xcf   :  { %v389_v50 = vmul.f32 0.125, %v375_v46 }
  0xd0   :  { %v379_v51 = vadd.f32 %v378_v47, %v377_v43  ;;  %v4991_v52 = vsub.f32 %v321_v25, %v388_v48  ;;  %v385_v53 = vadd.f32 %v384_v49, %v383_v45 }
  0xd1   :  { %v349_v54 = vpop.f32.mrf.mxu2  ;;  %v4993_v55 = vsub.f32 %v334_v27, %v389_v50  ;;  %v362_v57 = vpop.f32.mrf.mxu3 }
  0xd2   :  { %v380_v56 = vrot.slane %v379_v51, 1  ;;  %v396_v58 = vmul.f32 %v4991_v52, %v4991_v52  ;;  %v386_v59 = vrot.slane %v385_v53, 1 }
  0xd3   :  { %v397_v60 = vmul.f32 %v4993_v55, %v4993_v55 }
  0xd4   :  { %v381_v61 = vadd.f32 %v380_v56, %v379_v51  ;;  %v400_v62 = vrot.slane %v396_v58, 4  ;;  %v387_v63 = vadd.f32 %v386_v59, %v385_v53 }
  0xd5   :  { %v406_v0 = vrot.slane %v397_v60, 4 }
  0xd6   :  { %v390_v1 = vmul.f32 0.125, %v381_v61  ;;  %v401_v2 = vadd.f32 %v400_v62, %v396_v58  ;;  %v391_v3 = vmul.f32 0.125, %v387_v63 }
  0xd7   :  { %v407_v4 = vadd.f32 %v406_v0, %v397_v60 }
  0xd8   :  { %v4999_v5 = vsub.f32 %v347_v34, %v390_v1  ;;  %v402_v6 = vrot.slane %v401_v2, 2  ;;  %v5001_v7 = vsub.f32 %v360_v37, %v391_v3 }
  0xd9   :  { %v408_v8 = vrot.slane %v407_v4, 2 }
  0xda   :  { %v398_v9 = vmul.f32 %v4999_v5, %v4999_v5  ;;  %v403_v10 = vadd.f32 %v402_v6, %v401_v2  ;;  %v399_v11 = vmul.f32 %v5001_v7, %v5001_v7 }
  0xdb   :  { %v409_v12 = vadd.f32 %v408_v8, %v407_v4  ;;  %v428_v8 = vld [vmem:[#allocation12] sm:$0xf] }
  0xdc   :  { %v412_v13 = vrot.slane %v398_v9, 4  ;;  %v404_v14 = vrot.slane %v403_v10, 1  ;;  %v418_v15 = vrot.slane %v399_v11, 4 }
  0xdd   :  { %v410_v16 = vrot.slane %v409_v12, 1 }
  0xde   :  { %v413_v17 = vadd.f32 %v412_v13, %v398_v9  ;;  %v405_v18 = vadd.f32 %v404_v14, %v403_v10  ;;  %v419_v19 = vadd.f32 %v418_v15, %v399_v11  ;;  %v501_v11 = vld [vmem:[#allocation13] sm:$0xf] }
  0xdf   :  { %v411_v20 = vadd.f32 %v410_v16, %v409_v12  ;;  %v503_v14 = vperm.slane %v501_v11, 0  ;;  %v504_v15 = vperm.slane %v501_v11, 1  ;;  %v505_v16 = vperm.slane %v501_v11, 2 }
  0xe0   :  { %v414_v21 = vrot.slane %v413_v17, 2  ;;  %v424_v22 = vmul.f32 0.125, %v405_v18  ;;  %v420_v23 = vrot.slane %v419_v19, 2 }
  0xe1   :  { %v425_v24 = vmul.f32 0.125, %v411_v20 }
  0xe2   :  { %v415_v25 = vadd.f32 %v414_v21, %v413_v17  ;;  %v429_v26 = vadd.f32 1e-05, %v424_v22  ;;  %v421_v27 = vadd.f32 %v420_v23, %v419_v19  ;;  %v506_v17 = vperm.slane %v501_v11, 3 }
  0xe3   :  { %v430_v28 = vadd.f32 1e-05, %v425_v24 }
  0xe4   :  { %v416_v29 = vrot.slane %v415_v25, 1  ;;  %4392 = vrsqrt.f32 %v429_v26  ;;  %v422_v30 = vrot.slane %v421_v27, 1  ;;  %vm439_vm12 = vweird.f32 %v429_v26 }
  0xe5   :  { %4394 = vrsqrt.f32 %v430_v28  ;;  %vm449_vm2 = vweird.f32 %v430_v28 }
  0xe6   :  { %v417_v31 = vadd.f32 %v416_v29, %v415_v25  ;;  %v423_v32 = vadd.f32 %v422_v30, %v421_v27 }
  0xe8   :  { %v426_v33 = vmul.f32 0.125, %v417_v31  ;;  %v427_v34 = vmul.f32 0.125, %v423_v32 }
  0xea   :  { %v431_v35 = vadd.f32 1e-05, %v426_v33  ;;  %v4393_v36 = vpop.eup %4392  ;;  %v432_v37 = vadd.f32 1e-05, %v427_v34 }
  0xeb   :  { %v4395_v38 = vpop.eup %4394  ;;  %v434_v39 = vmul.f32 %v4393_v36, %v429_v26  ;;  %vm440_vm7 = vweird.f32 %v4393_v36 }
  0xec   :  { %4396 = vrsqrt.f32 %v431_v35  ;;  %v444_v40 = vmul.f32 %v4395_v38, %v430_v28  ;;  %vm450_vm1 = vweird.f32 %v4395_v38  ;;  %vm459_vm6 = vweird.f32 %v431_v35  ;;  %vm441_vm14 = vmor %vm439_vm12, %vm440_vm7 }
  0xed   :  { %4398 = vrsqrt.f32 %v432_v37  ;;  %v435_v42 = vmul.f32 %v4393_v36, %v434_v39  ;;  %vm451_vm3 = vmor %vm449_vm2, %vm450_vm1  ;;  %vm469_vm9 = vweird.f32 %v432_v37 }
  0xee   :  { %v445_v41 = vmul.f32 %v4395_v38, %v444_v40 }
  0xef   :  { %v436_v48 = vmul.f32 0.5, %v435_v42 }
  0xf0   :  { %v446_v43 = vmul.f32 0.5, %v445_v41 }
  0xf1   :  { %v437_v56 = vsub.f32 1.5, %v436_v48 }
  0xf2   :  { %v4397_v44 = vpop.eup %4396  ;;  %v447_v46 = vsub.f32 1.5, %v446_v43 }
  0xf3   :  { %v4399_v45 = vpop.eup %4398  ;;  %v454_v47 = vmul.f32 %v4397_v44, %v431_v35  ;;  %vm460_vm4 = vweird.f32 %v4397_v44  ;;  %v438_v62 = vmul.f32 %v4393_v36, %v437_v56 }
  0xf4   :  { %v464_v49 = vmul.f32 %v4399_v45, %v432_v37  ;;  %v448_v51 = vmul.f32 %v4395_v38, %v447_v46  ;;  %vm470_vm5 = vweird.f32 %v4399_v45  ;;  %vm461_vm8 = vmor %vm459_vm6, %vm460_vm4 }
  0xf5   :  { %v455_v50 = vmul.f32 %v4397_v44, %v454_v47  ;;  %vm471_vm10 = vmor %vm469_vm9, %vm470_vm5  ;;  %v442_v6 = vsel %vm441_vm14, %v4393_v36, %v438_v62 }
  0xf6   :  { %v465_v53 = vmul.f32 %v4399_v45, %v464_v49  ;;  %v452_v59 = vsel %vm451_vm3, %v4395_v38, %v448_v51 }
  0xf7   :  { %v456_v54 = vmul.f32 0.5, %v455_v50  ;;  %v477_v0 = vrot.slane %v452_v59, 7 }
  0xf8   :  { %v466_v57 = vmul.f32 0.5, %v465_v53 }
  0xf9   :  { %v457_v58 = vsub.f32 1.5, %v456_v54  ;;  %v481_v9 = vsel %vm480_vm11, %v442_v6, %v477_v0 }
  0xfa   :  { %v467_v60 = vsub.f32 1.5, %v466_v57 }
  0xfb   :  { %v458_v61 = vmul.f32 %v4397_v44, %v457_v58 }
  0xfc   :  { %v468_v63 = vmul.f32 %v4399_v45, %v467_v60 }
  0xfd   :  { %v462_v1 = vsel %vm461_vm8, %v4397_v44, %v458_v61 }
  0xfe   :  { %v478_v2 = vrot.slane %v462_v1, 6  ;;  %v472_v3 = vsel %vm471_vm10, %v4399_v45, %v468_v63 }
  0xff   :  { %v479_v4 = vrot.slane %v472_v3, 5 }
 0x101   :  { %v483_v10 = vsel %vm482_vm13, %v478_v2, %v479_v4 }
 0x102   :  { %v485_v12 = vsel %vm484_vm15, %v481_v9, %v483_v10 }
 0x103   :  { %v487_v13 = vmul.f32 %v485_v12, %v428_v8 }
 0x105   :  { %v489_v18 = vperm.slane %v487_v13, 0  ;;  %v490_v19 = vperm.slane %v487_v13, 1  ;;  %v491_v20 = vperm.slane %v487_v13, 2  ;;  %v492_v21 = vperm.slane %v487_v13, 3 }
 0x107   :  { %v497_v22 = vmul.f32 %v489_v18, %v4991_v52  ;;  %v498_v23 = vmul.f32 %v490_v19, %v4993_v55  ;;  %v499_v24 = vmul.f32 %v491_v20, %v4999_v5  ;;  %v500_v25 = vmul.f32 %v492_v21, %v5001_v7 }
 0x109   :  { %v511_v26 = vadd.f32 %v503_v14, %v497_v22  ;;  %v512_v27 = vadd.f32 %v504_v15, %v498_v23  ;;  %v513_v28 = vadd.f32 %v505_v16, %v499_v24  ;;  %v514_v29 = vadd.f32 %v506_v17, %v500_v25 }
 0x10b   :  { %v515_v30 = vmul.f32 0.2, %v511_v26  ;;  %v516_v31 = vmul.f32 0.2, %v512_v27  ;;  %v517_v32 = vmul.f32 0.2, %v513_v28 }
 0x10c   :  { %v518_v33 = vmul.f32 0.2, %v514_v29 }
 0x10d   :  { %v519_v34 = vmax.f32 %v511_v26, %v515_v30  ;;  %v520_v35 = vmax.f32 %v512_v27, %v516_v31  ;;  %v521_v36 = vmax.f32 %v513_v28, %v517_v32 }
 0x10e   :  { %v522_v37 = vmax.f32 %v514_v29, %v518_v33 }
 0x10f   :  { %v5014_v38 = vpack.c.bf16 %v519_v34, %v519_v34  ;;  %v5016_v52 = vpack.c.bf16 %v520_v35, %v520_v35  ;;  %v5018_v55 = vpack.c.bf16 %v521_v36, %v521_v36 }
 0x110   :  { %v5020_v5 = vpack.c.bf16 %v522_v37, %v522_v37 }
 0x111   :  { %4823 = dma.done.wait [#allocation6], 8192 }
 0x112   :  { %4824 = vsyncadd [#allocation6], 4294959104  ;;  %v543_v7 = vld [vmem:[#allocation2 + $0x60] sm:$0xff] }
 0x113   :  { %v559_v39 = vld [vmem:[#allocation2 + $0xe0] sm:$0xff]  ;;  %v651_v41 = vunpack.c.2.s8 %v543_v7  ;;  %v655_v42 = vunpack.c.3.s8 %v543_v7  ;;  %v643_v62 = vunpack.c.0.s8 %v543_v7  ;;  %v647_v63 = vunpack.c.1.s8 %v543_v7 }
 0x114   :  { %v575_v40 = vld [vmem:[#allocation2 + $0x160] sm:$0xff]  ;;  %v715_v43 = vunpack.c.2.s8 %v559_v39  ;;  %v719_v44 = vunpack.c.3.s8 %v559_v39  ;;  %v707_v2 = vunpack.c.0.s8 %v559_v39  ;;  %v711_v3 = vunpack.c.1.s8 %v559_v39 }
 0x115   :  { %v591_v45 = vld [vmem:[#allocation2 + $0x1e0] sm:$0xff]  ;;  %v779_v46 = vunpack.c.2.s8 %v575_v40  ;;  %v783_v47 = vunpack.c.3.s8 %v575_v40  ;;  %v907_v50 = vcvt.s32.f32 %v651_v41  ;;  %v911_v51 = vcvt.s32.f32 %v655_v42 }
 0x116   :  { %v843_v48 = vunpack.c.2.s8 %v591_v45  ;;  %v847_v49 = vunpack.c.3.s8 %v591_v45  ;;  %v971_v53 = vcvt.s32.f32 %v715_v43  ;;  %v975_v54 = vcvt.s32.f32 %v719_v44  ;;  %v539_v4 = vld [vmem:[#allocation2 + $0x40] sm:$0xff] }
 0x117   :  { %v1035_v56 = vcvt.s32.f32 %v779_v46  ;;  %v1039_v57 = vcvt.s32.f32 %v783_v47  ;;  %v1135_v60 = vpack.c.bf16 %v911_v51, %v907_v50  ;;  %v899_v6 = vcvt.s32.f32 %v643_v62  ;;  %v555_v15 = vld [vmem:[#allocation2 + $0xc0] sm:$0xff] }
 0x118   :  { %v1099_v58 = vcvt.s32.f32 %v843_v48  ;;  %v1103_v59 = vcvt.s32.f32 %v847_v49  ;;  %v1167_v61 = vpack.c.bf16 %v975_v54, %v971_v53  ;;  %v903_v8 = vcvt.s32.f32 %v647_v63  ;;  %v571_v20 = vld [vmem:[#allocation2 + $0x140] sm:$0xff] }
 0x119   :  { %v1199_v0 = vpack.c.bf16 %v1039_v57, %v1035_v56  ;;  %1235 = vmatpush.bf16.msrb.mxu0 %v1135_v60  ;;  %v771_v9 = vunpack.c.0.s8 %v575_v40  ;;  %v775_v10 = vunpack.c.1.s8 %v575_v40  ;;  %v963_v11 = vcvt.s32.f32 %v707_v2  ;;  %v587_v25 = vld [vmem:[#allocation2 + $0x1c0] sm:$0xff] }
 0x11a   :  { %v1231_v1 = vpack.c.bf16 %v1103_v59, %v1099_v58  ;;  %1248 = vmatpush.bf16.msrb.mxu1 %v1167_v61  ;;  %v967_v12 = vcvt.s32.f32 %v711_v3  ;;  %v835_v13 = vunpack.c.0.s8 %v591_v45  ;;  %v839_v14 = vunpack.c.1.s8 %v591_v45  ;;  %v535_v50 = vld [vmem:[#allocation2 + $0x20] sm:$0xff] }
 0x11b   :  { %1261 = vmatpush.bf16.msrb.mxu2 %v1199_v0  ;;  %v1131_v16 = vpack.c.bf16 %v903_v8, %v899_v6  ;;  %v1027_v17 = vcvt.s32.f32 %v771_v9  ;;  %v1031_v18 = vcvt.s32.f32 %v775_v10  ;;  %v635_v19 = vunpack.c.2.s8 %v539_v4  ;;  %v551_v61 = vld [vmem:[#allocation2 + $0xa0] sm:$0xff] }
 0x11c   :  { %1274 = vmatpush.bf16.msrb.mxu3 %v1231_v1  ;;  %v1163_v21 = vpack.c.bf16 %v967_v12, %v963_v11  ;;  %v1091_v22 = vcvt.s32.f32 %v835_v13  ;;  %v1095_v23 = vcvt.s32.f32 %v839_v14  ;;  %v639_v24 = vunpack.c.3.s8 %v539_v4  ;;  %v567_v2 = vld [vmem:[#allocation2 + $0x120] sm:$0xff] }
 0x11d   :  { %1236 = vmatpush.bf16.msrb.mxu0 %v1131_v16  ;;  %v1195_v26 = vpack.c.bf16 %v1031_v18, %v1027_v17  ;;  %v891_v27 = vcvt.s32.f32 %v635_v19  ;;  %v699_v28 = vunpack.c.2.s8 %v555_v15  ;;  %v703_v29 = vunpack.c.3.s8 %v555_v15  ;;  %v583_v9 = vld [vmem:[#allocation2 + $0x1a0] sm:$0xff] }
 0x11e   :  { %1249 = vmatpush.bf16.msrb.mxu1 %v1163_v21  ;;  %v1227_v30 = vpack.c.bf16 %v1095_v23, %v1091_v22  ;;  %v895_v31 = vcvt.s32.f32 %v639_v24  ;;  %v763_v32 = vunpack.c.2.s8 %v571_v20  ;;  %v767_v33 = vunpack.c.3.s8 %v571_v20 }
 0x11f   :  { %1262 = vmatpush.bf16.msrb.mxu2 %v1195_v26  ;;  %v955_v34 = vcvt.s32.f32 %v699_v28  ;;  %v959_v35 = vcvt.s32.f32 %v703_v29  ;;  %v827_v36 = vunpack.c.2.s8 %v587_v25  ;;  %v831_v37 = vunpack.c.3.s8 %v587_v25 }
 0x120   :  { %1275 = vmatpush.bf16.msrb.mxu3 %v1227_v30  ;;  %v1127_v7 = vpack.c.bf16 %v895_v31, %v891_v27  ;;  %v1019_v39 = vcvt.s32.f32 %v763_v32  ;;  %v1023_v40 = vcvt.s32.f32 %v767_v33  ;;  %v627_v41 = vunpack.c.0.s8 %v539_v4 }
 0x121   :  { %v1159_v42 = vpack.c.bf16 %v959_v35, %v955_v34  ;;  %v1083_v43 = vcvt.s32.f32 %v827_v36  ;;  %v1087_v44 = vcvt.s32.f32 %v831_v37  ;;  %v631_v45 = vunpack.c.1.s8 %v539_v4  ;;  %v531_v34 = vld [vmem:[#allocation2] sm:$0xff] }
 0x122   :  { %1237 = vmatpush.bf16.msrb.mxu0 %v1127_v7  ;;  %v1191_v46 = vpack.c.bf16 %v1023_v40, %v1019_v39  ;;  %v883_v47 = vcvt.s32.f32 %v627_v41  ;;  %v691_v48 = vunpack.c.0.s8 %v555_v15  ;;  %v695_v49 = vunpack.c.1.s8 %v555_v15 }
 0x123   :  { %1250 = vmatpush.bf16.msrb.mxu1 %v1159_v42  ;;  %v1223_v51 = vpack.c.bf16 %v1087_v44, %v1083_v43  ;;  %v887_v53 = vcvt.s32.f32 %v631_v45  ;;  %v755_v54 = vunpack.c.0.s8 %v571_v20  ;;  %v759_v56 = vunpack.c.1.s8 %v571_v20  ;;  %v547_v43 = vld [vmem:[#allocation2 + $0x80] sm:$0xff] }
 0x124   :  { %1263 = vmatpush.bf16.msrb.mxu2 %v1191_v46  ;;  %v947_v57 = vcvt.s32.f32 %v691_v48  ;;  %v951_v58 = vcvt.s32.f32 %v695_v49  ;;  %v819_v59 = vunpack.c.0.s8 %v587_v25  ;;  %v823_v60 = vunpack.c.1.s8 %v587_v25  ;;  %v563_v48 = vld [vmem:[#allocation2 + $0x100] sm:$0xff] }
 0x125   :  { %1276 = vmatpush.bf16.msrb.mxu3 %v1223_v51  ;;  %v1123_v62 = vpack.c.bf16 %v887_v53, %v883_v47  ;;  %v1011_v63 = vcvt.s32.f32 %v755_v54  ;;  %v1015_v0 = vcvt.s32.f32 %v759_v56  ;;  %v619_v1 = vunpack.c.2.s8 %v535_v50  ;;  %v579_v54 = vld [vmem:[#allocation2 + $0x180] sm:$0xff] }
 0x126   :  { %v1155_v3 = vpack.c.bf16 %v951_v58, %v947_v57  ;;  %v1075_v4 = vcvt.s32.f32 %v819_v59  ;;  %v1079_v6 = vcvt.s32.f32 %v823_v60  ;;  %v623_v8 = vunpack.c.3.s8 %v535_v50 }
 0x127   :  { %1238 = vmatpush.bf16.msrb.mxu0 %v1123_v62  ;;  %v1187_v10 = vpack.c.bf16 %v1015_v0, %v1011_v63  ;;  %v875_v11 = vcvt.s32.f32 %v619_v1  ;;  %v683_v12 = vunpack.c.2.s8 %v551_v61  ;;  %v687_v13 = vunpack.c.3.s8 %v551_v61 }
 0x128   :  { %1251 = vmatpush.bf16.msrb.mxu1 %v1155_v3  ;;  %v1219_v14 = vpack.c.bf16 %v1079_v6, %v1075_v4  ;;  %v879_v15 = vcvt.s32.f32 %v623_v8  ;;  %v747_v16 = vunpack.c.2.s8 %v567_v2  ;;  %v751_v17 = vunpack.c.3.s8 %v567_v2 }
 0x129   :  { %1264 = vmatpush.bf16.msrb.mxu2 %v1187_v10  ;;  %v939_v18 = vcvt.s32.f32 %v683_v12  ;;  %v943_v19 = vcvt.s32.f32 %v687_v13  ;;  %v811_v20 = vunpack.c.2.s8 %v583_v9  ;;  %v815_v21 = vunpack.c.3.s8 %v583_v9 }
 0x12a   :  { %1277 = vmatpush.bf16.msrb.mxu3 %v1219_v14  ;;  %v1119_v22 = vpack.c.bf16 %v879_v15, %v875_v11  ;;  %v1003_v23 = vcvt.s32.f32 %v747_v16  ;;  %v1007_v24 = vcvt.s32.f32 %v751_v17  ;;  %v611_v25 = vunpack.c.0.s8 %v535_v50 }
 0x12b   :  { %v1151_v26 = vpack.c.bf16 %v943_v19, %v939_v18  ;;  %v1067_v27 = vcvt.s32.f32 %v811_v20  ;;  %v1071_v28 = vcvt.s32.f32 %v815_v21  ;;  %v615_v29 = vunpack.c.1.s8 %v535_v50  ;;  %v544_v18 = vld [vmem:[#allocation2 + $0x68] sm:$0xff] }
 0x12c   :  { %1239 = vmatpush.bf16.msrb.mxu0 %v1119_v22  ;;  %v1183_v30 = vpack.c.bf16 %v1007_v24, %v1003_v23  ;;  %v867_v31 = vcvt.s32.f32 %v611_v25  ;;  %v675_v32 = vunpack.c.0.s8 %v551_v61  ;;  %v679_v33 = vunpack.c.1.s8 %v551_v61 }
 0x12d   :  { %1252 = vmatpush.bf16.msrb.mxu1 %v1151_v26  ;;  %v1215_v35 = vpack.c.bf16 %v1071_v28, %v1067_v27  ;;  %v871_v36 = vcvt.s32.f32 %v615_v29  ;;  %v739_v37 = vunpack.c.0.s8 %v567_v2  ;;  %v743_v7 = vunpack.c.1.s8 %v567_v2  ;;  %v560_v27 = vld [vmem:[#allocation2 + $0xe8] sm:$0xff] }
 0x12e   :  { %1265 = vmatpush.bf16.msrb.mxu2 %v1183_v30  ;;  %v931_v39 = vcvt.s32.f32 %v675_v32  ;;  %v935_v40 = vcvt.s32.f32 %v679_v33  ;;  %v803_v41 = vunpack.c.0.s8 %v583_v9  ;;  %v807_v42 = vunpack.c.1.s8 %v583_v9  ;;  %v576_v32 = vld [vmem:[#allocation2 + $0x168] sm:$0xff] }
 0x12f   :  { %1278 = vmatpush.bf16.msrb.mxu3 %v1215_v35  ;;  %v1115_v44 = vpack.c.bf16 %v871_v36, %v867_v31  ;;  %v995_v45 = vcvt.s32.f32 %v739_v37  ;;  %v999_v46 = vcvt.s32.f32 %v743_v7  ;;  %v603_v47 = vunpack.c.2.s8 %v531_v34  ;;  %v592_v37 = vld [vmem:[#allocation2 + $0x1e8] sm:$0xff] }
 0x130   :  { %v1147_v49 = vpack.c.bf16 %v935_v40, %v931_v39  ;;  %v1059_v50 = vcvt.s32.f32 %v803_v41  ;;  %v1063_v51 = vcvt.s32.f32 %v807_v42  ;;  %v607_v53 = vunpack.c.3.s8 %v531_v34 }
 0x131   :  { %1240 = vmatpush.bf16.msrb.mxu0 %v1115_v44  ;;  %v1179_v56 = vpack.c.bf16 %v999_v46, %v995_v45  ;;  %v859_v57 = vcvt.s32.f32 %v603_v47  ;;  %v667_v58 = vunpack.c.2.s8 %v547_v43  ;;  %v671_v59 = vunpack.c.3.s8 %v547_v43 }
 0x132   :  { %1253 = vmatpush.bf16.msrb.mxu1 %v1147_v49  ;;  %v1211_v60 = vpack.c.bf16 %v1063_v51, %v1059_v50  ;;  %v863_v61 = vcvt.s32.f32 %v607_v53  ;;  %v731_v62 = vunpack.c.2.s8 %v563_v48  ;;  %v735_v63 = vunpack.c.3.s8 %v563_v48 }
 0x133   :  { %1266 = vmatpush.bf16.msrb.mxu2 %v1179_v56  ;;  %v923_v0 = vcvt.s32.f32 %v667_v58  ;;  %v927_v1 = vcvt.s32.f32 %v671_v59  ;;  %v795_v2 = vunpack.c.2.s8 %v579_v54  ;;  %v799_v3 = vunpack.c.3.s8 %v579_v54 }
 0x134   :  { %1279 = vmatpush.bf16.msrb.mxu3 %v1211_v60  ;;  %v1111_v4 = vpack.c.bf16 %v863_v61, %v859_v57  ;;  %v987_v6 = vcvt.s32.f32 %v731_v62  ;;  %v991_v8 = vcvt.s32.f32 %v735_v63  ;;  %v595_v9 = vunpack.c.0.s8 %v531_v34 }
 0x135   :  { %v1143_v10 = vpack.c.bf16 %v927_v1, %v923_v0  ;;  %v1051_v11 = vcvt.s32.f32 %v795_v2  ;;  %v1055_v12 = vcvt.s32.f32 %v799_v3  ;;  %v599_v13 = vunpack.c.1.s8 %v531_v34  ;;  %v540_v0 = vld [vmem:[#allocation2 + $0x48] sm:$0xff] }
 0x136   :  { %1241 = vmatpush.bf16.msrb.mxu0 %v1111_v4  ;;  %v1175_v14 = vpack.c.bf16 %v991_v8, %v987_v6  ;;  %v851_v15 = vcvt.s32.f32 %v595_v9  ;;  %v659_v16 = vunpack.c.0.s8 %v547_v43  ;;  %v663_v17 = vunpack.c.1.s8 %v547_v43 }
 0x137   :  { %1254 = vmatpush.bf16.msrb.mxu1 %v1143_v10  ;;  %v1207_v19 = vpack.c.bf16 %v1055_v12, %v1051_v11  ;;  %v855_v20 = vcvt.s32.f32 %v599_v13  ;;  %v723_v21 = vunpack.c.0.s8 %v563_v48  ;;  %v727_v22 = vunpack.c.1.s8 %v563_v48  ;;  %v556_v11 = vld [vmem:[#allocation2 + $0xc8] sm:$0xff] }
 0x138   :  { %1267 = vmatpush.bf16.msrb.mxu2 %v1175_v14  ;;  %v915_v23 = vcvt.s32.f32 %v659_v16  ;;  %v919_v24 = vcvt.s32.f32 %v663_v17  ;;  %v787_v25 = vunpack.c.0.s8 %v579_v54  ;;  %v791_v26 = vunpack.c.1.s8 %v579_v54  ;;  %v572_v16 = vld [vmem:[#allocation2 + $0x148] sm:$0xff] }
 0x139   :  { %1280 = vmatpush.bf16.msrb.mxu3 %v1207_v19  ;;  %v1107_v28 = vpack.c.bf16 %v855_v20, %v851_v15  ;;  %v979_v29 = vcvt.s32.f32 %v723_v21  ;;  %v983_v30 = vcvt.s32.f32 %v727_v22  ;;  %v652_v31 = vunpack.c.2.s8 %v544_v18  ;;  %v588_v21 = vld [vmem:[#allocation2 + $0x1c8] sm:$0xff] }
 0x13a   :  { %v1139_v33 = vpack.c.bf16 %v919_v24, %v915_v23  ;;  %v1043_v34 = vcvt.s32.f32 %v787_v25  ;;  %v1047_v35 = vcvt.s32.f32 %v791_v26  ;;  %v656_v36 = vunpack.c.3.s8 %v544_v18 }
 0x13b   :  { %1242 = vmatpush.bf16.msrb.mxu0 %v1107_v28  ;;  %v1171_v7 = vpack.c.bf16 %v983_v30, %v979_v29  ;;  %v908_v39 = vcvt.s32.f32 %v652_v31  ;;  %v716_v40 = vunpack.c.2.s8 %v560_v27  ;;  %v720_v41 = vunpack.c.3.s8 %v560_v27 }
 0x13c   :  { %1255 = vmatpush.bf16.msrb.mxu1 %v1139_v33  ;;  %v1203_v42 = vpack.c.bf16 %v1047_v35, %v1043_v34  ;;  %v912_v43 = vcvt.s32.f32 %v656_v36  ;;  %v780_v44 = vunpack.c.2.s8 %v576_v32  ;;  %v784_v45 = vunpack.c.3.s8 %v576_v32 }
 0x13d   :  { %1268 = vmatpush.bf16.msrb.mxu2 %v1171_v7  ;;  %v972_v46 = vcvt.s32.f32 %v716_v40  ;;  %v976_v47 = vcvt.s32.f32 %v720_v41  ;;  %v844_v48 = vunpack.c.2.s8 %v592_v37  ;;  %v848_v49 = vunpack.c.3.s8 %v592_v37 }
 0x13e   :  { %1281 = vmatpush.bf16.msrb.mxu3 %v1203_v42  ;;  %v1136_v50 = vpack.c.bf16 %v912_v43, %v908_v39  ;;  %v1036_v51 = vcvt.s32.f32 %v780_v44  ;;  %v1040_v53 = vcvt.s32.f32 %v784_v45  ;;  %v644_v54 = vunpack.c.0.s8 %v544_v18  ;;  %1243 = vmatmul.bf16.vlgmr.msrb.gmra.mxu0 %v5014_v38 }
 0x13f   :  { %v1168_v56 = vpack.c.bf16 %v976_v47, %v972_v46  ;;  %v1100_v57 = vcvt.s32.f32 %v844_v48  ;;  %v1104_v58 = vcvt.s32.f32 %v848_v49  ;;  %v648_v59 = vunpack.c.1.s8 %v544_v18  ;;  %1256 = vmatmul.bf16.vlgmr.msrb.gmra.mxu1 %v5016_v52  ;;  %v536_v46 = vld [vmem:[#allocation2 + $0x28] sm:$0xff] }
 0x140   :  { %1287 = vmatpush.bf16.msra.mxu0 %v1136_v50  ;;  %v1200_v60 = vpack.c.bf16 %v1040_v53, %v1036_v51  ;;  %1269 = vmatmul.bf16.vlgmr.msrb.gmra.mxu2 %v5018_v55  ;;  %v900_v61 = vcvt.s32.f32 %v644_v54  ;;  %v708_v62 = vunpack.c.0.s8 %v560_v27  ;;  %v712_v63 = vunpack.c.1.s8 %v560_v27 }
 0x141   :  { %1300 = vmatpush.bf16.msra.mxu1 %v1168_v56  ;;  %v1232_v1 = vpack.c.bf16 %v1104_v58, %v1100_v57  ;;  %1282 = vmatmul.bf16.vlgmr.msrb.gmra.mxu3 %v5020_v5  ;;  %v904_v2 = vcvt.s32.f32 %v648_v59  ;;  %v772_v3 = vunpack.c.0.s8 %v576_v32  ;;  %v776_v4 = vunpack.c.1.s8 %v576_v32  ;;  %v552_v57 = vld [vmem:[#allocation2 + $0xa8] sm:$0xff] }
 0x142   :  { %1313 = vmatpush.bf16.msra.mxu2 %v1200_v60  ;;  %v964_v6 = vcvt.s32.f32 %v708_v62  ;;  %v968_v8 = vcvt.s32.f32 %v712_v63  ;;  %v836_v9 = vunpack.c.0.s8 %v592_v37  ;;  %v840_v10 = vunpack.c.1.s8 %v592_v37  ;;  %v568_v62 = vld [vmem:[#allocation2 + $0x128] sm:$0xff] }
 0x143   :  { %1326 = vmatpush.bf16.msra.mxu3 %v1232_v1  ;;  %v1132_v12 = vpack.c.bf16 %v904_v2, %v900_v61  ;;  %v1028_v13 = vcvt.s32.f32 %v772_v3  ;;  %v1032_v14 = vcvt.s32.f32 %v776_v4  ;;  %v636_v15 = vunpack.c.2.s8 %v540_v0  ;;  %v584_v3 = vld [vmem:[#allocation2 + $0x1a8] sm:$0xff] }
 0x144   :  { %v1164_v17 = vpack.c.bf16 %v968_v8, %v964_v6  ;;  %v1092_v18 = vcvt.s32.f32 %v836_v9  ;;  %v1096_v19 = vcvt.s32.f32 %v840_v10  ;;  %v640_v20 = vunpack.c.3.s8 %v540_v0 }
 0x145   :  { %1288 = vmatpush.bf16.msra.mxu0 %v1132_v12  ;;  %v1196_v22 = vpack.c.bf16 %v1032_v14, %v1028_v13  ;;  %v892_v23 = vcvt.s32.f32 %v636_v15  ;;  %v700_v24 = vunpack.c.2.s8 %v556_v11  ;;  %v704_v25 = vunpack.c.3.s8 %v556_v11 }
 0x146   :  { %1301 = vmatpush.bf16.msra.mxu1 %v1164_v17  ;;  %v1228_v26 = vpack.c.bf16 %v1096_v19, %v1092_v18  ;;  %v896_v27 = vcvt.s32.f32 %v640_v20  ;;  %v764_v28 = vunpack.c.2.s8 %v572_v16  ;;  %v768_v29 = vunpack.c.3.s8 %v572_v16 }
 0x147   :  { %1314 = vmatpush.bf16.msra.mxu2 %v1196_v22  ;;  %v956_v30 = vcvt.s32.f32 %v700_v24  ;;  %v960_v31 = vcvt.s32.f32 %v704_v25  ;;  %v828_v32 = vunpack.c.2.s8 %v588_v21  ;;  %v832_v33 = vunpack.c.3.s8 %v588_v21 }
 0x148   :  { %1327 = vmatpush.bf16.msra.mxu3 %v1228_v26  ;;  %v1128_v34 = vpack.c.bf16 %v896_v27, %v892_v23  ;;  %v1020_v35 = vcvt.s32.f32 %v764_v28  ;;  %v1024_v36 = vcvt.s32.f32 %v768_v29  ;;  %v628_v37 = vunpack.c.0.s8 %v540_v0 }
 0x149   :  { %v1160_v7 = vpack.c.bf16 %v960_v31, %v956_v30  ;;  %v1084_v39 = vcvt.s32.f32 %v828_v32  ;;  %v1088_v40 = vcvt.s32.f32 %v832_v33  ;;  %v632_v41 = vunpack.c.1.s8 %v540_v0  ;;  %v532_v30 = vld [vmem:[#allocation2 + $0x8] sm:$0xff] }
 0x14a   :  { %1289 = vmatpush.bf16.msra.mxu0 %v1128_v34  ;;  %v1192_v42 = vpack.c.bf16 %v1024_v36, %v1020_v35  ;;  %v884_v43 = vcvt.s32.f32 %v628_v37  ;;  %v692_v44 = vunpack.c.0.s8 %v556_v11  ;;  %v696_v45 = vunpack.c.1.s8 %v556_v11 }
 0x14b   :  { %1302 = vmatpush.bf16.msra.mxu1 %v1160_v7  ;;  %v1224_v47 = vpack.c.bf16 %v1088_v40, %v1084_v39  ;;  %v888_v48 = vcvt.s32.f32 %v632_v41  ;;  %v756_v49 = vunpack.c.0.s8 %v572_v16  ;;  %v760_v50 = vunpack.c.1.s8 %v572_v16  ;;  %v548_v39 = vld [vmem:[#allocation2 + $0x88] sm:$0xff] }
 0x14c   :  { %1315 = vmatpush.bf16.msra.mxu2 %v1192_v42  ;;  %v948_v51 = vcvt.s32.f32 %v692_v44  ;;  %v952_v53 = vcvt.s32.f32 %v696_v45  ;;  %v820_v54 = vunpack.c.0.s8 %v588_v21  ;;  %v824_v56 = vunpack.c.1.s8 %v588_v21  ;;  %v564_v44 = vld [vmem:[#allocation2 + $0x108] sm:$0xff] }
 0x14d   :  { %1328 = vmatpush.bf16.msra.mxu3 %v1224_v47  ;;  %v1124_v58 = vpack.c.bf16 %v888_v48, %v884_v43  ;;  %v1012_v59 = vcvt.s32.f32 %v756_v49  ;;  %v1016_v60 = vcvt.s32.f32 %v760_v50  ;;  %v620_v61 = vunpack.c.2.s8 %v536_v46  ;;  %v580_v49 = vld [vmem:[#allocation2 + $0x188] sm:$0xff] }
 0x14e   :  { %v1156_v63 = vpack.c.bf16 %v952_v53, %v948_v51  ;;  %v1076_v0 = vcvt.s32.f32 %v820_v54  ;;  %v1080_v1 = vcvt.s32.f32 %v824_v56  ;;  %v624_v2 = vunpack.c.3.s8 %v536_v46 }
 0x14f   :  { %1290 = vmatpush.bf16.msra.mxu0 %v1124_v58  ;;  %v1188_v4 = vpack.c.bf16 %v1016_v60, %v1012_v59  ;;  %v876_v6 = vcvt.s32.f32 %v620_v61  ;;  %v684_v8 = vunpack.c.2.s8 %v552_v57  ;;  %v688_v9 = vunpack.c.3.s8 %v552_v57 }
 0x150   :  { %1303 = vmatpush.bf16.msra.mxu1 %v1156_v63  ;;  %v1220_v10 = vpack.c.bf16 %v1080_v1, %v1076_v0  ;;  %v880_v11 = vcvt.s32.f32 %v624_v2  ;;  %v748_v12 = vunpack.c.2.s8 %v568_v62  ;;  %v752_v13 = vunpack.c.3.s8 %v568_v62 }
 0x151   :  { %1316 = vmatpush.bf16.msra.mxu2 %v1188_v4  ;;  %v940_v14 = vcvt.s32.f32 %v684_v8  ;;  %v944_v15 = vcvt.s32.f32 %v688_v9  ;;  %v812_v16 = vunpack.c.2.s8 %v584_v3  ;;  %v816_v17 = vunpack.c.3.s8 %v584_v3 }
 0x152   :  { %1329 = vmatpush.bf16.msra.mxu3 %v1220_v10  ;;  %v1120_v18 = vpack.c.bf16 %v880_v11, %v876_v6  ;;  %v1004_v19 = vcvt.s32.f32 %v748_v12  ;;  %v1008_v20 = vcvt.s32.f32 %v752_v13  ;;  %v612_v21 = vunpack.c.0.s8 %v536_v46 }
 0x153   :  { %v1152_v22 = vpack.c.bf16 %v944_v15, %v940_v14  ;;  %v1068_v23 = vcvt.s32.f32 %v812_v16  ;;  %v1072_v24 = vcvt.s32.f32 %v816_v17  ;;  %v616_v25 = vunpack.c.1.s8 %v536_v46  ;;  %v545_v14 = vld [vmem:[#allocation2 + $0x70] sm:$0xff] }
 0x154   :  { %1291 = vmatpush.bf16.msra.mxu0 %v1120_v18  ;;  %v1184_v26 = vpack.c.bf16 %v1008_v20, %v1004_v19  ;;  %v868_v27 = vcvt.s32.f32 %v612_v21  ;;  %v676_v28 = vunpack.c.0.s8 %v552_v57  ;;  %v680_v29 = vunpack.c.1.s8 %v552_v57 }
 0x155   :  { %1304 = vmatpush.bf16.msra.mxu1 %v1152_v22  ;;  %v1216_v31 = vpack.c.bf16 %v1072_v24, %v1068_v23  ;;  %v872_v32 = vcvt.s32.f32 %v616_v25  ;;  %v740_v33 = vunpack.c.0.s8 %v568_v62  ;;  %v744_v34 = vunpack.c.1.s8 %v568_v62  ;;  %v561_v23 = vld [vmem:[#allocation2 + $0xf0] sm:$0xff] }
 0x156   :  { %1317 = vmatpush.bf16.msra.mxu2 %v1184_v26  ;;  %v932_v35 = vcvt.s32.f32 %v676_v28  ;;  %v936_v36 = vcvt.s32.f32 %v680_v29  ;;  %v804_v37 = vunpack.c.0.s8 %v584_v3  ;;  %v808_v7 = vunpack.c.1.s8 %v584_v3  ;;  %v577_v28 = vld [vmem:[#allocation2 + $0x170] sm:$0xff] }
 0x157   :  { %1330 = vmatpush.bf16.msra.mxu3 %v1216_v31  ;;  %v1116_v40 = vpack.c.bf16 %v872_v32, %v868_v27  ;;  %v996_v41 = vcvt.s32.f32 %v740_v33  ;;  %v1000_v42 = vcvt.s32.f32 %v744_v34  ;;  %v604_v43 = vunpack.c.2.s8 %v532_v30  ;;  %v593_v33 = vld [vmem:[#allocation2 + $0x1f0] sm:$0xff] }
 0x158   :  { %v1148_v45 = vpack.c.bf16 %v936_v36, %v932_v35  ;;  %v1060_v46 = vcvt.s32.f32 %v804_v37  ;;  %v1064_v47 = vcvt.s32.f32 %v808_v7  ;;  %v608_v48 = vunpack.c.3.s8 %v532_v30 }
 0x159   :  { %1292 = vmatpush.bf16.msra.mxu0 %v1116_v40  ;;  %v1180_v50 = vpack.c.bf16 %v1000_v42, %v996_v41  ;;  %v860_v51 = vcvt.s32.f32 %v604_v43  ;;  %v668_v53 = vunpack.c.2.s8 %v548_v39  ;;  %v672_v54 = vunpack.c.3.s8 %v548_v39 }
 0x15a   :  { %1305 = vmatpush.bf16.msra.mxu1 %v1148_v45  ;;  %v1212_v56 = vpack.c.bf16 %v1064_v47, %v1060_v46  ;;  %v864_v57 = vcvt.s32.f32 %v608_v48  ;;  %v732_v58 = vunpack.c.2.s8 %v564_v44  ;;  %v736_v59 = vunpack.c.3.s8 %v564_v44 }
 0x15b   :  { %1318 = vmatpush.bf16.msra.mxu2 %v1180_v50  ;;  %v924_v60 = vcvt.s32.f32 %v668_v53  ;;  %v928_v61 = vcvt.s32.f32 %v672_v54  ;;  %v796_v62 = vunpack.c.2.s8 %v580_v49  ;;  %v800_v63 = vunpack.c.3.s8 %v580_v49 }
 0x15c   :  { %1331 = vmatpush.bf16.msra.mxu3 %v1212_v56  ;;  %v1112_v0 = vpack.c.bf16 %v864_v57, %v860_v51  ;;  %v988_v1 = vcvt.s32.f32 %v732_v58  ;;  %v992_v2 = vcvt.s32.f32 %v736_v59  ;;  %v596_v3 = vunpack.c.0.s8 %v532_v30 }
 0x15d   :  { %v1144_v4 = vpack.c.bf16 %v928_v61, %v924_v60  ;;  %v1052_v6 = vcvt.s32.f32 %v796_v62  ;;  %v1056_v8 = vcvt.s32.f32 %v800_v63  ;;  %v600_v9 = vunpack.c.1.s8 %v532_v30  ;;  %v541_v60 = vld [vmem:[#allocation2 + $0x50] sm:$0xff] }
 0x15e   :  { %1293 = vmatpush.bf16.msra.mxu0 %v1112_v0  ;;  %v1176_v10 = vpack.c.bf16 %v992_v2, %v988_v1  ;;  %v852_v11 = vcvt.s32.f32 %v596_v3  ;;  %v660_v12 = vunpack.c.0.s8 %v548_v39  ;;  %v664_v13 = vunpack.c.1.s8 %v548_v39 }
 0x15f   :  { %1306 = vmatpush.bf16.msra.mxu1 %v1144_v4  ;;  %v1208_v15 = vpack.c.bf16 %v1056_v8, %v1052_v6  ;;  %v856_v16 = vcvt.s32.f32 %v600_v9  ;;  %v724_v17 = vunpack.c.0.s8 %v564_v44  ;;  %v728_v18 = vunpack.c.1.s8 %v564_v44  ;;  %v557_v6 = vld [vmem:[#allocation2 + $0xd0] sm:$0xff] }
 0x160   :  { %1319 = vmatpush.bf16.msra.mxu2 %v1176_v10  ;;  %v916_v19 = vcvt.s32.f32 %v660_v12  ;;  %v920_v20 = vcvt.s32.f32 %v664_v13  ;;  %v788_v21 = vunpack.c.0.s8 %v580_v49  ;;  %v792_v22 = vunpack.c.1.s8 %v580_v49  ;;  %v573_v12 = vld [vmem:[#allocation2 + $0x150] sm:$0xff] }
 0x161   :  { %1332 = vmatpush.bf16.msra.mxu3 %v1208_v15  ;;  %v1108_v24 = vpack.c.bf16 %v856_v16, %v852_v11  ;;  %v980_v25 = vcvt.s32.f32 %v724_v17  ;;  %v984_v26 = vcvt.s32.f32 %v728_v18  ;;  %v653_v27 = vunpack.c.2.s8 %v545_v14  ;;  %v589_v17 = vld [vmem:[#allocation2 + $0x1d0] sm:$0xff] }
 0x162   :  { %v1140_v29 = vpack.c.bf16 %v920_v20, %v916_v19  ;;  %v1044_v30 = vcvt.s32.f32 %v788_v21  ;;  %v1048_v31 = vcvt.s32.f32 %v792_v22  ;;  %v657_v32 = vunpack.c.3.s8 %v545_v14 }
 0x163   :  { %1294 = vmatpush.bf16.msra.mxu0 %v1108_v24  ;;  %v1172_v34 = vpack.c.bf16 %v984_v26, %v980_v25  ;;  %v909_v35 = vcvt.s32.f32 %v653_v27  ;;  %v717_v36 = vunpack.c.2.s8 %v561_v23  ;;  %v721_v37 = vunpack.c.3.s8 %v561_v23 }
 0x164   :  { %1307 = vmatpush.bf16.msra.mxu1 %v1140_v29  ;;  %v1204_v7 = vpack.c.bf16 %v1048_v31, %v1044_v30  ;;  %v913_v39 = vcvt.s32.f32 %v657_v32  ;;  %v781_v40 = vunpack.c.2.s8 %v577_v28  ;;  %v785_v41 = vunpack.c.3.s8 %v577_v28 }
 0x165   :  { %1320 = vmatpush.bf16.msra.mxu2 %v1172_v34  ;;  %v973_v42 = vcvt.s32.f32 %v717_v36  ;;  %v977_v43 = vcvt.s32.f32 %v721_v37  ;;  %v845_v44 = vunpack.c.2.s8 %v593_v33  ;;  %v849_v45 = vunpack.c.3.s8 %v593_v33 }
 0x166   :  { %1333 = vmatpush.bf16.msra.mxu3 %v1204_v7  ;;  %v1137_v46 = vpack.c.bf16 %v913_v39, %v909_v35  ;;  %v1037_v47 = vcvt.s32.f32 %v781_v40  ;;  %v1041_v48 = vcvt.s32.f32 %v785_v41  ;;  %v645_v49 = vunpack.c.0.s8 %v545_v14  ;;  %1295 = vmatmul.bf16.vlgmr.msra.gmra.mxu0 %v5014_v38 }
 0x167   :  { %v1169_v50 = vpack.c.bf16 %v977_v43, %v973_v42  ;;  %v1101_v51 = vcvt.s32.f32 %v845_v44  ;;  %v1105_v53 = vcvt.s32.f32 %v849_v45  ;;  %v649_v54 = vunpack.c.1.s8 %v545_v14  ;;  %1308 = vmatmul.bf16.vlgmr.msra.gmra.mxu1 %v5016_v52  ;;  %v537_v42 = vld [vmem:[#allocation2 + $0x30] sm:$0xff] }
 0x168   :  { %1339 = vmatpush.bf16.msrb.mxu0 %v1137_v46  ;;  %v1201_v56 = vpack.c.bf16 %v1041_v48, %v1037_v47  ;;  %1321 = vmatmul.bf16.vlgmr.msra.gmra.mxu2 %v5018_v55  ;;  %v901_v57 = vcvt.s32.f32 %v645_v49  ;;  %v709_v58 = vunpack.c.0.s8 %v561_v23  ;;  %v713_v59 = vunpack.c.1.s8 %v561_v23 }
 0x169   :  { %1352 = vmatpush.bf16.msrb.mxu1 %v1169_v50  ;;  %v1233_v61 = vpack.c.bf16 %v1105_v53, %v1101_v51  ;;  %1334 = vmatmul.bf16.vlgmr.msra.gmra.mxu3 %v5020_v5  ;;  %v905_v62 = vcvt.s32.f32 %v649_v54  ;;  %v773_v63 = vunpack.c.0.s8 %v577_v28  ;;  %v777_v0 = vunpack.c.1.s8 %v577_v28  ;;  %v553_v51 = vld [vmem:[#allocation2 + $0xb0] sm:$0xff] }
 0x16a   :  { %1365 = vmatpush.bf16.msrb.mxu2 %v1201_v56  ;;  %v965_v1 = vcvt.s32.f32 %v709_v58  ;;  %v969_v2 = vcvt.s32.f32 %v713_v59  ;;  %v837_v3 = vunpack.c.0.s8 %v593_v33  ;;  %v841_v4 = vunpack.c.1.s8 %v593_v33  ;;  %v569_v58 = vld [vmem:[#allocation2 + $0x130] sm:$0xff] }
 0x16b   :  { %1378 = vmatpush.bf16.msrb.mxu3 %v1233_v61  ;;  %v1133_v8 = vpack.c.bf16 %v905_v62, %v901_v57  ;;  %v1029_v9 = vcvt.s32.f32 %v773_v63  ;;  %v1033_v10 = vcvt.s32.f32 %v777_v0  ;;  %v637_v11 = vunpack.c.2.s8 %v541_v60  ;;  %v585_v63 = vld [vmem:[#allocation2 + $0x1b0] sm:$0xff] }
 0x16c   :  { %v1165_v13 = vpack.c.bf16 %v969_v2, %v965_v1  ;;  %v1093_v14 = vcvt.s32.f32 %v837_v3  ;;  %v1097_v15 = vcvt.s32.f32 %v841_v4  ;;  %v641_v16 = vunpack.c.3.s8 %v541_v60 }
 0x16d   :  { %1340 = vmatpush.bf16.msrb.mxu0 %v1133_v8  ;;  %v1197_v18 = vpack.c.bf16 %v1033_v10, %v1029_v9  ;;  %v893_v19 = vcvt.s32.f32 %v637_v11  ;;  %v701_v20 = vunpack.c.2.s8 %v557_v6  ;;  %v705_v21 = vunpack.c.3.s8 %v557_v6 }
 0x16e   :  { %1353 = vmatpush.bf16.msrb.mxu1 %v1165_v13  ;;  %v1229_v22 = vpack.c.bf16 %v1097_v15, %v1093_v14  ;;  %v897_v23 = vcvt.s32.f32 %v641_v16  ;;  %v765_v24 = vunpack.c.2.s8 %v573_v12  ;;  %v769_v25 = vunpack.c.3.s8 %v573_v12 }
 0x16f   :  { %1366 = vmatpush.bf16.msrb.mxu2 %v1197_v18  ;;  %v957_v26 = vcvt.s32.f32 %v701_v20  ;;  %v961_v27 = vcvt.s32.f32 %v705_v21  ;;  %v829_v28 = vunpack.c.2.s8 %v589_v17  ;;  %v833_v29 = vunpack.c.3.s8 %v589_v17 }
 0x170   :  { %1379 = vmatpush.bf16.msrb.mxu3 %v1229_v22  ;;  %v1129_v30 = vpack.c.bf16 %v897_v23, %v893_v19  ;;  %v1021_v31 = vcvt.s32.f32 %v765_v24  ;;  %v1025_v32 = vcvt.s32.f32 %v769_v25  ;;  %v629_v33 = vunpack.c.0.s8 %v541_v60 }
 0x171   :  { %v1161_v34 = vpack.c.bf16 %v961_v27, %v957_v26  ;;  %v1085_v35 = vcvt.s32.f32 %v829_v28  ;;  %v1089_v36 = vcvt.s32.f32 %v833_v29  ;;  %v633_v37 = vunpack.c.1.s8 %v541_v60  ;;  %v533_v26 = vld [vmem:[#allocation2 + $0x10] sm:$0xff] }
 0x172   :  { %1341 = vmatpush.bf16.msrb.mxu0 %v1129_v30  ;;  %v1193_v7 = vpack.c.bf16 %v1025_v32, %v1021_v31  ;;  %v885_v39 = vcvt.s32.f32 %v629_v33  ;;  %v693_v40 = vunpack.c.0.s8 %v557_v6  ;;  %v697_v41 = vunpack.c.1.s8 %v557_v6 }
 0x173   :  { %1354 = vmatpush.bf16.msrb.mxu1 %v1161_v34  ;;  %v1225_v43 = vpack.c.bf16 %v1089_v36, %v1085_v35  ;;  %v889_v44 = vcvt.s32.f32 %v633_v37  ;;  %v757_v45 = vunpack.c.0.s8 %v573_v12  ;;  %v761_v46 = vunpack.c.1.s8 %v573_v12  ;;  %v549_v35 = vld [vmem:[#allocation2 + $0x90] sm:$0xff] }
 0x174   :  { %1367 = vmatpush.bf16.msrb.mxu2 %v1193_v7  ;;  %v949_v47 = vcvt.s32.f32 %v693_v40  ;;  %v953_v48 = vcvt.s32.f32 %v697_v41  ;;  %v821_v49 = vunpack.c.0.s8 %v589_v17  ;;  %v825_v50 = vunpack.c.1.s8 %v589_v17  ;;  %v565_v40 = vld [vmem:[#allocation2 + $0x110] sm:$0xff] }
 0x175   :  { %1380 = vmatpush.bf16.msrb.mxu3 %v1225_v43  ;;  %v1125_v53 = vpack.c.bf16 %v889_v44, %v885_v39  ;;  %v1013_v54 = vcvt.s32.f32 %v757_v45  ;;  %v1017_v56 = vcvt.s32.f32 %v761_v46  ;;  %v621_v57 = vunpack.c.2.s8 %v537_v42  ;;  %v581_v45 = vld [vmem:[#allocation2 + $0x190] sm:$0xff] }
 0x176   :  { %v1157_v59 = vpack.c.bf16 %v953_v48, %v949_v47  ;;  %v1077_v60 = vcvt.s32.f32 %v821_v49  ;;  %v1081_v61 = vcvt.s32.f32 %v825_v50  ;;  %v625_v62 = vunpack.c.3.s8 %v537_v42 }
 0x177   :  { %1342 = vmatpush.bf16.msrb.mxu0 %v1125_v53  ;;  %v1189_v0 = vpack.c.bf16 %v1017_v56, %v1013_v54  ;;  %v877_v1 = vcvt.s32.f32 %v621_v57  ;;  %v685_v2 = vunpack.c.2.s8 %v553_v51  ;;  %v689_v3 = vunpack.c.3.s8 %v553_v51 }
 0x178   :  { %1355 = vmatpush.bf16.msrb.mxu1 %v1157_v59  ;;  %v1221_v4 = vpack.c.bf16 %v1081_v61, %v1077_v60  ;;  %v881_v6 = vcvt.s32.f32 %v625_v62  ;;  %v749_v8 = vunpack.c.2.s8 %v569_v58  ;;  %v753_v9 = vunpack.c.3.s8 %v569_v58 }
 0x179   :  { %1368 = vmatpush.bf16.msrb.mxu2 %v1189_v0  ;;  %v941_v10 = vcvt.s32.f32 %v685_v2  ;;  %v945_v11 = vcvt.s32.f32 %v689_v3  ;;  %v813_v12 = vunpack.c.2.s8 %v585_v63  ;;  %v817_v13 = vunpack.c.3.s8 %v585_v63 }
 0x17a   :  { %1381 = vmatpush.bf16.msrb.mxu3 %v1221_v4  ;;  %v1121_v14 = vpack.c.bf16 %v881_v6, %v877_v1  ;;  %v1005_v15 = vcvt.s32.f32 %v749_v8  ;;  %v1009_v16 = vcvt.s32.f32 %v753_v9  ;;  %v613_v17 = vunpack.c.0.s8 %v537_v42 }
 0x17b   :  { %v1153_v18 = vpack.c.bf16 %v945_v11, %v941_v10  ;;  %v1069_v19 = vcvt.s32.f32 %v813_v12  ;;  %v1073_v20 = vcvt.s32.f32 %v817_v13  ;;  %v617_v21 = vunpack.c.1.s8 %v537_v42  ;;  %v546_v10 = vld [vmem:[#allocation2 + $0x78] sm:$0xff] }
 0x17c   :  { %1343 = vmatpush.bf16.msrb.mxu0 %v1121_v14  ;;  %v1185_v22 = vpack.c.bf16 %v1009_v16, %v1005_v15  ;;  %v869_v23 = vcvt.s32.f32 %v613_v17  ;;  %v677_v24 = vunpack.c.0.s8 %v553_v51  ;;  %v681_v25 = vunpack.c.1.s8 %v553_v51 }
 0x17d   :  { %1356 = vmatpush.bf16.msrb.mxu1 %v1153_v18  ;;  %v1217_v27 = vpack.c.bf16 %v1073_v20, %v1069_v19  ;;  %v873_v28 = vcvt.s32.f32 %v617_v21  ;;  %v741_v29 = vunpack.c.0.s8 %v569_v58  ;;  %v745_v30 = vunpack.c.1.s8 %v569_v58  ;;  %v562_v19 = vld [vmem:[#allocation2 + $0xf8] sm:$0xff] }
 0x17e   :  { %1369 = vmatpush.bf16.msrb.mxu2 %v1185_v22  ;;  %v933_v31 = vcvt.s32.f32 %v677_v24  ;;  %v937_v32 = vcvt.s32.f32 %v681_v25  ;;  %v805_v33 = vunpack.c.0.s8 %v585_v63  ;;  %v809_v34 = vunpack.c.1.s8 %v585_v63  ;;  %v578_v24 = vld [vmem:[#allocation2 + $0x178] sm:$0xff] }
 0x17f   :  { %1382 = vmatpush.bf16.msrb.mxu3 %v1217_v27  ;;  %v1117_v36 = vpack.c.bf16 %v873_v28, %v869_v23  ;;  %v997_v37 = vcvt.s32.f32 %v741_v29  ;;  %v1001_v7 = vcvt.s32.f32 %v745_v30  ;;  %v605_v39 = vunpack.c.2.s8 %v533_v26  ;;  %v594_v29 = vld [vmem:[#allocation2 + $0x1f8] sm:$0xff] }
 0x180   :  { %v1149_v41 = vpack.c.bf16 %v937_v32, %v933_v31  ;;  %v1061_v42 = vcvt.s32.f32 %v805_v33  ;;  %v1065_v43 = vcvt.s32.f32 %v809_v34  ;;  %v609_v44 = vunpack.c.3.s8 %v533_v26 }
 0x181   :  { %1344 = vmatpush.bf16.msrb.mxu0 %v1117_v36  ;;  %v1181_v46 = vpack.c.bf16 %v1001_v7, %v997_v37  ;;  %v861_v47 = vcvt.s32.f32 %v605_v39  ;;  %v669_v48 = vunpack.c.2.s8 %v549_v35  ;;  %v673_v49 = vunpack.c.3.s8 %v549_v35 }
 0x182   :  { %1357 = vmatpush.bf16.msrb.mxu1 %v1149_v41  ;;  %v1213_v50 = vpack.c.bf16 %v1065_v43, %v1061_v42  ;;  %v865_v51 = vcvt.s32.f32 %v609_v44  ;;  %v733_v53 = vunpack.c.2.s8 %v565_v40  ;;  %v737_v54 = vunpack.c.3.s8 %v565_v40 }
 0x183   :  { %1370 = vmatpush.bf16.msrb.mxu2 %v1181_v46  ;;  %v925_v56 = vcvt.s32.f32 %v669_v48  ;;  %v929_v57 = vcvt.s32.f32 %v673_v49  ;;  %v797_v58 = vunpack.c.2.s8 %v581_v45  ;;  %v801_v59 = vunpack.c.3.s8 %v581_v45 }
 0x184   :  { %1383 = vmatpush.bf16.msrb.mxu3 %v1213_v50  ;;  %v1113_v60 = vpack.c.bf16 %v865_v51, %v861_v47  ;;  %v989_v61 = vcvt.s32.f32 %v733_v53  ;;  %v993_v62 = vcvt.s32.f32 %v737_v54  ;;  %v597_v63 = vunpack.c.0.s8 %v533_v26 }
 0x185   :  { %v1145_v0 = vpack.c.bf16 %v929_v57, %v925_v56  ;;  %v1053_v1 = vcvt.s32.f32 %v797_v58  ;;  %v1057_v2 = vcvt.s32.f32 %v801_v59  ;;  %v601_v3 = vunpack.c.1.s8 %v533_v26  ;;  %v542_v56 = vld [vmem:[#allocation2 + $0x58] sm:$0xff] }
 0x186   :  { %1345 = vmatpush.bf16.msrb.mxu0 %v1113_v60  ;;  %v1177_v4 = vpack.c.bf16 %v993_v62, %v989_v61  ;;  %v853_v6 = vcvt.s32.f32 %v597_v63  ;;  %v661_v8 = vunpack.c.0.s8 %v549_v35  ;;  %v665_v9 = vunpack.c.1.s8 %v549_v35 }
 0x187   :  { %1358 = vmatpush.bf16.msrb.mxu1 %v1145_v0  ;;  %v1209_v11 = vpack.c.bf16 %v1057_v2, %v1053_v1  ;;  %v857_v12 = vcvt.s32.f32 %v601_v3  ;;  %v725_v13 = vunpack.c.0.s8 %v565_v40  ;;  %v729_v14 = vunpack.c.1.s8 %v565_v40  ;;  %v558_v1 = vld [vmem:[#allocation2 + $0xd8] sm:$0xff] }
 0x188   :  { %1371 = vmatpush.bf16.msrb.mxu2 %v1177_v4  ;;  %v917_v15 = vcvt.s32.f32 %v661_v8  ;;  %v921_v16 = vcvt.s32.f32 %v665_v9  ;;  %v789_v17 = vunpack.c.0.s8 %v581_v45  ;;  %v793_v18 = vunpack.c.1.s8 %v581_v45  ;;  %v574_v8 = vld [vmem:[#allocation2 + $0x158] sm:$0xff] }
 0x189   :  { %1384 = vmatpush.bf16.msrb.mxu3 %v1209_v11  ;;  %v1109_v20 = vpack.c.bf16 %v857_v12, %v853_v6  ;;  %v981_v21 = vcvt.s32.f32 %v725_v13  ;;  %v985_v22 = vcvt.s32.f32 %v729_v14  ;;  %v654_v23 = vunpack.c.2.s8 %v546_v10  ;;  %v590_v13 = vld [vmem:[#allocation2 + $0x1d8] sm:$0xff] }
 0x18a   :  { %v1141_v25 = vpack.c.bf16 %v921_v16, %v917_v15  ;;  %v1045_v26 = vcvt.s32.f32 %v789_v17  ;;  %v1049_v27 = vcvt.s32.f32 %v793_v18  ;;  %v658_v28 = vunpack.c.3.s8 %v546_v10 }
 0x18b   :  { %1346 = vmatpush.bf16.msrb.mxu0 %v1109_v20  ;;  %v1173_v30 = vpack.c.bf16 %v985_v22, %v981_v21  ;;  %v910_v31 = vcvt.s32.f32 %v654_v23  ;;  %v718_v32 = vunpack.c.2.s8 %v562_v19  ;;  %v722_v33 = vunpack.c.3.s8 %v562_v19 }
 0x18c   :  { %1359 = vmatpush.bf16.msrb.mxu1 %v1141_v25  ;;  %v1205_v34 = vpack.c.bf16 %v1049_v27, %v1045_v26  ;;  %v914_v35 = vcvt.s32.f32 %v658_v28  ;;  %v782_v36 = vunpack.c.2.s8 %v578_v24  ;;  %v786_v37 = vunpack.c.3.s8 %v578_v24 }
 0x18d   :  { %1372 = vmatpush.bf16.msrb.mxu2 %v1173_v30  ;;  %v974_v7 = vcvt.s32.f32 %v718_v32  ;;  %v978_v39 = vcvt.s32.f32 %v722_v33  ;;  %v846_v40 = vunpack.c.2.s8 %v594_v29  ;;  %v850_v41 = vunpack.c.3.s8 %v594_v29 }
 0x18e   :  { %1385 = vmatpush.bf16.msrb.mxu3 %v1205_v34  ;;  %v1138_v42 = vpack.c.bf16 %v914_v35, %v910_v31  ;;  %v1038_v43 = vcvt.s32.f32 %v782_v36  ;;  %v1042_v44 = vcvt.s32.f32 %v786_v37  ;;  %v646_v45 = vunpack.c.0.s8 %v546_v10  ;;  %1347 = vmatmul.bf16.vlgmr.msrb.gmra.mxu0 %v5014_v38 }
 0x18f   :  { %v1170_v46 = vpack.c.bf16 %v978_v39, %v974_v7  ;;  %v1102_v47 = vcvt.s32.f32 %v846_v40  ;;  %v1106_v48 = vcvt.s32.f32 %v850_v41  ;;  %v650_v49 = vunpack.c.1.s8 %v546_v10  ;;  %1360 = vmatmul.bf16.vlgmr.msrb.gmra.mxu1 %v5016_v52  ;;  %v538_v7 = vld [vmem:[#allocation2 + $0x38] sm:$0xff] }
 0x190   :  { %1391 = vmatpush.bf16.msra.mxu0 %v1138_v42  ;;  %v1202_v50 = vpack.c.bf16 %v1042_v44, %v1038_v43  ;;  %1373 = vmatmul.bf16.vlgmr.msrb.gmra.mxu2 %v5018_v55  ;;  %v902_v51 = vcvt.s32.f32 %v646_v45  ;;  %v710_v53 = vunpack.c.0.s8 %v562_v19  ;;  %v714_v54 = vunpack.c.1.s8 %v562_v19 }
 0x191   :  { %1404 = vmatpush.bf16.msra.mxu1 %v1170_v46  ;;  %v1234_v57 = vpack.c.bf16 %v1106_v48, %v1102_v47  ;;  %1386 = vmatmul.bf16.vlgmr.msrb.gmra.mxu3 %v5020_v5  ;;  %v906_v58 = vcvt.s32.f32 %v650_v49  ;;  %v774_v59 = vunpack.c.0.s8 %v578_v24  ;;  %v778_v60 = vunpack.c.1.s8 %v578_v24  ;;  %v554_v47 = vld [vmem:[#allocation2 + $0xb8] sm:$0xff] }
 0x192   :  { %1417 = vmatpush.bf16.msra.mxu2 %v1202_v50  ;;  %v966_v61 = vcvt.s32.f32 %v710_v53  ;;  %v970_v62 = vcvt.s32.f32 %v714_v54  ;;  %v838_v63 = vunpack.c.0.s8 %v594_v29  ;;  %v842_v0 = vunpack.c.1.s8 %v594_v29  ;;  %v570_v53 = vld [vmem:[#allocation2 + $0x138] sm:$0xff] }
 0x193   :  { %1430 = vmatpush.bf16.msra.mxu3 %v1234_v57  ;;  %v1134_v2 = vpack.c.bf16 %v906_v58, %v902_v51  ;;  %v1030_v3 = vcvt.s32.f32 %v774_v59  ;;  %v1034_v4 = vcvt.s32.f32 %v778_v60  ;;  %v638_v6 = vunpack.c.2.s8 %v542_v56  ;;  %v586_v59 = vld [vmem:[#allocation2 + $0x1b8] sm:$0xff] }
 0x194   :  { %v1166_v9 = vpack.c.bf16 %v970_v62, %v966_v61  ;;  %v1094_v10 = vcvt.s32.f32 %v838_v63  ;;  %v1098_v11 = vcvt.s32.f32 %v842_v0  ;;  %v642_v12 = vunpack.c.3.s8 %v542_v56 }
 0x195   :  { %1392 = vmatpush.bf16.msra.mxu0 %v1134_v2  ;;  %v1198_v14 = vpack.c.bf16 %v1034_v4, %v1030_v3  ;;  %v894_v15 = vcvt.s32.f32 %v638_v6  ;;  %v702_v16 = vunpack.c.2.s8 %v558_v1  ;;  %v706_v17 = vunpack.c.3.s8 %v558_v1 }
 0x196   :  { %1405 = vmatpush.bf16.msra.mxu1 %v1166_v9  ;;  %v1230_v18 = vpack.c.bf16 %v1098_v11, %v1094_v10  ;;  %v898_v19 = vcvt.s32.f32 %v642_v12  ;;  %v766_v20 = vunpack.c.2.s8 %v574_v8  ;;  %v770_v21 = vunpack.c.3.s8 %v574_v8 }
 0x197   :  { %1418 = vmatpush.bf16.msra.mxu2 %v1198_v14  ;;  %v958_v22 = vcvt.s32.f32 %v702_v16  ;;  %v962_v23 = vcvt.s32.f32 %v706_v17  ;;  %v830_v24 = vunpack.c.2.s8 %v590_v13  ;;  %v834_v25 = vunpack.c.3.s8 %v590_v13 }
 0x198   :  { %1431 = vmatpush.bf16.msra.mxu3 %v1230_v18  ;;  %v1130_v26 = vpack.c.bf16 %v898_v19, %v894_v15  ;;  %v1022_v27 = vcvt.s32.f32 %v766_v20  ;;  %v1026_v28 = vcvt.s32.f32 %v770_v21  ;;  %v630_v29 = vunpack.c.0.s8 %v542_v56 }
 0x199   :  { %v1162_v30 = vpack.c.bf16 %v962_v23, %v958_v22  ;;  %v1086_v31 = vcvt.s32.f32 %v830_v24  ;;  %v1090_v32 = vcvt.s32.f32 %v834_v25  ;;  %v634_v33 = vunpack.c.1.s8 %v542_v56  ;;  %v534_v22 = vld [vmem:[#allocation2 + $0x18] sm:$0xff] }
 0x19a   :  { %1393 = vmatpush.bf16.msra.mxu0 %v1130_v26  ;;  %v1194_v34 = vpack.c.bf16 %v1026_v28, %v1022_v27  ;;  %v886_v35 = vcvt.s32.f32 %v630_v29  ;;  %v694_v36 = vunpack.c.0.s8 %v558_v1  ;;  %v698_v37 = vunpack.c.1.s8 %v558_v1 }
 0x19b   :  { %1406 = vmatpush.bf16.msra.mxu1 %v1162_v30  ;;  %v1226_v39 = vpack.c.bf16 %v1090_v32, %v1086_v31  ;;  %v890_v40 = vcvt.s32.f32 %v634_v33  ;;  %v758_v41 = vunpack.c.0.s8 %v574_v8  ;;  %v762_v42 = vunpack.c.1.s8 %v574_v8  ;;  %v550_v31 = vld [vmem:[#allocation2 + $0x98] sm:$0xff] }
 0x19c   :  { %1419 = vmatpush.bf16.msra.mxu2 %v1194_v34  ;;  %v950_v43 = vcvt.s32.f32 %v694_v36  ;;  %v954_v44 = vcvt.s32.f32 %v698_v37  ;;  %v822_v45 = vunpack.c.0.s8 %v590_v13  ;;  %v826_v46 = vunpack.c.1.s8 %v590_v13  ;;  %v566_v36 = vld [vmem:[#allocation2 + $0x118] sm:$0xff] }
 0x19d   :  { %1432 = vmatpush.bf16.msra.mxu3 %v1226_v39  ;;  %v1126_v48 = vpack.c.bf16 %v890_v40, %v886_v35  ;;  %v1014_v49 = vcvt.s32.f32 %v758_v41  ;;  %v1018_v50 = vcvt.s32.f32 %v762_v42  ;;  %v622_v51 = vunpack.c.2.s8 %v538_v7  ;;  %v582_v41 = vld [vmem:[#allocation2 + $0x198] sm:$0xff] }
 0x19e   :  { %v1158_v54 = vpack.c.bf16 %v954_v44, %v950_v43  ;;  %v1078_v56 = vcvt.s32.f32 %v822_v45  ;;  %v1082_v57 = vcvt.s32.f32 %v826_v46  ;;  %v626_v58 = vunpack.c.3.s8 %v538_v7 }
 0x19f   :  { %1394 = vmatpush.bf16.msra.mxu0 %v1126_v48  ;;  %v1190_v60 = vpack.c.bf16 %v1018_v50, %v1014_v49  ;;  %v878_v61 = vcvt.s32.f32 %v622_v51  ;;  %v686_v62 = vunpack.c.2.s8 %v554_v47  ;;  %v690_v63 = vunpack.c.3.s8 %v554_v47 }
 0x1a0   :  { %1407 = vmatpush.bf16.msra.mxu1 %v1158_v54  ;;  %v1222_v0 = vpack.c.bf16 %v1082_v57, %v1078_v56  ;;  %v882_v1 = vcvt.s32.f32 %v626_v58  ;;  %v750_v2 = vunpack.c.2.s8 %v570_v53  ;;  %v754_v3 = vunpack.c.3.s8 %v570_v53 }
 0x1a1   :  { %1420 = vmatpush.bf16.msra.mxu2 %v1190_v60  ;;  %v942_v4 = vcvt.s32.f32 %v686_v62  ;;  %v946_v6 = vcvt.s32.f32 %v690_v63  ;;  %v814_v8 = vunpack.c.2.s8 %v586_v59  ;;  %v818_v9 = vunpack.c.3.s8 %v586_v59 }
 0x1a2   :  { %1433 = vmatpush.bf16.msra.mxu3 %v1222_v0  ;;  %v1122_v10 = vpack.c.bf16 %v882_v1, %v878_v61  ;;  %v1006_v11 = vcvt.s32.f32 %v750_v2  ;;  %v1010_v12 = vcvt.s32.f32 %v754_v3  ;;  %v614_v13 = vunpack.c.0.s8 %v538_v7 }
 0x1a3   :  { %v1154_v14 = vpack.c.bf16 %v946_v6, %v942_v4  ;;  %v1070_v15 = vcvt.s32.f32 %v814_v8  ;;  %v1074_v16 = vcvt.s32.f32 %v818_v9  ;;  %v618_v17 = vunpack.c.1.s8 %v538_v7 }
 0x1a4   :  { %1395 = vmatpush.bf16.msra.mxu0 %v1122_v10  ;;  %v1186_v18 = vpack.c.bf16 %v1010_v12, %v1006_v11  ;;  %v870_v19 = vcvt.s32.f32 %v614_v13  ;;  %v678_v20 = vunpack.c.0.s8 %v554_v47  ;;  %v682_v21 = vunpack.c.1.s8 %v554_v47 }
 0x1a5   :  { %1408 = vmatpush.bf16.msra.mxu1 %v1154_v14  ;;  %v1218_v23 = vpack.c.bf16 %v1074_v16, %v1070_v15  ;;  %v874_v24 = vcvt.s32.f32 %v618_v17  ;;  %v742_v25 = vunpack.c.0.s8 %v570_v53  ;;  %v746_v26 = vunpack.c.1.s8 %v570_v53 }
 0x1a6   :  { %1421 = vmatpush.bf16.msra.mxu2 %v1186_v18  ;;  %v934_v27 = vcvt.s32.f32 %v678_v20  ;;  %v938_v28 = vcvt.s32.f32 %v682_v21  ;;  %v806_v29 = vunpack.c.0.s8 %v586_v59  ;;  %v810_v30 = vunpack.c.1.s8 %v586_v59 }
 0x1a7   :  { %1434 = vmatpush.bf16.msra.mxu3 %v1218_v23  ;;  %v1118_v32 = vpack.c.bf16 %v874_v24, %v870_v19  ;;  %v998_v33 = vcvt.s32.f32 %v742_v25  ;;  %v1002_v34 = vcvt.s32.f32 %v746_v26  ;;  %v606_v35 = vunpack.c.2.s8 %v534_v22 }
 0x1a8   :  { %v1150_v37 = vpack.c.bf16 %v938_v28, %v934_v27  ;;  %v1062_v7 = vcvt.s32.f32 %v806_v29  ;;  %v1066_v39 = vcvt.s32.f32 %v810_v30  ;;  %v610_v40 = vunpack.c.3.s8 %v534_v22 }
 0x1a9   :  { %1396 = vmatpush.bf16.msra.mxu0 %v1118_v32  ;;  %v1182_v42 = vpack.c.bf16 %v1002_v34, %v998_v33  ;;  %v862_v43 = vcvt.s32.f32 %v606_v35  ;;  %v670_v44 = vunpack.c.2.s8 %v550_v31  ;;  %v674_v45 = vunpack.c.3.s8 %v550_v31 }
 0x1aa   :  { %1409 = vmatpush.bf16.msra.mxu1 %v1150_v37  ;;  %v1214_v46 = vpack.c.bf16 %v1066_v39, %v1062_v7  ;;  %v866_v47 = vcvt.s32.f32 %v610_v40  ;;  %v734_v48 = vunpack.c.2.s8 %v566_v36  ;;  %v738_v49 = vunpack.c.3.s8 %v566_v36 }
 0x1ab   :  { %1422 = vmatpush.bf16.msra.mxu2 %v1182_v42  ;;  %v926_v50 = vcvt.s32.f32 %v670_v44  ;;  %v930_v51 = vcvt.s32.f32 %v674_v45  ;;  %v798_v53 = vunpack.c.2.s8 %v582_v41  ;;  %v802_v54 = vunpack.c.3.s8 %v582_v41 }
 0x1ac   :  { %1435 = vmatpush.bf16.msra.mxu3 %v1214_v46  ;;  %v1114_v56 = vpack.c.bf16 %v866_v47, %v862_v43  ;;  %v990_v57 = vcvt.s32.f32 %v734_v48  ;;  %v994_v58 = vcvt.s32.f32 %v738_v49  ;;  %v598_v59 = vunpack.c.0.s8 %v534_v22 }
 0x1ad   :  { %v1146_v60 = vpack.c.bf16 %v930_v51, %v926_v50  ;;  %v1054_v61 = vcvt.s32.f32 %v798_v53  ;;  %v1058_v62 = vcvt.s32.f32 %v802_v54  ;;  %v602_v63 = vunpack.c.1.s8 %v534_v22 }
 0x1ae   :  { %1397 = vmatpush.bf16.msra.mxu0 %v1114_v56  ;;  %v1178_v0 = vpack.c.bf16 %v994_v58, %v990_v57  ;;  %v854_v1 = vcvt.s32.f32 %v598_v59  ;;  %v662_v2 = vunpack.c.0.s8 %v550_v31  ;;  %v666_v3 = vunpack.c.1.s8 %v550_v31 }
 0x1af   :  { %1410 = vmatpush.bf16.msra.mxu1 %v1146_v60  ;;  %v1210_v4 = vpack.c.bf16 %v1058_v62, %v1054_v61  ;;  %v858_v6 = vcvt.s32.f32 %v602_v63  ;;  %v726_v8 = vunpack.c.0.s8 %v566_v36  ;;  %v730_v9 = vunpack.c.1.s8 %v566_v36  ;;  %v5042_v60 = vld [vmem:[#allocation15] sm:$0xf] }
 0x1b0   :  { %1423 = vmatpush.bf16.msra.mxu2 %v1178_v0  ;;  %v918_v10 = vcvt.s32.f32 %v662_v2  ;;  %v922_v11 = vcvt.s32.f32 %v666_v3  ;;  %v790_v12 = vunpack.c.0.s8 %v582_v41  ;;  %v794_v13 = vunpack.c.1.s8 %v582_v41 }
 0x1b1   :  { %1436 = vmatpush.bf16.msra.mxu3 %v1210_v4  ;;  %v1110_v14 = vpack.c.bf16 %v858_v6, %v854_v1  ;;  %v982_v15 = vcvt.s32.f32 %v726_v8  ;;  %v986_v16 = vcvt.s32.f32 %v730_v9  ;;  %v5046_v63 = vmul.f32 %v5042_v60, %v5042_v60 }
 0x1b2   :  { %v1142_v17 = vpack.c.bf16 %v922_v11, %v918_v10  ;;  %v1046_v18 = vcvt.s32.f32 %v790_v12  ;;  %v1050_v19 = vcvt.s32.f32 %v794_v13 }
 0x1b3   :  { %1398 = vmatpush.bf16.msra.mxu0 %v1110_v14  ;;  %v1174_v20 = vpack.c.bf16 %v986_v16, %v982_v15  ;;  %v1510_v3 = vperm.slane %v5046_v63, 0 }
 0x1b4   :  { %1411 = vmatpush.bf16.msra.mxu1 %v1142_v17  ;;  %v1206_v21 = vpack.c.bf16 %v1050_v19, %v1046_v18  ;;  %v1511_v17 = vperm.slane %v5046_v63, 1 }
 0x1b5   :  { %1424 = vmatpush.bf16.msra.mxu2 %v1174_v20 }
 0x1b6   :  { %1437 = vmatpush.bf16.msra.mxu3 %v1206_v21  ;;  %1399 = vmatmul.bf16.vlgmr.msra.gmra.mxu0 %v5014_v38 }
 0x1b7   :  { %1412 = vmatmul.bf16.vlgmr.msra.gmra.mxu1 %v5016_v52 }
 0x1b8   :  { %1425 = vmatmul.bf16.vlgmr.msra.gmra.mxu2 %v5018_v55 }
 0x1b9   :  { %1438 = vmatmul.bf16.vlgmr.msra.gmra.mxu3 %v5020_v5 }
 0x1bb   :  { %v1244_v22 = vpop.f32.mrf.mxu0 }
 0x1bc   :  { %v1257_v23 = vpop.f32.mrf.mxu1 }
 0x1bd   :  { %v1258_v24 = vadd.f32 %v1257_v23, %v1244_v22 }
 0x1c3   :  { %v1270_v25 = vpop.f32.mrf.mxu2  ;;  %v1246_v26 = vpop.f32.mrf.mxu0 }
 0x1c4   :  { %v1271_v27 = vadd.f32 %v1270_v25, %v1258_v24  ;;  %v1283_v28 = vpop.f32.mrf.mxu3  ;;  %v1259_v29 = vpop.f32.mrf.mxu1 }
 0x1c6   :  { %v1284_v30 = vadd.f32 %v1283_v28, %v1271_v27 }
 0x1c8   :  { %v1444_v31 = vrot.slane %v1284_v30, 4 }
 0x1ca   :  { %v1445_v32 = vadd.f32 %v1444_v31, %v1284_v30 }
 0x1cb   :  { %v1272_v33 = vpop.f32.mrf.mxu2 }
 0x1cc   :  { %v1446_v34 = vrot.slane %v1445_v32, 2  ;;  %v1285_v38 = vpop.f32.mrf.mxu3 }
 0x1ce   :  { %v1447_v35 = vadd.f32 %v1446_v34, %v1445_v32 }
 0x1d0   :  { %v1448_v52 = vrot.slane %v1447_v35, 1 }
 0x1d2   :  { %v1449_v36 = vadd.f32 %v1448_v52, %v1447_v35 }
 0x1d4   :  { %v1468_v55 = vmul.f32 0.125, %v1449_v36 }
 0x1d6   :  { %v5038_v37 = vsub.f32 %v1284_v30, %v1468_v55 }
 0x1d8   :  { %v1476_v5 = vmul.f32 %v5038_v37, %v5038_v37 }
 0x1da   :  { %v1480_v41 = vrot.slane %v1476_v5, 4 }
 0x1dc   :  { %v1481_v42 = vadd.f32 %v1480_v41, %v1476_v5 }
 0x1de   :  { %v1482_v48 = vrot.slane %v1481_v42, 2 }
 0x1e0   :  { %v1483_v51 = vadd.f32 %v1482_v48, %v1481_v42 }
 0x1e2   :  { %v1484_v58 = vrot.slane %v1483_v51, 1 }
 0x1e3   :  { %v1296_v7 = vpop.f32.mrf.mxu0 }
 0x1e4   :  { %v1309_v39 = vpop.f32.mrf.mxu1  ;;  %v1485_v62 = vadd.f32 %v1484_v58, %v1483_v51 }
 0x1e5   :  { %v1310_v40 = vadd.f32 %v1309_v39, %v1296_v7 }
 0x1e6   :  { %v1504_v2 = vmul.f32 0.125, %v1485_v62 }
 0x1e8   :  { %v1518_v8 = vmul.f32 %v1510_v3, %v1504_v2 }
 0x1ea   :  { %v1524_v11 = vadd.f32 1e-05, %v1518_v8 }
 0x1eb   :  { %v1322_v43 = vpop.f32.mrf.mxu2  ;;  %v1298_v44 = vpop.f32.mrf.mxu0 }
 0x1ec   :  { %v1323_v45 = vadd.f32 %v1322_v43, %v1310_v40  ;;  %v1335_v46 = vpop.f32.mrf.mxu3  ;;  %v1311_v47 = vpop.f32.mrf.mxu1  ;;  %4400 = vrsqrt.f32 %v1524_v11  ;;  %vm1534_vm2 = vweird.f32 %v1524_v11 }
 0x1ee   :  { %v1336_v49 = vadd.f32 %v1335_v46, %v1323_v45 }
 0x1f0   :  { %v1450_v50 = vrot.slane %v1336_v49, 4 }
 0x1f2   :  { %v1451_v53 = vadd.f32 %v1450_v50, %v1336_v49  ;;  %v4401_v20 = vpop.eup %4400 }
 0x1f3   :  { %v1324_v54 = vpop.f32.mrf.mxu2  ;;  %v1529_v24 = vmul.f32 %v4401_v20, %v1524_v11  ;;  %vm1535_vm3 = vweird.f32 %v4401_v20 }
 0x1f4   :  { %v1452_v56 = vrot.slane %v1451_v53, 2  ;;  %v1337_v57 = vpop.f32.mrf.mxu3  ;;  %vm1536_vm5 = vmor %vm1534_vm2, %vm1535_vm3 }
 0x1f5   :  { %v1530_v31 = vmul.f32 %v4401_v20, %v1529_v24 }
 0x1f6   :  { %v1453_v59 = vadd.f32 %v1452_v56, %v1451_v53 }
 0x1f7   :  { %v1531_v38 = vmul.f32 0.5, %v1530_v31 }
 0x1f8   :  { %v1454_v61 = vrot.slane %v1453_v59, 1 }
 0x1f9   :  { %v1532_v39 = vsub.f32 1.5, %v1531_v38 }
 0x1fa   :  { %v1455_v0 = vadd.f32 %v1454_v61, %v1453_v59 }
 0x1fb   :  { %v1533_v45 = vmul.f32 %v4401_v20, %v1532_v39 }
 0x1fc   :  { %v1469_v1 = vmul.f32 0.125, %v1455_v0 }
 0x1fe   :  { %v5049_v4 = vsub.f32 %v1336_v49, %v1469_v1  ;;  %v1537_v49 = vsel %vm1536_vm5, %v4401_v20, %v1533_v45 }
 0x200   :  { %v1477_v6 = vmul.f32 %v5049_v4, %v5049_v4 }
 0x202   :  { %v1486_v9 = vrot.slane %v1477_v6, 4 }
 0x204   :  { %v1487_v10 = vadd.f32 %v1486_v9, %v1477_v6 }
 0x206   :  { %v1488_v12 = vrot.slane %v1487_v10, 2 }
 0x208   :  { %v1489_v13 = vadd.f32 %v1488_v12, %v1487_v10 }
 0x20a   :  { %v1490_v14 = vrot.slane %v1489_v13, 1 }
 0x20b   :  { %v1348_v15 = vpop.f32.mrf.mxu0 }
 0x20c   :  { %v1491_v16 = vadd.f32 %v1490_v14, %v1489_v13  ;;  %v1361_v18 = vpop.f32.mrf.mxu1 }
 0x20d   :  { %v1362_v22 = vadd.f32 %v1361_v18, %v1348_v15 }
 0x20e   :  { %v1505_v19 = vmul.f32 0.125, %v1491_v16 }
 0x210   :  { %v1519_v21 = vmul.f32 %v1511_v17, %v1505_v19  ;;  %v1512_v19 = vperm.slane %v5046_v63, 2 }
 0x212   :  { %v1525_v23 = vadd.f32 1e-05, %v1519_v21 }
 0x213   :  { %v1374_v25 = vpop.f32.mrf.mxu2  ;;  %v1350_v26 = vpop.f32.mrf.mxu0 }
 0x214   :  { %4402 = vrsqrt.f32 %v1525_v23  ;;  %v1375_v27 = vadd.f32 %v1374_v25, %v1362_v22  ;;  %v1387_v28 = vpop.f32.mrf.mxu3  ;;  %v1363_v29 = vpop.f32.mrf.mxu1  ;;  %vm1544_vm0 = vweird.f32 %v1525_v23 }
 0x216   :  { %v1388_v30 = vadd.f32 %v1387_v28, %v1375_v27 }
 0x218   :  { %v1456_v32 = vrot.slane %v1388_v30, 4 }
 0x21a   :  { %v4403_v33 = vpop.eup %4402  ;;  %v1457_v34 = vadd.f32 %v1456_v32, %v1388_v30 }
 0x21b   :  { %v1539_v35 = vmul.f32 %v4403_v33, %v1525_v23  ;;  %v1376_v52 = vpop.f32.mrf.mxu2  ;;  %vm1545_vm1 = vweird.f32 %v4403_v33 }
 0x21c   :  { %v1458_v36 = vrot.slane %v1457_v34, 2  ;;  %v1389_v55 = vpop.f32.mrf.mxu3  ;;  %vm1546_vm4 = vmor %vm1544_vm0, %vm1545_vm1 }
 0x21d   :  { %v1540_v5 = vmul.f32 %v4403_v33, %v1539_v35 }
 0x21e   :  { %v1459_v7 = vadd.f32 %v1458_v36, %v1457_v34 }
 0x21f   :  { %v1541_v40 = vmul.f32 0.5, %v1540_v5 }
 0x220   :  { %v1460_v41 = vrot.slane %v1459_v7, 1 }
 0x221   :  { %v1542_v42 = vsub.f32 1.5, %v1541_v40 }
 0x222   :  { %v1461_v43 = vadd.f32 %v1460_v41, %v1459_v7 }
 0x223   :  { %v1543_v44 = vmul.f32 %v4403_v33, %v1542_v42 }
 0x224   :  { %v1470_v47 = vmul.f32 0.125, %v1461_v43 }
 0x225   :  { %v1547_v46 = vsel %vm1546_vm4, %v4403_v33, %v1543_v44  ;;  %v1513_v33 = vperm.slane %v5046_v63, 3  ;;  %v1522_v63 = vld [vmem:[%s5227_s5] sm:$0xf] }
 0x226   :  { %v1572_v48 = vrot.slane %v1547_v46, 7  ;;  %v5057_v51 = vsub.f32 %v1388_v30, %v1470_v47  ;;  %v1523_v47 = vmul.f32 %v1522_v63, %v5042_v60 }
 0x228   :  { %v5055_v50 = vsel %vm480_vm11, %v1537_v49, %v1572_v48  ;;  %v1478_v53 = vmul.f32 %v5057_v51, %v5057_v51 }
 0x22a   :  { %v1492_v54 = vrot.slane %v1478_v53, 4 }
 0x22c   :  { %v1493_v58 = vadd.f32 %v1492_v54, %v1478_v53  ;;  %v1593_v54 = vld [vmem:[#allocation16] sm:$0xf] }
 0x22e   :  { %v1494_v61 = vrot.slane %v1493_v58, 2 }
 0x230   :  { %v1495_v6 = vadd.f32 %v1494_v61, %v1493_v58  ;;  %v1595_v58 = vperm.slane %v1593_v54, 0  ;;  %v1597_v61 = vperm.slane %v1593_v54, 2 }
 0x232   :  { %v1496_v10 = vrot.slane %v1495_v6, 1 }
 0x233   :  { %v1400_v56 = vpop.f32.mrf.mxu0 }
 0x234   :  { %v1413_v57 = vpop.f32.mrf.mxu1  ;;  %v1497_v15 = vadd.f32 %v1496_v10, %v1495_v6 }
 0x235   :  { %v1414_v59 = vadd.f32 %v1413_v57, %v1400_v56 }
 0x236   :  { %v1506_v18 = vmul.f32 0.125, %v1497_v15 }
 0x238   :  { %v1520_v22 = vmul.f32 %v1512_v19, %v1506_v18 }
 0x23a   :  { %v1526_v25 = vadd.f32 1e-05, %v1520_v22 }
 0x23b   :  { %v1426_v62 = vpop.f32.mrf.mxu2  ;;  %v1402_v0 = vpop.f32.mrf.mxu0 }
 0x23c   :  { %v1427_v1 = vadd.f32 %v1426_v62, %v1414_v59  ;;  %v1439_v2 = vpop.f32.mrf.mxu3  ;;  %v1415_v3 = vpop.f32.mrf.mxu1  ;;  %4404 = vrsqrt.f32 %v1526_v25  ;;  %vm1554_vm7 = vweird.f32 %v1526_v25  ;;  %v1596_v59 = vperm.slane %v1593_v54, 1 }
 0x23d   :  { %v1598_v62 = vperm.slane %v1593_v54, 3 }
 0x23e   :  { %v1440_v8 = vadd.f32 %v1439_v2, %v1427_v1 }
 0x240   :  { %v1462_v9 = vrot.slane %v1440_v8, 4 }
 0x242   :  { %v1463_v11 = vadd.f32 %v1462_v9, %v1440_v8  ;;  %v4405_v31 = vpop.eup %4404 }
 0x243   :  { %v1428_v12 = vpop.f32.mrf.mxu2  ;;  %v1549_v38 = vmul.f32 %v4405_v31, %v1526_v25  ;;  %vm1555_vm6 = vweird.f32 %v4405_v31 }
 0x244   :  { %v1464_v13 = vrot.slane %v1463_v11, 2  ;;  %v1441_v14 = vpop.f32.mrf.mxu3  ;;  %vm1556_vm9 = vmor %vm1554_vm7, %vm1555_vm6 }
 0x245   :  { %v1550_v36 = vmul.f32 %v4405_v31, %v1549_v38 }
 0x246   :  { %v1465_v16 = vadd.f32 %v1464_v13, %v1463_v11 }
 0x247   :  { %v1551_v55 = vmul.f32 0.5, %v1550_v36 }
 0x248   :  { %v1466_v17 = vrot.slane %v1465_v16, 1 }
 0x249   :  { %v1552_v7 = vsub.f32 1.5, %v1551_v55 }
 0x24a   :  { %v1467_v20 = vadd.f32 %v1466_v17, %v1465_v16 }
 0x24b   :  { %v1553_v41 = vmul.f32 %v4405_v31, %v1552_v7 }
 0x24c   :  { %v1471_v21 = vmul.f32 0.125, %v1467_v20 }
 0x24d   :  { %v1557_v44 = vsel %vm1556_vm9, %v4405_v31, %v1553_v41 }
 0x24e   :  { %v1475_v23 = vsub.f32 %v1440_v8, %v1471_v21  ;;  %v1573_v48 = vrot.slane %v1557_v44, 6 }
 0x250   :  { %v1479_v24 = vmul.f32 %v1475_v23, %v1475_v23 }
 0x252   :  { %v1498_v26 = vrot.slane %v1479_v24, 4 }
 0x254   :  { %v1499_v27 = vadd.f32 %v1498_v26, %v1479_v24 }
 0x256   :  { %v1500_v28 = vrot.slane %v1499_v27, 2 }
 0x258   :  { %v1501_v29 = vadd.f32 %v1500_v28, %v1499_v27 }
 0x25a   :  { %v1502_v30 = vrot.slane %v1501_v29, 1 }
 0x25c   :  { %v1503_v32 = vadd.f32 %v1502_v30, %v1501_v29 }
 0x25e   :  { %v1507_v34 = vmul.f32 0.125, %v1503_v32 }
 0x260   :  { %v1521_v35 = vmul.f32 %v1513_v33, %v1507_v34 }
 0x262   :  { %v1527_v52 = vadd.f32 1e-05, %v1521_v35 }
 0x264   :  { %4406 = vrsqrt.f32 %v1527_v52  ;;  %vm1564_vm10 = vweird.f32 %v1527_v52 }
 0x26a   :  { %v4407_v5 = vpop.eup %4406 }
 0x26b   :  { %v1559_v39 = vmul.f32 %v4407_v5, %v1527_v52  ;;  %vm1565_vm8 = vweird.f32 %v4407_v5 }
 0x26c   :  { %vm1566_vm12 = vmor %vm1564_vm10, %vm1565_vm8 }
 0x26d   :  { %v1560_v40 = vmul.f32 %v4407_v5, %v1559_v39 }
 0x26f   :  { %v1561_v42 = vmul.f32 0.5, %v1560_v40 }
 0x271   :  { %v1562_v43 = vsub.f32 1.5, %v1561_v42 }
 0x273   :  { %v1563_v45 = vmul.f32 %v4407_v5, %v1562_v43 }
 0x275   :  { %v1567_v46 = vsel %vm1566_vm12, %v4407_v5, %v1563_v45 }
 0x276   :  { %v1574_v49 = vrot.slane %v1567_v46, 5 }
 0x278   :  { %v1576_v53 = vsel %vm482_vm13, %v1573_v48, %v1574_v49 }
 0x279   :  { %v1577_v56 = vsel %vm484_vm15, %v5055_v50, %v1576_v53 }
 0x27a   :  { %v1579_v57 = vmul.f32 %v1577_v56, %v1523_v47 }
 0x27c   :  { %v1581_v0 = vperm.slane %v1579_v57, 0  ;;  %v1582_v1 = vperm.slane %v1579_v57, 1  ;;  %v1583_v2 = vperm.slane %v1579_v57, 2  ;;  %v1584_v3 = vperm.slane %v1579_v57, 3 }
 0x27e   :  { %v1589_v6 = vmul.f32 %v1581_v0, %v5038_v37  ;;  %v1590_v60 = vmul.f32 %v1582_v1, %v5049_v4  ;;  %v1591_v8 = vmul.f32 %v1583_v2, %v5057_v51  ;;  %v1592_v9 = vmul.f32 %v1584_v3, %v1475_v23 }
 0x280   :  { %v1603_v10 = vadd.f32 %v1595_v58, %v1589_v6  ;;  %v1604_v11 = vadd.f32 %v1596_v59, %v1590_v60  ;;  %v1605_v12 = vadd.f32 %v1597_v61, %v1591_v8  ;;  %v1606_v50 = vadd.f32 %v1598_v62, %v1592_v9 }
 0x282   :  { %v1607_v13 = vmul.f32 0.2, %v1603_v10  ;;  %v1608_v14 = vmul.f32 0.2, %v1604_v11  ;;  %v1609_v15 = vmul.f32 0.2, %v1605_v12 }
 0x283   :  { %v1610_v16 = vmul.f32 0.2, %v1606_v50 }
 0x284   :  { %v1611_v17 = vmax.f32 %v1603_v10, %v1607_v13  ;;  %v1612_v18 = vmax.f32 %v1604_v11, %v1608_v14  ;;  %v1613_v19 = vmax.f32 %v1605_v12, %v1609_v15 }
 0x285   :  { %v1614_v20 = vmax.f32 %v1606_v50, %v1610_v16 }
 0x286   :  { %v5073_v21 = vpack.c.bf16 %v1611_v17, %v1611_v17  ;;  %v5075_v37 = vpack.c.bf16 %v1612_v18, %v1612_v18  ;;  %v5077_v4 = vpack.c.bf16 %v1613_v19, %v1613_v19 }
 0x287   :  { %v5079_v51 = vpack.c.bf16 %v1614_v20, %v1614_v20 }
 0x288   :  { %4825 = dma.done.wait [#allocation6 + $0x1], 8192 }
 0x289   :  { %4826 = vsyncadd [#allocation6 + $0x1], 4294959104  ;;  %v1633_v22 = vld [vmem:[#allocation3 + $0x60] sm:$0xff] }
 0x28a   :  { %v1649_v23 = vld [vmem:[#allocation3 + $0xe0] sm:$0xff]  ;;  %v1741_v25 = vunpack.c.2.s8 %v1633_v22  ;;  %v1745_v26 = vunpack.c.3.s8 %v1633_v22  ;;  %v1733_v41 = vunpack.c.0.s8 %v1633_v22  ;;  %v1737_v42 = vunpack.c.1.s8 %v1633_v22 }
 0x28b   :  { %v1665_v24 = vld [vmem:[#allocation3 + $0x160] sm:$0xff]  ;;  %v1805_v27 = vunpack.c.2.s8 %v1649_v23  ;;  %v1809_v28 = vunpack.c.3.s8 %v1649_v23  ;;  %v1797_v44 = vunpack.c.0.s8 %v1649_v23  ;;  %v1801_v45 = vunpack.c.1.s8 %v1649_v23 }
 0x28c   :  { %v1681_v29 = vld [vmem:[#allocation3 + $0x1e0] sm:$0xff]  ;;  %v1869_v30 = vunpack.c.2.s8 %v1665_v24  ;;  %v1873_v31 = vunpack.c.3.s8 %v1665_v24  ;;  %v1997_v34 = vcvt.s32.f32 %v1741_v25  ;;  %v2001_v38 = vcvt.s32.f32 %v1745_v26 }
 0x28d   :  { %v1933_v32 = vunpack.c.2.s8 %v1681_v29  ;;  %v1937_v33 = vunpack.c.3.s8 %v1681_v29  ;;  %v2061_v35 = vcvt.s32.f32 %v1805_v27  ;;  %v2065_v52 = vcvt.s32.f32 %v1809_v28  ;;  %v1629_v46 = vld [vmem:[#allocation3 + $0x40] sm:$0xff] }
 0x28e   :  { %v2125_v36 = vcvt.s32.f32 %v1869_v30  ;;  %v2129_v55 = vcvt.s32.f32 %v1873_v31  ;;  %v2225_v39 = vpack.c.bf16 %v2001_v38, %v1997_v34  ;;  %v1989_v47 = vcvt.s32.f32 %v1733_v41  ;;  %v1645_v59 = vld [vmem:[#allocation3 + $0xc0] sm:$0xff] }
 0x28f   :  { %v2189_v5 = vcvt.s32.f32 %v1933_v32  ;;  %v2193_v7 = vcvt.s32.f32 %v1937_v33  ;;  %v2257_v40 = vpack.c.bf16 %v2065_v52, %v2061_v35  ;;  %v1993_v48 = vcvt.s32.f32 %v1737_v42  ;;  %v1661_v2 = vld [vmem:[#allocation3 + $0x140] sm:$0xff] }
 0x290   :  { %v2289_v43 = vpack.c.bf16 %v2129_v55, %v2125_v36  ;;  %2325 = vmatpush.bf16.msrb.mxu0 %v2225_v39  ;;  %v1861_v49 = vunpack.c.0.s8 %v1665_v24  ;;  %v1865_v53 = vunpack.c.1.s8 %v1665_v24  ;;  %v2053_v54 = vcvt.s32.f32 %v1797_v44  ;;  %v1677_v9 = vld [vmem:[#allocation3 + $0x1c0] sm:$0xff] }
 0x291   :  { %v2321_v63 = vpack.c.bf16 %v2193_v7, %v2189_v5  ;;  %2338 = vmatpush.bf16.msrb.mxu1 %v2257_v40  ;;  %v2057_v56 = vcvt.s32.f32 %v1801_v45  ;;  %v1925_v57 = vunpack.c.0.s8 %v1681_v29  ;;  %v1929_v58 = vunpack.c.1.s8 %v1681_v29  ;;  %v1625_v34 = vld [vmem:[#allocation3 + $0x20] sm:$0xff] }
 0x292   :  { %2351 = vmatpush.bf16.msrb.mxu2 %v2289_v43  ;;  %v2221_v61 = vpack.c.bf16 %v1993_v48, %v1989_v47  ;;  %v2117_v62 = vcvt.s32.f32 %v1861_v49  ;;  %v2121_v0 = vcvt.s32.f32 %v1865_v53  ;;  %v1725_v1 = vunpack.c.2.s8 %v1629_v46  ;;  %v1641_v40 = vld [vmem:[#allocation3 + $0xa0] sm:$0xff] }
 0x293   :  { %2364 = vmatpush.bf16.msrb.mxu3 %v2321_v63  ;;  %v2253_v3 = vpack.c.bf16 %v2057_v56, %v2053_v54  ;;  %v2181_v6 = vcvt.s32.f32 %v1925_v57  ;;  %v2185_v60 = vcvt.s32.f32 %v1929_v58  ;;  %v1729_v8 = vunpack.c.3.s8 %v1629_v46  ;;  %v1657_v44 = vld [vmem:[#allocation3 + $0x120] sm:$0xff] }
 0x294   :  { %2326 = vmatpush.bf16.msrb.mxu0 %v2221_v61  ;;  %v2285_v10 = vpack.c.bf16 %v2121_v0, %v2117_v62  ;;  %v1981_v11 = vcvt.s32.f32 %v1725_v1  ;;  %v1789_v12 = vunpack.c.2.s8 %v1645_v59  ;;  %v1793_v50 = vunpack.c.3.s8 %v1645_v59  ;;  %v1673_v49 = vld [vmem:[#allocation3 + $0x1a0] sm:$0xff] }
 0x295   :  { %2339 = vmatpush.bf16.msrb.mxu1 %v2253_v3  ;;  %v2317_v13 = vpack.c.bf16 %v2185_v60, %v2181_v6  ;;  %v1985_v14 = vcvt.s32.f32 %v1729_v8  ;;  %v1853_v15 = vunpack.c.2.s8 %v1661_v2  ;;  %v1857_v16 = vunpack.c.3.s8 %v1661_v2 }
 0x296   :  { %2352 = vmatpush.bf16.msrb.mxu2 %v2285_v10  ;;  %v2045_v17 = vcvt.s32.f32 %v1789_v12  ;;  %v2049_v18 = vcvt.s32.f32 %v1793_v50  ;;  %v1917_v19 = vunpack.c.2.s8 %v1677_v9  ;;  %v1921_v20 = vunpack.c.3.s8 %v1677_v9 }
 0x297   :  { %2365 = vmatpush.bf16.msrb.mxu3 %v2317_v13  ;;  %v2217_v22 = vpack.c.bf16 %v1985_v14, %v1981_v11  ;;  %v2109_v23 = vcvt.s32.f32 %v1853_v15  ;;  %v2113_v24 = vcvt.s32.f32 %v1857_v16  ;;  %v1717_v25 = vunpack.c.0.s8 %v1629_v46 }
 0x298   :  { %v2249_v26 = vpack.c.bf16 %v2049_v18, %v2045_v17  ;;  %v2173_v27 = vcvt.s32.f32 %v1917_v19  ;;  %v2177_v28 = vcvt.s32.f32 %v1921_v20  ;;  %v1721_v29 = vunpack.c.1.s8 %v1629_v46  ;;  %v1621_v17 = vld [vmem:[#allocation3] sm:$0xff] }
 0x299   :  { %2327 = vmatpush.bf16.msrb.mxu0 %v2217_v22  ;;  %v2281_v30 = vpack.c.bf16 %v2113_v24, %v2109_v23  ;;  %v1973_v31 = vcvt.s32.f32 %v1717_v25  ;;  %v1781_v32 = vunpack.c.0.s8 %v1645_v59  ;;  %v1785_v33 = vunpack.c.1.s8 %v1645_v59 }
 0x29a   :  { %2340 = vmatpush.bf16.msrb.mxu1 %v2249_v26  ;;  %v2313_v38 = vpack.c.bf16 %v2177_v28, %v2173_v27  ;;  %v1977_v35 = vcvt.s32.f32 %v1721_v29  ;;  %v1845_v52 = vunpack.c.0.s8 %v1661_v2  ;;  %v1849_v36 = vunpack.c.1.s8 %v1661_v2  ;;  %v1637_v27 = vld [vmem:[#allocation3 + $0x80] sm:$0xff] }
 0x29b   :  { %2353 = vmatpush.bf16.msrb.mxu2 %v2281_v30  ;;  %v2037_v55 = vcvt.s32.f32 %v1781_v32  ;;  %v2041_v5 = vcvt.s32.f32 %v1785_v33  ;;  %v1909_v7 = vunpack.c.0.s8 %v1677_v9  ;;  %v1913_v39 = vunpack.c.1.s8 %v1677_v9  ;;  %v1653_v32 = vld [vmem:[#allocation3 + $0x100] sm:$0xff] }
 0x29c   :  { %2366 = vmatpush.bf16.msrb.mxu3 %v2313_v38  ;;  %v2213_v41 = vpack.c.bf16 %v1977_v35, %v1973_v31  ;;  %v2101_v42 = vcvt.s32.f32 %v1845_v52  ;;  %v2105_v43 = vcvt.s32.f32 %v1849_v36  ;;  %v1709_v63 = vunpack.c.2.s8 %v1625_v34  ;;  %v1669_v52 = vld [vmem:[#allocation3 + $0x180] sm:$0xff] }
 0x29d   :  { %v2245_v45 = vpack.c.bf16 %v2041_v5, %v2037_v55  ;;  %v2165_v46 = vcvt.s32.f32 %v1909_v7  ;;  %v2169_v47 = vcvt.s32.f32 %v1913_v39  ;;  %v1713_v48 = vunpack.c.3.s8 %v1625_v34 }
 0x29e   :  { %2328 = vmatpush.bf16.msrb.mxu0 %v2213_v41  ;;  %v2277_v53 = vpack.c.bf16 %v2105_v43, %v2101_v42  ;;  %v1965_v54 = vcvt.s32.f32 %v1709_v63  ;;  %v1773_v56 = vunpack.c.2.s8 %v1641_v40  ;;  %v1777_v57 = vunpack.c.3.s8 %v1641_v40 }
 0x29f   :  { %2341 = vmatpush.bf16.msrb.mxu1 %v2245_v45  ;;  %v2309_v58 = vpack.c.bf16 %v2169_v47, %v2165_v46  ;;  %v1969_v59 = vcvt.s32.f32 %v1713_v48  ;;  %v1837_v61 = vunpack.c.2.s8 %v1657_v44  ;;  %v1841_v62 = vunpack.c.3.s8 %v1657_v44 }
 0x2a0   :  { %2354 = vmatpush.bf16.msrb.mxu2 %v2277_v53  ;;  %v2029_v0 = vcvt.s32.f32 %v1773_v56  ;;  %v2033_v1 = vcvt.s32.f32 %v1777_v57  ;;  %v1901_v2 = vunpack.c.2.s8 %v1673_v49  ;;  %v1905_v3 = vunpack.c.3.s8 %v1673_v49 }
 0x2a1   :  { %2367 = vmatpush.bf16.msrb.mxu3 %v2309_v58  ;;  %v2209_v6 = vpack.c.bf16 %v1969_v59, %v1965_v54  ;;  %v2093_v60 = vcvt.s32.f32 %v1837_v61  ;;  %v2097_v8 = vcvt.s32.f32 %v1841_v62  ;;  %v1701_v9 = vunpack.c.0.s8 %v1625_v34 }
 0x2a2   :  { %v2241_v10 = vpack.c.bf16 %v2033_v1, %v2029_v0  ;;  %v2157_v11 = vcvt.s32.f32 %v1901_v2  ;;  %v2161_v12 = vcvt.s32.f32 %v1905_v3  ;;  %v1705_v50 = vunpack.c.1.s8 %v1625_v34  ;;  %v1634_v0 = vld [vmem:[#allocation3 + $0x68] sm:$0xff] }
 0x2a3   :  { %2329 = vmatpush.bf16.msrb.mxu0 %v2209_v6  ;;  %v2273_v13 = vpack.c.bf16 %v2097_v8, %v2093_v60  ;;  %v1957_v14 = vcvt.s32.f32 %v1701_v9  ;;  %v1765_v15 = vunpack.c.0.s8 %v1641_v40  ;;  %v1769_v16 = vunpack.c.1.s8 %v1641_v40 }
 0x2a4   :  { %2342 = vmatpush.bf16.msrb.mxu1 %v2241_v10  ;;  %v2305_v18 = vpack.c.bf16 %v2161_v12, %v2157_v11  ;;  %v1961_v19 = vcvt.s32.f32 %v1705_v50  ;;  %v1829_v20 = vunpack.c.0.s8 %v1657_v44  ;;  %v1833_v22 = vunpack.c.1.s8 %v1657_v44  ;;  %v1650_v11 = vld [vmem:[#allocation3 + $0xe8] sm:$0xff] }
 0x2a5   :  { %2355 = vmatpush.bf16.msrb.mxu2 %v2273_v13  ;;  %v2021_v23 = vcvt.s32.f32 %v1765_v15  ;;  %v2025_v24 = vcvt.s32.f32 %v1769_v16  ;;  %v1893_v25 = vunpack.c.0.s8 %v1673_v49  ;;  %v1897_v26 = vunpack.c.1.s8 %v1673_v49  ;;  %v1666_v15 = vld [vmem:[#allocation3 + $0x168] sm:$0xff] }
 0x2a6   :  { %2368 = vmatpush.bf16.msrb.mxu3 %v2305_v18  ;;  %v2205_v28 = vpack.c.bf16 %v1961_v19, %v1957_v14  ;;  %v2085_v29 = vcvt.s32.f32 %v1829_v20  ;;  %v2089_v30 = vcvt.s32.f32 %v1833_v22  ;;  %v1693_v31 = vunpack.c.2.s8 %v1621_v17  ;;  %v1682_v20 = vld [vmem:[#allocation3 + $0x1e8] sm:$0xff] }
 0x2a7   :  { %v2237_v33 = vpack.c.bf16 %v2025_v24, %v2021_v23  ;;  %v2149_v34 = vcvt.s32.f32 %v1893_v25  ;;  %v2153_v38 = vcvt.s32.f32 %v1897_v26  ;;  %v1697_v35 = vunpack.c.3.s8 %v1621_v17 }
 0x2a8   :  { %2330 = vmatpush.bf16.msrb.mxu0 %v2205_v28  ;;  %v2269_v36 = vpack.c.bf16 %v2089_v30, %v2085_v29  ;;  %v1949_v55 = vcvt.s32.f32 %v1693_v31  ;;  %v1757_v5 = vunpack.c.2.s8 %v1637_v27  ;;  %v1761_v7 = vunpack.c.3.s8 %v1637_v27 }
 0x2a9   :  { %2343 = vmatpush.bf16.msrb.mxu1 %v2237_v33  ;;  %v2301_v39 = vpack.c.bf16 %v2153_v38, %v2149_v34  ;;  %v1953_v40 = vcvt.s32.f32 %v1697_v35  ;;  %v1821_v41 = vunpack.c.2.s8 %v1653_v32  ;;  %v1825_v42 = vunpack.c.3.s8 %v1653_v32 }
 0x2aa   :  { %2356 = vmatpush.bf16.msrb.mxu2 %v2269_v36  ;;  %v2013_v43 = vcvt.s32.f32 %v1757_v5  ;;  %v2017_v63 = vcvt.s32.f32 %v1761_v7  ;;  %v1885_v44 = vunpack.c.2.s8 %v1669_v52  ;;  %v1889_v45 = vunpack.c.3.s8 %v1669_v52 }
 0x2ab   :  { %2369 = vmatpush.bf16.msrb.mxu3 %v2301_v39  ;;  %v2201_v46 = vpack.c.bf16 %v1953_v40, %v1949_v55  ;;  %v2077_v47 = vcvt.s32.f32 %v1821_v41  ;;  %v2081_v48 = vcvt.s32.f32 %v1825_v42  ;;  %v1685_v49 = vunpack.c.0.s8 %v1621_v17 }
 0x2ac   :  { %v2233_v53 = vpack.c.bf16 %v2017_v63, %v2013_v43  ;;  %v2141_v54 = vcvt.s32.f32 %v1885_v44  ;;  %v2145_v56 = vcvt.s32.f32 %v1889_v45  ;;  %v1689_v57 = vunpack.c.1.s8 %v1621_v17  ;;  %v1630_v43 = vld [vmem:[#allocation3 + $0x48] sm:$0xff] }
 0x2ad   :  { %2331 = vmatpush.bf16.msrb.mxu0 %v2201_v46  ;;  %v2265_v58 = vpack.c.bf16 %v2081_v48, %v2077_v47  ;;  %v1941_v59 = vcvt.s32.f32 %v1685_v49  ;;  %v1749_v61 = vunpack.c.0.s8 %v1637_v27  ;;  %v1753_v62 = vunpack.c.1.s8 %v1637_v27 }
 0x2ae   :  { %2344 = vmatpush.bf16.msrb.mxu1 %v2233_v53  ;;  %v2297_v1 = vpack.c.bf16 %v2145_v56, %v2141_v54  ;;  %v1945_v2 = vcvt.s32.f32 %v1689_v57  ;;  %v1813_v3 = vunpack.c.0.s8 %v1653_v32  ;;  %v1817_v6 = vunpack.c.1.s8 %v1653_v32  ;;  %v1646_v54 = vld [vmem:[#allocation3 + $0xc8] sm:$0xff] }
 0x2af   :  { %2357 = vmatpush.bf16.msrb.mxu2 %v2265_v58  ;;  %v2005_v60 = vcvt.s32.f32 %v1749_v61  ;;  %v2009_v8 = vcvt.s32.f32 %v1753_v62  ;;  %v1877_v9 = vunpack.c.0.s8 %v1669_v52  ;;  %v1881_v10 = vunpack.c.1.s8 %v1669_v52  ;;  %v1662_v61 = vld [vmem:[#allocation3 + $0x148] sm:$0xff] }
 0x2b0   :  { %2370 = vmatpush.bf16.msrb.mxu3 %v2297_v1  ;;  %v2197_v12 = vpack.c.bf16 %v1945_v2, %v1941_v59  ;;  %v2069_v50 = vcvt.s32.f32 %v1813_v3  ;;  %v2073_v13 = vcvt.s32.f32 %v1817_v6  ;;  %v1742_v14 = vunpack.c.2.s8 %v1634_v0  ;;  %v1678_v3 = vld [vmem:[#allocation3 + $0x1c8] sm:$0xff] }
 0x2b1   :  { %v2229_v16 = vpack.c.bf16 %v2009_v8, %v2005_v60  ;;  %v2133_v17 = vcvt.s32.f32 %v1877_v9  ;;  %v2137_v18 = vcvt.s32.f32 %v1881_v10  ;;  %v1746_v19 = vunpack.c.3.s8 %v1634_v0 }
 0x2b2   :  { %2332 = vmatpush.bf16.msrb.mxu0 %v2197_v12  ;;  %v2261_v22 = vpack.c.bf16 %v2073_v13, %v2069_v50  ;;  %v1998_v23 = vcvt.s32.f32 %v1742_v14  ;;  %v1806_v24 = vunpack.c.2.s8 %v1650_v11  ;;  %v1810_v25 = vunpack.c.3.s8 %v1650_v11 }
 0x2b3   :  { %2345 = vmatpush.bf16.msrb.mxu1 %v2229_v16  ;;  %v2293_v26 = vpack.c.bf16 %v2137_v18, %v2133_v17  ;;  %v2002_v27 = vcvt.s32.f32 %v1746_v19  ;;  %v1870_v28 = vunpack.c.2.s8 %v1666_v15  ;;  %v1874_v29 = vunpack.c.3.s8 %v1666_v15 }
 0x2b4   :  { %2358 = vmatpush.bf16.msrb.mxu2 %v2261_v22  ;;  %v2062_v30 = vcvt.s32.f32 %v1806_v24  ;;  %v2066_v31 = vcvt.s32.f32 %v1810_v25  ;;  %v1934_v32 = vunpack.c.2.s8 %v1682_v20  ;;  %v1938_v33 = vunpack.c.3.s8 %v1682_v20 }
 0x2b5   :  { %2371 = vmatpush.bf16.msrb.mxu3 %v2293_v26  ;;  %v2226_v34 = vpack.c.bf16 %v2002_v27, %v1998_v23  ;;  %v2126_v38 = vcvt.s32.f32 %v1870_v28  ;;  %v2130_v35 = vcvt.s32.f32 %v1874_v29  ;;  %v1734_v52 = vunpack.c.0.s8 %v1634_v0  ;;  %2333 = vmatmul.bf16.vlgmr.msrb.gmra.mxu0 %v5073_v21 }
 0x2b6   :  { %v2258_v36 = vpack.c.bf16 %v2066_v31, %v2062_v30  ;;  %v2190_v55 = vcvt.s32.f32 %v1934_v32  ;;  %v2194_v5 = vcvt.s32.f32 %v1938_v33  ;;  %v1738_v7 = vunpack.c.1.s8 %v1634_v0  ;;  %2346 = vmatmul.bf16.vlgmr.msrb.gmra.mxu1 %v5075_v37  ;;  %v1626_v30 = vld [vmem:[#allocation3 + $0x28] sm:$0xff] }
 0x2b7   :  { %2377 = vmatpush.bf16.msra.mxu0 %v2226_v34  ;;  %v2290_v39 = vpack.c.bf16 %v2130_v35, %v2126_v38  ;;  %2359 = vmatmul.bf16.vlgmr.msrb.gmra.mxu2 %v5077_v4  ;;  %v1990_v40 = vcvt.s32.f32 %v1734_v52  ;;  %v1798_v41 = vunpack.c.0.s8 %v1650_v11  ;;  %v1802_v42 = vunpack.c.1.s8 %v1650_v11 }
 0x2b8   :  { %2390 = vmatpush.bf16.msra.mxu1 %v2258_v36  ;;  %v2322_v63 = vpack.c.bf16 %v2194_v5, %v2190_v55  ;;  %2372 = vmatmul.bf16.vlgmr.msrb.gmra.mxu3 %v5079_v51  ;;  %v1994_v44 = vcvt.s32.f32 %v1738_v7  ;;  %v1862_v45 = vunpack.c.0.s8 %v1666_v15  ;;  %v1866_v46 = vunpack.c.1.s8 %v1666_v15  ;;  %v1642_v55 = vld [vmem:[#allocation3 + $0xa8] sm:$0xff] }
 0x2b9   :  { %2403 = vmatpush.bf16.msra.mxu2 %v2290_v39  ;;  %v2054_v47 = vcvt.s32.f32 %v1798_v41  ;;  %v2058_v48 = vcvt.s32.f32 %v1802_v42  ;;  %v1926_v49 = vunpack.c.0.s8 %v1682_v20  ;;  %v1930_v53 = vunpack.c.1.s8 %v1682_v20  ;;  %v1658_v41 = vld [vmem:[#allocation3 + $0x128] sm:$0xff] }
 0x2ba   :  { %2416 = vmatpush.bf16.msra.mxu3 %v2322_v63  ;;  %v2222_v56 = vpack.c.bf16 %v1994_v44, %v1990_v40  ;;  %v2118_v57 = vcvt.s32.f32 %v1862_v45  ;;  %v2122_v58 = vcvt.s32.f32 %v1866_v46  ;;  %v1726_v59 = vunpack.c.2.s8 %v1630_v43  ;;  %v1674_v45 = vld [vmem:[#allocation3 + $0x1a8] sm:$0xff] }
 0x2bb   :  { %v2254_v62 = vpack.c.bf16 %v2058_v48, %v2054_v47  ;;  %v2182_v0 = vcvt.s32.f32 %v1926_v49  ;;  %v2186_v1 = vcvt.s32.f32 %v1930_v53  ;;  %v1730_v2 = vunpack.c.3.s8 %v1630_v43 }
 0x2bc   :  { %2378 = vmatpush.bf16.msra.mxu0 %v2222_v56  ;;  %v2286_v6 = vpack.c.bf16 %v2122_v58, %v2118_v57  ;;  %v1982_v60 = vcvt.s32.f32 %v1726_v59  ;;  %v1790_v8 = vunpack.c.2.s8 %v1646_v54  ;;  %v1794_v9 = vunpack.c.3.s8 %v1646_v54 }
 0x2bd   :  { %2391 = vmatpush.bf16.msra.mxu1 %v2254_v62  ;;  %v2318_v10 = vpack.c.bf16 %v2186_v1, %v2182_v0  ;;  %v1986_v11 = vcvt.s32.f32 %v1730_v2  ;;  %v1854_v12 = vunpack.c.2.s8 %v1662_v61  ;;  %v1858_v50 = vunpack.c.3.s8 %v1662_v61 }
 0x2be   :  { %2404 = vmatpush.bf16.msra.mxu2 %v2286_v6  ;;  %v2046_v13 = vcvt.s32.f32 %v1790_v8  ;;  %v2050_v14 = vcvt.s32.f32 %v1794_v9  ;;  %v1918_v15 = vunpack.c.2.s8 %v1678_v3  ;;  %v1922_v16 = vunpack.c.3.s8 %v1678_v3 }
 0x2bf   :  { %2417 = vmatpush.bf16.msra.mxu3 %v2318_v10  ;;  %v2218_v17 = vpack.c.bf16 %v1986_v11, %v1982_v60  ;;  %v2110_v18 = vcvt.s32.f32 %v1854_v12  ;;  %v2114_v19 = vcvt.s32.f32 %v1858_v50  ;;  %v1718_v20 = vunpack.c.0.s8 %v1630_v43 }
 0x2c0   :  { %v2250_v22 = vpack.c.bf16 %v2050_v14, %v2046_v13  ;;  %v2174_v23 = vcvt.s32.f32 %v1918_v15  ;;  %v2178_v24 = vcvt.s32.f32 %v1922_v16  ;;  %v1722_v25 = vunpack.c.1.s8 %v1630_v43  ;;  %v1622_v13 = vld [vmem:[#allocation3 + $0x8] sm:$0xff] }
 0x2c1   :  { %2379 = vmatpush.bf16.msra.mxu0 %v2218_v17  ;;  %v2282_v26 = vpack.c.bf16 %v2114_v19, %v2110_v18  ;;  %v1974_v27 = vcvt.s32.f32 %v1718_v20  ;;  %v1782_v28 = vunpack.c.0.s8 %v1646_v54  ;;  %v1786_v29 = vunpack.c.1.s8 %v1646_v54 }
 0x2c2   :  { %2392 = vmatpush.bf16.msra.mxu1 %v2250_v22  ;;  %v2314_v31 = vpack.c.bf16 %v2178_v24, %v2174_v23  ;;  %v1978_v32 = vcvt.s32.f32 %v1722_v25  ;;  %v1846_v33 = vunpack.c.0.s8 %v1662_v61  ;;  %v1850_v34 = vunpack.c.1.s8 %v1662_v61  ;;  %v1638_v23 = vld [vmem:[#allocation3 + $0x88] sm:$0xff] }
 0x2c3   :  { %2405 = vmatpush.bf16.msra.mxu2 %v2282_v26  ;;  %v2038_v38 = vcvt.s32.f32 %v1782_v28  ;;  %v2042_v35 = vcvt.s32.f32 %v1786_v29  ;;  %v1910_v52 = vunpack.c.0.s8 %v1678_v3  ;;  %v1914_v36 = vunpack.c.1.s8 %v1678_v3  ;;  %v1654_v28 = vld [vmem:[#allocation3 + $0x108] sm:$0xff] }
 0x2c4   :  { %2418 = vmatpush.bf16.msra.mxu3 %v2314_v31  ;;  %v2214_v5 = vpack.c.bf16 %v1978_v32, %v1974_v27  ;;  %v2102_v7 = vcvt.s32.f32 %v1846_v33  ;;  %v2106_v39 = vcvt.s32.f32 %v1850_v34  ;;  %v1710_v40 = vunpack.c.2.s8 %v1626_v30  ;;  %v1670_v33 = vld [vmem:[#allocation3 + $0x188] sm:$0xff] }
 0x2c5   :  { %v2246_v42 = vpack.c.bf16 %v2042_v35, %v2038_v38  ;;  %v2166_v43 = vcvt.s32.f32 %v1910_v52  ;;  %v2170_v63 = vcvt.s32.f32 %v1914_v36  ;;  %v1714_v44 = vunpack.c.3.s8 %v1626_v30 }
 0x2c6   :  { %2380 = vmatpush.bf16.msra.mxu0 %v2214_v5  ;;  %v2278_v46 = vpack.c.bf16 %v2106_v39, %v2102_v7  ;;  %v1966_v47 = vcvt.s32.f32 %v1710_v40  ;;  %v1774_v48 = vunpack.c.2.s8 %v1642_v55  ;;  %v1778_v49 = vunpack.c.3.s8 %v1642_v55 }
 0x2c7   :  { %2393 = vmatpush.bf16.msra.mxu1 %v2246_v42  ;;  %v2310_v53 = vpack.c.bf16 %v2170_v63, %v2166_v43  ;;  %v1970_v54 = vcvt.s32.f32 %v1714_v44  ;;  %v1838_v56 = vunpack.c.2.s8 %v1658_v41  ;;  %v1842_v57 = vunpack.c.3.s8 %v1658_v41 }
 0x2c8   :  { %2406 = vmatpush.bf16.msra.mxu2 %v2278_v46  ;;  %v2030_v58 = vcvt.s32.f32 %v1774_v48  ;;  %v2034_v59 = vcvt.s32.f32 %v1778_v49  ;;  %v1902_v61 = vunpack.c.2.s8 %v1674_v45  ;;  %v1906_v62 = vunpack.c.3.s8 %v1674_v45 }
 0x2c9   :  { %2419 = vmatpush.bf16.msra.mxu3 %v2310_v53  ;;  %v2210_v0 = vpack.c.bf16 %v1970_v54, %v1966_v47  ;;  %v2094_v1 = vcvt.s32.f32 %v1838_v56  ;;  %v2098_v2 = vcvt.s32.f32 %v1842_v57  ;;  %v1702_v3 = vunpack.c.0.s8 %v1626_v30 }
 0x2ca   :  { %v2242_v6 = vpack.c.bf16 %v2034_v59, %v2030_v58  ;;  %v2158_v60 = vcvt.s32.f32 %v1902_v61  ;;  %v2162_v8 = vcvt.s32.f32 %v1906_v62  ;;  %v1706_v9 = vunpack.c.1.s8 %v1626_v30  ;;  %v1635_v58 = vld [vmem:[#allocation3 + $0x70] sm:$0xff] }
 0x2cb   :  { %2381 = vmatpush.bf16.msra.mxu0 %v2210_v0  ;;  %v2274_v10 = vpack.c.bf16 %v2098_v2, %v2094_v1  ;;  %v1958_v11 = vcvt.s32.f32 %v1702_v3  ;;  %v1766_v12 = vunpack.c.0.s8 %v1642_v55  ;;  %v1770_v50 = vunpack.c.1.s8 %v1642_v55 }
 0x2cc   :  { %2394 = vmatpush.bf16.msra.mxu1 %v2242_v6  ;;  %v2306_v14 = vpack.c.bf16 %v2162_v8, %v2158_v60  ;;  %v1962_v15 = vcvt.s32.f32 %v1706_v9  ;;  %v1830_v16 = vunpack.c.0.s8 %v1658_v41  ;;  %v1834_v17 = vunpack.c.1.s8 %v1658_v41  ;;  %v1651_v60 = vld [vmem:[#allocation3 + $0xf0] sm:$0xff] }
 0x2cd   :  { %2407 = vmatpush.bf16.msra.mxu2 %v2274_v10  ;;  %v2022_v18 = vcvt.s32.f32 %v1766_v12  ;;  %v2026_v19 = vcvt.s32.f32 %v1770_v50  ;;  %v1894_v20 = vunpack.c.0.s8 %v1674_v45  ;;  %v1898_v22 = vunpack.c.1.s8 %v1674_v45  ;;  %v1667_v12 = vld [vmem:[#allocation3 + $0x170] sm:$0xff] }
 0x2ce   :  { %2420 = vmatpush.bf16.msra.mxu3 %v2306_v14  ;;  %v2206_v24 = vpack.c.bf16 %v1962_v15, %v1958_v11  ;;  %v2086_v25 = vcvt.s32.f32 %v1830_v16  ;;  %v2090_v26 = vcvt.s32.f32 %v1834_v17  ;;  %v1694_v27 = vunpack.c.2.s8 %v1622_v13  ;;  %v1683_v16 = vld [vmem:[#allocation3 + $0x1f0] sm:$0xff] }
 0x2cf   :  { %v2238_v29 = vpack.c.bf16 %v2026_v19, %v2022_v18  ;;  %v2150_v30 = vcvt.s32.f32 %v1894_v20  ;;  %v2154_v31 = vcvt.s32.f32 %v1898_v22  ;;  %v1698_v32 = vunpack.c.3.s8 %v1622_v13 }
 0x2d0   :  { %2382 = vmatpush.bf16.msra.mxu0 %v2206_v24  ;;  %v2270_v34 = vpack.c.bf16 %v2090_v26, %v2086_v25  ;;  %v1950_v38 = vcvt.s32.f32 %v1694_v27  ;;  %v1758_v35 = vunpack.c.2.s8 %v1638_v23  ;;  %v1762_v52 = vunpack.c.3.s8 %v1638_v23 }
 0x2d1   :  { %2395 = vmatpush.bf16.msra.mxu1 %v2238_v29  ;;  %v2302_v36 = vpack.c.bf16 %v2154_v31, %v2150_v30  ;;  %v1954_v55 = vcvt.s32.f32 %v1698_v32  ;;  %v1822_v5 = vunpack.c.2.s8 %v1654_v28  ;;  %v1826_v7 = vunpack.c.3.s8 %v1654_v28 }
 0x2d2   :  { %2408 = vmatpush.bf16.msra.mxu2 %v2270_v34  ;;  %v2014_v39 = vcvt.s32.f32 %v1758_v35  ;;  %v2018_v40 = vcvt.s32.f32 %v1762_v52  ;;  %v1886_v41 = vunpack.c.2.s8 %v1670_v33  ;;  %v1890_v42 = vunpack.c.3.s8 %v1670_v33 }
 0x2d3   :  { %2421 = vmatpush.bf16.msra.mxu3 %v2302_v36  ;;  %v2202_v43 = vpack.c.bf16 %v1954_v55, %v1950_v38  ;;  %v2078_v63 = vcvt.s32.f32 %v1822_v5  ;;  %v2082_v44 = vcvt.s32.f32 %v1826_v7  ;;  %v1686_v45 = vunpack.c.0.s8 %v1622_v13 }
 0x2d4   :  { %v2234_v46 = vpack.c.bf16 %v2018_v40, %v2014_v39  ;;  %v2142_v47 = vcvt.s32.f32 %v1886_v41  ;;  %v2146_v48 = vcvt.s32.f32 %v1890_v42  ;;  %v1690_v49 = vunpack.c.1.s8 %v1622_v13  ;;  %v1631_v39 = vld [vmem:[#allocation3 + $0x50] sm:$0xff] }
 0x2d5   :  { %2383 = vmatpush.bf16.msra.mxu0 %v2202_v43  ;;  %v2266_v53 = vpack.c.bf16 %v2082_v44, %v2078_v63  ;;  %v1942_v54 = vcvt.s32.f32 %v1686_v45  ;;  %v1750_v56 = vunpack.c.0.s8 %v1638_v23  ;;  %v1754_v57 = vunpack.c.1.s8 %v1638_v23 }
 0x2d6   :  { %2396 = vmatpush.bf16.msra.mxu1 %v2234_v46  ;;  %v2298_v59 = vpack.c.bf16 %v2146_v48, %v2142_v47  ;;  %v1946_v61 = vcvt.s32.f32 %v1690_v49  ;;  %v1814_v62 = vunpack.c.0.s8 %v1654_v28  ;;  %v1818_v0 = vunpack.c.1.s8 %v1654_v28  ;;  %v1647_v47 = vld [vmem:[#allocation3 + $0xd0] sm:$0xff] }
 0x2d7   :  { %2409 = vmatpush.bf16.msra.mxu2 %v2266_v53  ;;  %v2006_v1 = vcvt.s32.f32 %v1750_v56  ;;  %v2010_v2 = vcvt.s32.f32 %v1754_v57  ;;  %v1878_v3 = vunpack.c.0.s8 %v1670_v33  ;;  %v1882_v6 = vunpack.c.1.s8 %v1670_v33  ;;  %v1663_v56 = vld [vmem:[#allocation3 + $0x150] sm:$0xff] }
 0x2d8   :  { %2422 = vmatpush.bf16.msra.mxu3 %v2298_v59  ;;  %v2198_v8 = vpack.c.bf16 %v1946_v61, %v1942_v54  ;;  %v2070_v9 = vcvt.s32.f32 %v1814_v62  ;;  %v2074_v10 = vcvt.s32.f32 %v1818_v0  ;;  %v1743_v11 = vunpack.c.2.s8 %v1635_v58  ;;  %v1679_v62 = vld [vmem:[#allocation3 + $0x1d0] sm:$0xff] }
 0x2d9   :  { %v2230_v50 = vpack.c.bf16 %v2010_v2, %v2006_v1  ;;  %v2134_v13 = vcvt.s32.f32 %v1878_v3  ;;  %v2138_v14 = vcvt.s32.f32 %v1882_v6  ;;  %v1747_v15 = vunpack.c.3.s8 %v1635_v58 }
 0x2da   :  { %2384 = vmatpush.bf16.msra.mxu0 %v2198_v8  ;;  %v2262_v17 = vpack.c.bf16 %v2074_v10, %v2070_v9  ;;  %v1999_v18 = vcvt.s32.f32 %v1743_v11  ;;  %v1807_v19 = vunpack.c.2.s8 %v1651_v60  ;;  %v1811_v20 = vunpack.c.3.s8 %v1651_v60 }
 0x2db   :  { %2397 = vmatpush.bf16.msra.mxu1 %v2230_v50  ;;  %v2294_v22 = vpack.c.bf16 %v2138_v14, %v2134_v13  ;;  %v2003_v23 = vcvt.s32.f32 %v1747_v15  ;;  %v1871_v24 = vunpack.c.2.s8 %v1667_v12  ;;  %v1875_v25 = vunpack.c.3.s8 %v1667_v12 }
 0x2dc   :  { %2410 = vmatpush.bf16.msra.mxu2 %v2262_v17  ;;  %v2063_v26 = vcvt.s32.f32 %v1807_v19  ;;  %v2067_v27 = vcvt.s32.f32 %v1811_v20  ;;  %v1935_v28 = vunpack.c.2.s8 %v1683_v16  ;;  %v1939_v29 = vunpack.c.3.s8 %v1683_v16 }
 0x2dd   :  { %2423 = vmatpush.bf16.msra.mxu3 %v2294_v22  ;;  %v2227_v30 = vpack.c.bf16 %v2003_v23, %v1999_v18  ;;  %v2127_v31 = vcvt.s32.f32 %v1871_v24  ;;  %v2131_v32 = vcvt.s32.f32 %v1875_v25  ;;  %v1735_v33 = vunpack.c.0.s8 %v1635_v58  ;;  %2385 = vmatmul.bf16.vlgmr.msra.gmra.mxu0 %v5073_v21 }
 0x2de   :  { %v2259_v34 = vpack.c.bf16 %v2067_v27, %v2063_v26  ;;  %v2191_v38 = vcvt.s32.f32 %v1935_v28  ;;  %v2195_v35 = vcvt.s32.f32 %v1939_v29  ;;  %v1739_v52 = vunpack.c.1.s8 %v1635_v58  ;;  %2398 = vmatmul.bf16.vlgmr.msra.gmra.mxu1 %v5075_v37  ;;  %v1627_v26 = vld [vmem:[#allocation3 + $0x30] sm:$0xff] }
 0x2df   :  { %2429 = vmatpush.bf16.msrb.mxu0 %v2227_v30  ;;  %v2291_v36 = vpack.c.bf16 %v2131_v32, %v2127_v31  ;;  %2411 = vmatmul.bf16.vlgmr.msra.gmra.mxu2 %v5077_v4  ;;  %v1991_v55 = vcvt.s32.f32 %v1735_v33  ;;  %v1799_v5 = vunpack.c.0.s8 %v1651_v60  ;;  %v1803_v7 = vunpack.c.1.s8 %v1651_v60 }
 0x2e0   :  { %2442 = vmatpush.bf16.msrb.mxu1 %v2259_v34  ;;  %v2323_v40 = vpack.c.bf16 %v2195_v35, %v2191_v38  ;;  %2424 = vmatmul.bf16.vlgmr.msra.gmra.mxu3 %v5079_v51  ;;  %v1995_v41 = vcvt.s32.f32 %v1739_v52  ;;  %v1863_v42 = vunpack.c.0.s8 %v1667_v12  ;;  %v1867_v43 = vunpack.c.1.s8 %v1667_v12  ;;  %v1643_v38 = vld [vmem:[#allocation3 + $0xb0] sm:$0xff] }
 0x2e1   :  { %2455 = vmatpush.bf16.msrb.mxu2 %v2291_v36  ;;  %v2055_v63 = vcvt.s32.f32 %v1799_v5  ;;  %v2059_v44 = vcvt.s32.f32 %v1803_v7  ;;  %v1927_v45 = vunpack.c.0.s8 %v1683_v16  ;;  %v1931_v46 = vunpack.c.1.s8 %v1683_v16  ;;  %v1659_v5 = vld [vmem:[#allocation3 + $0x130] sm:$0xff] }
 0x2e2   :  { %2468 = vmatpush.bf16.msrb.mxu3 %v2323_v40  ;;  %v2223_v48 = vpack.c.bf16 %v1995_v41, %v1991_v55  ;;  %v2119_v49 = vcvt.s32.f32 %v1863_v42  ;;  %v2123_v53 = vcvt.s32.f32 %v1867_v43  ;;  %v1727_v54 = vunpack.c.2.s8 %v1631_v39  ;;  %v1675_v42 = vld [vmem:[#allocation3 + $0x1b0] sm:$0xff] }
 0x2e3   :  { %v2255_v57 = vpack.c.bf16 %v2059_v44, %v2055_v63  ;;  %v2183_v58 = vcvt.s32.f32 %v1927_v45  ;;  %v2187_v59 = vcvt.s32.f32 %v1931_v46  ;;  %v1731_v61 = vunpack.c.3.s8 %v1631_v39 }
 0x2e4   :  { %2430 = vmatpush.bf16.msrb.mxu0 %v2223_v48  ;;  %v2287_v0 = vpack.c.bf16 %v2123_v53, %v2119_v49  ;;  %v1983_v1 = vcvt.s32.f32 %v1727_v54  ;;  %v1791_v2 = vunpack.c.2.s8 %v1647_v47  ;;  %v1795_v3 = vunpack.c.3.s8 %v1647_v47 }
 0x2e5   :  { %2443 = vmatpush.bf16.msrb.mxu1 %v2255_v57  ;;  %v2319_v6 = vpack.c.bf16 %v2187_v59, %v2183_v58  ;;  %v1987_v60 = vcvt.s32.f32 %v1731_v61  ;;  %v1855_v8 = vunpack.c.2.s8 %v1663_v56  ;;  %v1859_v9 = vunpack.c.3.s8 %v1663_v56 }
 0x2e6   :  { %2456 = vmatpush.bf16.msrb.mxu2 %v2287_v0  ;;  %v2047_v10 = vcvt.s32.f32 %v1791_v2  ;;  %v2051_v11 = vcvt.s32.f32 %v1795_v3  ;;  %v1919_v12 = vunpack.c.2.s8 %v1679_v62  ;;  %v1923_v50 = vunpack.c.3.s8 %v1679_v62 }
 0x2e7   :  { %2469 = vmatpush.bf16.msrb.mxu3 %v2319_v6  ;;  %v2219_v13 = vpack.c.bf16 %v1987_v60, %v1983_v1  ;;  %v2111_v14 = vcvt.s32.f32 %v1855_v8  ;;  %v2115_v15 = vcvt.s32.f32 %v1859_v9  ;;  %v1719_v16 = vunpack.c.0.s8 %v1631_v39 }
 0x2e8   :  { %v2251_v17 = vpack.c.bf16 %v2051_v11, %v2047_v10  ;;  %v2175_v18 = vcvt.s32.f32 %v1919_v12  ;;  %v2179_v19 = vcvt.s32.f32 %v1923_v50  ;;  %v1723_v20 = vunpack.c.1.s8 %v1631_v39  ;;  %v1623_v10 = vld [vmem:[#allocation3 + $0x10] sm:$0xff] }
 0x2e9   :  { %2431 = vmatpush.bf16.msrb.mxu0 %v2219_v13  ;;  %v2283_v22 = vpack.c.bf16 %v2115_v15, %v2111_v14  ;;  %v1975_v23 = vcvt.s32.f32 %v1719_v16  ;;  %v1783_v24 = vunpack.c.0.s8 %v1647_v47  ;;  %v1787_v25 = vunpack.c.1.s8 %v1647_v47 }
 0x2ea   :  { %2444 = vmatpush.bf16.msrb.mxu1 %v2251_v17  ;;  %v2315_v27 = vpack.c.bf16 %v2179_v19, %v2175_v18  ;;  %v1979_v28 = vcvt.s32.f32 %v1723_v20  ;;  %v1847_v29 = vunpack.c.0.s8 %v1663_v56  ;;  %v1851_v30 = vunpack.c.1.s8 %v1663_v56  ;;  %v1639_v18 = vld [vmem:[#allocation3 + $0x90] sm:$0xff] }
 0x2eb   :  { %2457 = vmatpush.bf16.msrb.mxu2 %v2283_v22  ;;  %v2039_v31 = vcvt.s32.f32 %v1783_v24  ;;  %v2043_v32 = vcvt.s32.f32 %v1787_v25  ;;  %v1911_v33 = vunpack.c.0.s8 %v1679_v62  ;;  %v1915_v34 = vunpack.c.1.s8 %v1679_v62  ;;  %v1655_v24 = vld [vmem:[#allocation3 + $0x110] sm:$0xff] }
 0x2ec   :  { %2470 = vmatpush.bf16.msrb.mxu3 %v2315_v27  ;;  %v2215_v35 = vpack.c.bf16 %v1979_v28, %v1975_v23  ;;  %v2103_v52 = vcvt.s32.f32 %v1847_v29  ;;  %v2107_v36 = vcvt.s32.f32 %v1851_v30  ;;  %v1711_v55 = vunpack.c.2.s8 %v1627_v26  ;;  %v1671_v29 = vld [vmem:[#allocation3 + $0x190] sm:$0xff] }
 0x2ed   :  { %v2247_v7 = vpack.c.bf16 %v2043_v32, %v2039_v31  ;;  %v2167_v39 = vcvt.s32.f32 %v1911_v33  ;;  %v2171_v40 = vcvt.s32.f32 %v1915_v34  ;;  %v1715_v41 = vunpack.c.3.s8 %v1627_v26 }
 0x2ee   :  { %2432 = vmatpush.bf16.msrb.mxu0 %v2215_v35  ;;  %v2279_v43 = vpack.c.bf16 %v2107_v36, %v2103_v52  ;;  %v1967_v63 = vcvt.s32.f32 %v1711_v55  ;;  %v1775_v44 = vunpack.c.2.s8 %v1643_v38  ;;  %v1779_v45 = vunpack.c.3.s8 %v1643_v38 }
 0x2ef   :  { %2445 = vmatpush.bf16.msrb.mxu1 %v2247_v7  ;;  %v2311_v46 = vpack.c.bf16 %v2171_v40, %v2167_v39  ;;  %v1971_v47 = vcvt.s32.f32 %v1715_v41  ;;  %v1839_v48 = vunpack.c.2.s8 %v1659_v5  ;;  %v1843_v49 = vunpack.c.3.s8 %v1659_v5 }
 0x2f0   :  { %2458 = vmatpush.bf16.msrb.mxu2 %v2279_v43  ;;  %v2031_v53 = vcvt.s32.f32 %v1775_v44  ;;  %v2035_v54 = vcvt.s32.f32 %v1779_v45  ;;  %v1903_v56 = vunpack.c.2.s8 %v1675_v42  ;;  %v1907_v57 = vunpack.c.3.s8 %v1675_v42 }
 0x2f1   :  { %2471 = vmatpush.bf16.msrb.mxu3 %v2311_v46  ;;  %v2211_v58 = vpack.c.bf16 %v1971_v47, %v1967_v63  ;;  %v2095_v59 = vcvt.s32.f32 %v1839_v48  ;;  %v2099_v61 = vcvt.s32.f32 %v1843_v49  ;;  %v1703_v62 = vunpack.c.0.s8 %v1627_v26 }
 0x2f2   :  { %v2243_v0 = vpack.c.bf16 %v2035_v54, %v2031_v53  ;;  %v2159_v1 = vcvt.s32.f32 %v1903_v56  ;;  %v2163_v2 = vcvt.s32.f32 %v1907_v57  ;;  %v1707_v3 = vunpack.c.1.s8 %v1627_v26  ;;  %v1636_v53 = vld [vmem:[#allocation3 + $0x78] sm:$0xff] }
 0x2f3   :  { %2433 = vmatpush.bf16.msrb.mxu0 %v2211_v58  ;;  %v2275_v6 = vpack.c.bf16 %v2099_v61, %v2095_v59  ;;  %v1959_v60 = vcvt.s32.f32 %v1703_v62  ;;  %v1767_v8 = vunpack.c.0.s8 %v1643_v38  ;;  %v1771_v9 = vunpack.c.1.s8 %v1643_v38 }
 0x2f4   :  { %2446 = vmatpush.bf16.msrb.mxu1 %v2243_v0  ;;  %v2307_v11 = vpack.c.bf16 %v2163_v2, %v2159_v1  ;;  %v1963_v12 = vcvt.s32.f32 %v1707_v3  ;;  %v1831_v50 = vunpack.c.0.s8 %v1659_v5  ;;  %v1835_v13 = vunpack.c.1.s8 %v1659_v5  ;;  %v1652_v1 = vld [vmem:[#allocation3 + $0xf8] sm:$0xff] }
 0x2f5   :  { %2459 = vmatpush.bf16.msrb.mxu2 %v2275_v6  ;;  %v2023_v14 = vcvt.s32.f32 %v1767_v8  ;;  %v2027_v15 = vcvt.s32.f32 %v1771_v9  ;;  %v1895_v16 = vunpack.c.0.s8 %v1675_v42  ;;  %v1899_v17 = vunpack.c.1.s8 %v1675_v42  ;;  %v1668_v8 = vld [vmem:[#allocation3 + $0x178] sm:$0xff] }
 0x2f6   :  { %2472 = vmatpush.bf16.msrb.mxu3 %v2307_v11  ;;  %v2207_v19 = vpack.c.bf16 %v1963_v12, %v1959_v60  ;;  %v2087_v20 = vcvt.s32.f32 %v1831_v50  ;;  %v2091_v22 = vcvt.s32.f32 %v1835_v13  ;;  %v1695_v23 = vunpack.c.2.s8 %v1623_v10  ;;  %v1684_v50 = vld [vmem:[#allocation3 + $0x1f8] sm:$0xff] }
 0x2f7   :  { %v2239_v25 = vpack.c.bf16 %v2027_v15, %v2023_v14  ;;  %v2151_v26 = vcvt.s32.f32 %v1895_v16  ;;  %v2155_v27 = vcvt.s32.f32 %v1899_v17  ;;  %v1699_v28 = vunpack.c.3.s8 %v1623_v10 }
 0x2f8   :  { %2434 = vmatpush.bf16.msrb.mxu0 %v2207_v19  ;;  %v2271_v30 = vpack.c.bf16 %v2091_v22, %v2087_v20  ;;  %v1951_v31 = vcvt.s32.f32 %v1695_v23  ;;  %v1759_v32 = vunpack.c.2.s8 %v1639_v18  ;;  %v1763_v33 = vunpack.c.3.s8 %v1639_v18 }
 0x2f9   :  { %2447 = vmatpush.bf16.msrb.mxu1 %v2239_v25  ;;  %v2303_v34 = vpack.c.bf16 %v2155_v27, %v2151_v26  ;;  %v1955_v38 = vcvt.s32.f32 %v1699_v28  ;;  %v1823_v35 = vunpack.c.2.s8 %v1655_v24  ;;  %v1827_v52 = vunpack.c.3.s8 %v1655_v24 }
 0x2fa   :  { %2460 = vmatpush.bf16.msrb.mxu2 %v2271_v30  ;;  %v2015_v36 = vcvt.s32.f32 %v1759_v32  ;;  %v2019_v55 = vcvt.s32.f32 %v1763_v33  ;;  %v1887_v5 = vunpack.c.2.s8 %v1671_v29  ;;  %v1891_v7 = vunpack.c.3.s8 %v1671_v29 }
 0x2fb   :  { %2473 = vmatpush.bf16.msrb.mxu3 %v2303_v34  ;;  %v2203_v39 = vpack.c.bf16 %v1955_v38, %v1951_v31  ;;  %v2079_v40 = vcvt.s32.f32 %v1823_v35  ;;  %v2083_v41 = vcvt.s32.f32 %v1827_v52  ;;  %v1687_v42 = vunpack.c.0.s8 %v1623_v10 }
 0x2fc   :  { %v2235_v43 = vpack.c.bf16 %v2019_v55, %v2015_v36  ;;  %v2143_v63 = vcvt.s32.f32 %v1887_v5  ;;  %v2147_v44 = vcvt.s32.f32 %v1891_v7  ;;  %v1691_v45 = vunpack.c.1.s8 %v1623_v10  ;;  %v1632_v36 = vld [vmem:[#allocation3 + $0x58] sm:$0xff] }
 0x2fd   :  { %2435 = vmatpush.bf16.msrb.mxu0 %v2203_v39  ;;  %v2267_v46 = vpack.c.bf16 %v2083_v41, %v2079_v40  ;;  %v1943_v47 = vcvt.s32.f32 %v1687_v42  ;;  %v1751_v48 = vunpack.c.0.s8 %v1639_v18  ;;  %v1755_v49 = vunpack.c.1.s8 %v1639_v18 }
 0x2fe   :  { %2448 = vmatpush.bf16.msrb.mxu1 %v2235_v43  ;;  %v2299_v54 = vpack.c.bf16 %v2147_v44, %v2143_v63  ;;  %v1947_v56 = vcvt.s32.f32 %v1691_v45  ;;  %v1815_v57 = vunpack.c.0.s8 %v1655_v24  ;;  %v1819_v58 = vunpack.c.1.s8 %v1655_v24  ;;  %v1648_v63 = vld [vmem:[#allocation3 + $0xd8] sm:$0xff] }
 0x2ff   :  { %2461 = vmatpush.bf16.msrb.mxu2 %v2267_v46  ;;  %v2007_v59 = vcvt.s32.f32 %v1751_v48  ;;  %v2011_v61 = vcvt.s32.f32 %v1755_v49  ;;  %v1879_v62 = vunpack.c.0.s8 %v1671_v29  ;;  %v1883_v0 = vunpack.c.1.s8 %v1671_v29  ;;  %v1664_v48 = vld [vmem:[#allocation3 + $0x158] sm:$0xff] }
 0x300   :  { %2474 = vmatpush.bf16.msrb.mxu3 %v2299_v54  ;;  %v2199_v2 = vpack.c.bf16 %v1947_v56, %v1943_v47  ;;  %v2071_v3 = vcvt.s32.f32 %v1815_v57  ;;  %v2075_v6 = vcvt.s32.f32 %v1819_v58  ;;  %v1744_v60 = vunpack.c.2.s8 %v1636_v53  ;;  %v1680_v57 = vld [vmem:[#allocation3 + $0x1d8] sm:$0xff] }
 0x301   :  { %v2231_v9 = vpack.c.bf16 %v2011_v61, %v2007_v59  ;;  %v2135_v10 = vcvt.s32.f32 %v1879_v62  ;;  %v2139_v11 = vcvt.s32.f32 %v1883_v0  ;;  %v1748_v12 = vunpack.c.3.s8 %v1636_v53 }
 0x302   :  { %2436 = vmatpush.bf16.msrb.mxu0 %v2199_v2  ;;  %v2263_v13 = vpack.c.bf16 %v2075_v6, %v2071_v3  ;;  %v2000_v14 = vcvt.s32.f32 %v1744_v60  ;;  %v1808_v15 = vunpack.c.2.s8 %v1652_v1  ;;  %v1812_v16 = vunpack.c.3.s8 %v1652_v1 }
 0x303   :  { %2449 = vmatpush.bf16.msrb.mxu1 %v2231_v9  ;;  %v2295_v17 = vpack.c.bf16 %v2139_v11, %v2135_v10  ;;  %v2004_v18 = vcvt.s32.f32 %v1748_v12  ;;  %v1872_v19 = vunpack.c.2.s8 %v1668_v8  ;;  %v1876_v20 = vunpack.c.3.s8 %v1668_v8 }
 0x304   :  { %2462 = vmatpush.bf16.msrb.mxu2 %v2263_v13  ;;  %v2064_v22 = vcvt.s32.f32 %v1808_v15  ;;  %v2068_v23 = vcvt.s32.f32 %v1812_v16  ;;  %v1936_v24 = vunpack.c.2.s8 %v1684_v50  ;;  %v1940_v25 = vunpack.c.3.s8 %v1684_v50 }
 0x305   :  { %2475 = vmatpush.bf16.msrb.mxu3 %v2295_v17  ;;  %v2228_v26 = vpack.c.bf16 %v2004_v18, %v2000_v14  ;;  %v2128_v27 = vcvt.s32.f32 %v1872_v19  ;;  %v2132_v28 = vcvt.s32.f32 %v1876_v20  ;;  %v1736_v29 = vunpack.c.0.s8 %v1636_v53  ;;  %2437 = vmatmul.bf16.vlgmr.msrb.gmra.mxu0 %v5073_v21 }
 0x306   :  { %v2260_v30 = vpack.c.bf16 %v2068_v23, %v2064_v22  ;;  %v2192_v31 = vcvt.s32.f32 %v1936_v24  ;;  %v2196_v32 = vcvt.s32.f32 %v1940_v25  ;;  %v1740_v33 = vunpack.c.1.s8 %v1636_v53  ;;  %2450 = vmatmul.bf16.vlgmr.msrb.gmra.mxu1 %v5075_v37  ;;  %v1628_v22 = vld [vmem:[#allocation3 + $0x38] sm:$0xff] }
 0x307   :  { %2481 = vmatpush.bf16.msra.mxu0 %v2228_v26  ;;  %v2292_v34 = vpack.c.bf16 %v2132_v28, %v2128_v27  ;;  %2463 = vmatmul.bf16.vlgmr.msrb.gmra.mxu2 %v5077_v4  ;;  %v1992_v38 = vcvt.s32.f32 %v1736_v29  ;;  %v1800_v35 = vunpack.c.0.s8 %v1652_v1  ;;  %v1804_v52 = vunpack.c.1.s8 %v1652_v1 }
 0x308   :  { %2494 = vmatpush.bf16.msra.mxu1 %v2260_v30  ;;  %v2324_v55 = vpack.c.bf16 %v2196_v32, %v2192_v31  ;;  %2476 = vmatmul.bf16.vlgmr.msrb.gmra.mxu3 %v5079_v51  ;;  %v1996_v5 = vcvt.s32.f32 %v1740_v33  ;;  %v1864_v7 = vunpack.c.0.s8 %v1668_v8  ;;  %v1868_v39 = vunpack.c.1.s8 %v1668_v8  ;;  %v1644_v31 = vld [vmem:[#allocation3 + $0xb8] sm:$0xff] }
 0x309   :  { %2507 = vmatpush.bf16.msra.mxu2 %v2292_v34  ;;  %v2056_v40 = vcvt.s32.f32 %v1800_v35  ;;  %v2060_v41 = vcvt.s32.f32 %v1804_v52  ;;  %v1928_v42 = vunpack.c.0.s8 %v1684_v50  ;;  %v1932_v43 = vunpack.c.1.s8 %v1684_v50  ;;  %v1660_v35 = vld [vmem:[#allocation3 + $0x138] sm:$0xff] }
 0x30a   :  { %2520 = vmatpush.bf16.msra.mxu3 %v2324_v55  ;;  %v2224_v44 = vpack.c.bf16 %v1996_v5, %v1992_v38  ;;  %v2120_v45 = vcvt.s32.f32 %v1864_v7  ;;  %v2124_v46 = vcvt.s32.f32 %v1868_v39  ;;  %v1728_v47 = vunpack.c.2.s8 %v1632_v36  ;;  %v1676_v7 = vld [vmem:[#allocation3 + $0x1b8] sm:$0xff] }
 0x30b   :  { %v2256_v49 = vpack.c.bf16 %v2060_v41, %v2056_v40  ;;  %v2184_v53 = vcvt.s32.f32 %v1928_v42  ;;  %v2188_v54 = vcvt.s32.f32 %v1932_v43  ;;  %v1732_v56 = vunpack.c.3.s8 %v1632_v36 }
 0x30c   :  { %2482 = vmatpush.bf16.msra.mxu0 %v2224_v44  ;;  %v2288_v58 = vpack.c.bf16 %v2124_v46, %v2120_v45  ;;  %v1984_v59 = vcvt.s32.f32 %v1728_v47  ;;  %v1792_v61 = vunpack.c.2.s8 %v1648_v63  ;;  %v1796_v62 = vunpack.c.3.s8 %v1648_v63 }
 0x30d   :  { %2495 = vmatpush.bf16.msra.mxu1 %v2256_v49  ;;  %v2320_v0 = vpack.c.bf16 %v2188_v54, %v2184_v53  ;;  %v1988_v1 = vcvt.s32.f32 %v1732_v56  ;;  %v1856_v2 = vunpack.c.2.s8 %v1664_v48  ;;  %v1860_v3 = vunpack.c.3.s8 %v1664_v48 }
 0x30e   :  { %2508 = vmatpush.bf16.msra.mxu2 %v2288_v58  ;;  %v2048_v6 = vcvt.s32.f32 %v1792_v61  ;;  %v2052_v60 = vcvt.s32.f32 %v1796_v62  ;;  %v1920_v8 = vunpack.c.2.s8 %v1680_v57  ;;  %v1924_v9 = vunpack.c.3.s8 %v1680_v57 }
 0x30f   :  { %2521 = vmatpush.bf16.msra.mxu3 %v2320_v0  ;;  %v2220_v10 = vpack.c.bf16 %v1988_v1, %v1984_v59  ;;  %v2112_v11 = vcvt.s32.f32 %v1856_v2  ;;  %v2116_v12 = vcvt.s32.f32 %v1860_v3  ;;  %v1720_v50 = vunpack.c.0.s8 %v1632_v36 }
 0x310   :  { %v2252_v13 = vpack.c.bf16 %v2052_v60, %v2048_v6  ;;  %v2176_v14 = vcvt.s32.f32 %v1920_v8  ;;  %v2180_v15 = vcvt.s32.f32 %v1924_v9  ;;  %v1724_v16 = vunpack.c.1.s8 %v1632_v36  ;;  %v1624_v6 = vld [vmem:[#allocation3 + $0x18] sm:$0xff] }
 0x311   :  { %2483 = vmatpush.bf16.msra.mxu0 %v2220_v10  ;;  %v2284_v17 = vpack.c.bf16 %v2116_v12, %v2112_v11  ;;  %v1976_v18 = vcvt.s32.f32 %v1720_v50  ;;  %v1784_v19 = vunpack.c.0.s8 %v1648_v63  ;;  %v1788_v20 = vunpack.c.1.s8 %v1648_v63 }
 0x312   :  { %2496 = vmatpush.bf16.msra.mxu1 %v2252_v13  ;;  %v2316_v23 = vpack.c.bf16 %v2180_v15, %v2176_v14  ;;  %v1980_v24 = vcvt.s32.f32 %v1724_v16  ;;  %v1848_v25 = vunpack.c.0.s8 %v1664_v48  ;;  %v1852_v26 = vunpack.c.1.s8 %v1664_v48  ;;  %v1640_v14 = vld [vmem:[#allocation3 + $0x98] sm:$0xff] }
 0x313   :  { %2509 = vmatpush.bf16.msra.mxu2 %v2284_v17  ;;  %v2040_v27 = vcvt.s32.f32 %v1784_v19  ;;  %v2044_v28 = vcvt.s32.f32 %v1788_v20  ;;  %v1912_v29 = vunpack.c.0.s8 %v1680_v57  ;;  %v1916_v30 = vunpack.c.1.s8 %v1680_v57  ;;  %v1656_v19 = vld [vmem:[#allocation3 + $0x118] sm:$0xff] }
 0x314   :  { %2522 = vmatpush.bf16.msra.mxu3 %v2316_v23  ;;  %v2216_v32 = vpack.c.bf16 %v1980_v24, %v1976_v18  ;;  %v2104_v33 = vcvt.s32.f32 %v1848_v25  ;;  %v2108_v34 = vcvt.s32.f32 %v1852_v26  ;;  %v1712_v38 = vunpack.c.2.s8 %v1628_v22  ;;  %v1672_v25 = vld [vmem:[#allocation3 + $0x198] sm:$0xff] }
 0x315   :  { %v2248_v52 = vpack.c.bf16 %v2044_v28, %v2040_v27  ;;  %v2168_v36 = vcvt.s32.f32 %v1912_v29  ;;  %v2172_v55 = vcvt.s32.f32 %v1916_v30  ;;  %v1716_v5 = vunpack.c.3.s8 %v1628_v22 }
 0x316   :  { %2484 = vmatpush.bf16.msra.mxu0 %v2216_v32  ;;  %v2280_v39 = vpack.c.bf16 %v2108_v34, %v2104_v33  ;;  %v1968_v40 = vcvt.s32.f32 %v1712_v38  ;;  %v1776_v41 = vunpack.c.2.s8 %v1644_v31  ;;  %v1780_v42 = vunpack.c.3.s8 %v1644_v31 }
 0x317   :  { %2497 = vmatpush.bf16.msra.mxu1 %v2248_v52  ;;  %v2312_v43 = vpack.c.bf16 %v2172_v55, %v2168_v36  ;;  %v1972_v63 = vcvt.s32.f32 %v1716_v5  ;;  %v1840_v44 = vunpack.c.2.s8 %v1660_v35  ;;  %v1844_v45 = vunpack.c.3.s8 %v1660_v35 }
 0x318   :  { %2510 = vmatpush.bf16.msra.mxu2 %v2280_v39  ;;  %v2032_v46 = vcvt.s32.f32 %v1776_v41  ;;  %v2036_v47 = vcvt.s32.f32 %v1780_v42  ;;  %v1904_v48 = vunpack.c.2.s8 %v1676_v7  ;;  %v1908_v49 = vunpack.c.3.s8 %v1676_v7 }
 0x319   :  { %2523 = vmatpush.bf16.msra.mxu3 %v2312_v43  ;;  %v2212_v53 = vpack.c.bf16 %v1972_v63, %v1968_v40  ;;  %v2096_v54 = vcvt.s32.f32 %v1840_v44  ;;  %v2100_v56 = vcvt.s32.f32 %v1844_v45  ;;  %v1704_v57 = vunpack.c.0.s8 %v1628_v22 }
 0x31a   :  { %v2244_v58 = vpack.c.bf16 %v2036_v47, %v2032_v46  ;;  %v2160_v59 = vcvt.s32.f32 %v1904_v48  ;;  %v2164_v61 = vcvt.s32.f32 %v1908_v49  ;;  %v1708_v62 = vunpack.c.1.s8 %v1628_v22 }
 0x31b   :  { %2485 = vmatpush.bf16.msra.mxu0 %v2212_v53  ;;  %v2276_v0 = vpack.c.bf16 %v2100_v56, %v2096_v54  ;;  %v1960_v1 = vcvt.s32.f32 %v1704_v57  ;;  %v1768_v2 = vunpack.c.0.s8 %v1644_v31  ;;  %v1772_v3 = vunpack.c.1.s8 %v1644_v31 }
 0x31c   :  { %2498 = vmatpush.bf16.msra.mxu1 %v2244_v58  ;;  %v2308_v60 = vpack.c.bf16 %v2164_v61, %v2160_v59  ;;  %v1964_v8 = vcvt.s32.f32 %v1708_v62  ;;  %v1832_v9 = vunpack.c.0.s8 %v1660_v35  ;;  %v1836_v10 = vunpack.c.1.s8 %v1660_v35 }
 0x31d   :  { %2511 = vmatpush.bf16.msra.mxu2 %v2276_v0  ;;  %v2024_v11 = vcvt.s32.f32 %v1768_v2  ;;  %v2028_v12 = vcvt.s32.f32 %v1772_v3  ;;  %v1896_v50 = vunpack.c.0.s8 %v1676_v7  ;;  %v1900_v13 = vunpack.c.1.s8 %v1676_v7 }
 0x31e   :  { %2524 = vmatpush.bf16.msra.mxu3 %v2308_v60  ;;  %v2208_v15 = vpack.c.bf16 %v1964_v8, %v1960_v1  ;;  %v2088_v16 = vcvt.s32.f32 %v1832_v9  ;;  %v2092_v17 = vcvt.s32.f32 %v1836_v10  ;;  %v1696_v18 = vunpack.c.2.s8 %v1624_v6 }
 0x31f   :  { %v2240_v20 = vpack.c.bf16 %v2028_v12, %v2024_v11  ;;  %v2152_v22 = vcvt.s32.f32 %v1896_v50  ;;  %v2156_v23 = vcvt.s32.f32 %v1900_v13  ;;  %v1700_v24 = vunpack.c.3.s8 %v1624_v6 }
 0x320   :  { %2486 = vmatpush.bf16.msra.mxu0 %v2208_v15  ;;  %v2272_v26 = vpack.c.bf16 %v2092_v17, %v2088_v16  ;;  %v1952_v27 = vcvt.s32.f32 %v1696_v18  ;;  %v1760_v28 = vunpack.c.2.s8 %v1640_v14  ;;  %v1764_v29 = vunpack.c.3.s8 %v1640_v14 }
 0x321   :  { %2499 = vmatpush.bf16.msra.mxu1 %v2240_v20  ;;  %v2304_v30 = vpack.c.bf16 %v2156_v23, %v2152_v22  ;;  %v1956_v31 = vcvt.s32.f32 %v1700_v24  ;;  %v1824_v32 = vunpack.c.2.s8 %v1656_v19  ;;  %v1828_v33 = vunpack.c.3.s8 %v1656_v19 }
 0x322   :  { %2512 = vmatpush.bf16.msra.mxu2 %v2272_v26  ;;  %v2016_v34 = vcvt.s32.f32 %v1760_v28  ;;  %v2020_v38 = vcvt.s32.f32 %v1764_v29  ;;  %v1888_v35 = vunpack.c.2.s8 %v1672_v25  ;;  %v1892_v52 = vunpack.c.3.s8 %v1672_v25 }
 0x323   :  { %2525 = vmatpush.bf16.msra.mxu3 %v2304_v30  ;;  %v2204_v36 = vpack.c.bf16 %v1956_v31, %v1952_v27  ;;  %v2080_v55 = vcvt.s32.f32 %v1824_v32  ;;  %v2084_v5 = vcvt.s32.f32 %v1828_v33  ;;  %v1688_v7 = vunpack.c.0.s8 %v1624_v6 }
 0x324   :  { %v2236_v39 = vpack.c.bf16 %v2020_v38, %v2016_v34  ;;  %v2144_v40 = vcvt.s32.f32 %v1888_v35  ;;  %v2148_v41 = vcvt.s32.f32 %v1892_v52  ;;  %v1692_v42 = vunpack.c.1.s8 %v1624_v6 }
 0x325   :  { %2487 = vmatpush.bf16.msra.mxu0 %v2204_v36  ;;  %v2268_v43 = vpack.c.bf16 %v2084_v5, %v2080_v55  ;;  %v1944_v63 = vcvt.s32.f32 %v1688_v7  ;;  %v1752_v44 = vunpack.c.0.s8 %v1640_v14  ;;  %v1756_v45 = vunpack.c.1.s8 %v1640_v14 }
 0x326   :  { %2500 = vmatpush.bf16.msra.mxu1 %v2236_v39  ;;  %v2300_v46 = vpack.c.bf16 %v2148_v41, %v2144_v40  ;;  %v1948_v47 = vcvt.s32.f32 %v1692_v42  ;;  %v1816_v48 = vunpack.c.0.s8 %v1656_v19  ;;  %v1820_v49 = vunpack.c.1.s8 %v1656_v19  ;;  %v5101_v39 = vld [vmem:[#allocation18] sm:$0xf] }
 0x327   :  { %2513 = vmatpush.bf16.msra.mxu2 %v2268_v43  ;;  %v2008_v53 = vcvt.s32.f32 %v1752_v44  ;;  %v2012_v54 = vcvt.s32.f32 %v1756_v45  ;;  %v1880_v56 = vunpack.c.0.s8 %v1672_v25  ;;  %v1884_v57 = vunpack.c.1.s8 %v1672_v25 }
 0x328   :  { %2526 = vmatpush.bf16.msra.mxu3 %v2300_v46  ;;  %v2200_v58 = vpack.c.bf16 %v1948_v47, %v1944_v63  ;;  %v2072_v59 = vcvt.s32.f32 %v1816_v48  ;;  %v2076_v61 = vcvt.s32.f32 %v1820_v49  ;;  %v5105_v42 = vmul.f32 %v5101_v39, %v5101_v39 }
 0x329   :  { %v2232_v62 = vpack.c.bf16 %v2012_v54, %v2008_v53  ;;  %v2136_v0 = vcvt.s32.f32 %v1880_v56  ;;  %v2140_v1 = vcvt.s32.f32 %v1884_v57 }
 0x32a   :  { %2488 = vmatpush.bf16.msra.mxu0 %v2200_v58  ;;  %v2264_v2 = vpack.c.bf16 %v2076_v61, %v2072_v59  ;;  %v2600_v45 = vperm.slane %v5105_v42, 0 }
 0x32b   :  { %2501 = vmatpush.bf16.msra.mxu1 %v2232_v62  ;;  %v2296_v3 = vpack.c.bf16 %v2140_v1, %v2136_v0  ;;  %v2601_v62 = vperm.slane %v5105_v42, 1 }
 0x32c   :  { %2514 = vmatpush.bf16.msra.mxu2 %v2264_v2 }
 0x32d   :  { %2527 = vmatpush.bf16.msra.mxu3 %v2296_v3  ;;  %2489 = vmatmul.bf16.vlgmr.msra.gmra.mxu0 %v5073_v21 }
 0x32e   :  { %2502 = vmatmul.bf16.vlgmr.msra.gmra.mxu1 %v5075_v37 }
 0x32f   :  { %2515 = vmatmul.bf16.vlgmr.msra.gmra.mxu2 %v5077_v4 }
 0x330   :  { %2528 = vmatmul.bf16.vlgmr.msra.gmra.mxu3 %v5079_v51 }
 0x332   :  { %v2334_v6 = vpop.f32.mrf.mxu0 }
 0x333   :  { %v2347_v60 = vpop.f32.mrf.mxu1 }
 0x334   :  { %v2348_v8 = vadd.f32 %v2347_v60, %v2334_v6 }
 0x33a   :  { %v2360_v9 = vpop.f32.mrf.mxu2  ;;  %v2336_v10 = vpop.f32.mrf.mxu0 }
 0x33b   :  { %v2361_v11 = vadd.f32 %v2360_v9, %v2348_v8  ;;  %v2373_v12 = vpop.f32.mrf.mxu3  ;;  %v2349_v50 = vpop.f32.mrf.mxu1 }
 0x33d   :  { %v2374_v13 = vadd.f32 %v2373_v12, %v2361_v11 }
 0x33f   :  { %v2534_v14 = vrot.slane %v2374_v13, 4 }
 0x341   :  { %v2535_v15 = vadd.f32 %v2534_v14, %v2374_v13 }
 0x342   :  { %v2362_v16 = vpop.f32.mrf.mxu2 }
 0x343   :  { %v2536_v17 = vrot.slane %v2535_v15, 2  ;;  %v2375_v21 = vpop.f32.mrf.mxu3 }
 0x345   :  { %v2537_v18 = vadd.f32 %v2536_v17, %v2535_v15 }
 0x347   :  { %v2538_v37 = vrot.slane %v2537_v18, 1 }
 0x349   :  { %v2539_v19 = vadd.f32 %v2538_v37, %v2537_v18 }
 0x34b   :  { %v2558_v4 = vmul.f32 0.125, %v2539_v19 }
 0x34d   :  { %v5097_v20 = vsub.f32 %v2374_v13, %v2558_v4 }
 0x34f   :  { %v2566_v51 = vmul.f32 %v5097_v20, %v5097_v20 }
 0x351   :  { %v2570_v25 = vrot.slane %v2566_v51, 4 }
 0x353   :  { %v2571_v26 = vadd.f32 %v2570_v25, %v2566_v51 }
 0x355   :  { %v2572_v32 = vrot.slane %v2571_v26, 2 }
 0x357   :  { %v2573_v38 = vadd.f32 %v2572_v32, %v2571_v26 }
 0x359   :  { %v2574_v5 = vrot.slane %v2573_v38, 1 }
 0x35a   :  { %v2386_v22 = vpop.f32.mrf.mxu0 }
 0x35b   :  { %v2399_v23 = vpop.f32.mrf.mxu1  ;;  %v2575_v41 = vadd.f32 %v2574_v5, %v2573_v38 }
 0x35c   :  { %v2400_v24 = vadd.f32 %v2399_v23, %v2386_v22 }
 0x35d   :  { %v2594_v44 = vmul.f32 0.125, %v2575_v41 }
 0x35f   :  { %v2608_v48 = vmul.f32 %v2600_v45, %v2594_v44 }
 0x361   :  { %v2614_v54 = vadd.f32 1e-05, %v2608_v48 }
 0x362   :  { %v2412_v27 = vpop.f32.mrf.mxu2  ;;  %v2388_v28 = vpop.f32.mrf.mxu0 }
 0x363   :  { %v2413_v29 = vadd.f32 %v2412_v27, %v2400_v24  ;;  %v2425_v30 = vpop.f32.mrf.mxu3  ;;  %v2401_v31 = vpop.f32.mrf.mxu1  ;;  %4408 = vrsqrt.f32 %v2614_v54  ;;  %vm2624_vm1 = vweird.f32 %v2614_v54 }
 0x365   :  { %v2426_v33 = vadd.f32 %v2425_v30, %v2413_v29 }
 0x367   :  { %v2540_v34 = vrot.slane %v2426_v33, 4 }
 0x369   :  { %v2541_v35 = vadd.f32 %v2540_v34, %v2426_v33  ;;  %v4409_v2 = vpop.eup %4408 }
 0x36a   :  { %v2414_v52 = vpop.f32.mrf.mxu2  ;;  %v2619_v8 = vmul.f32 %v4409_v2, %v2614_v54  ;;  %vm2625_vm2 = vweird.f32 %v4409_v2 }
 0x36b   :  { %v2542_v36 = vrot.slane %v2541_v35, 2  ;;  %v2427_v55 = vpop.f32.mrf.mxu3  ;;  %vm2626_vm4 = vmor %vm2624_vm1, %vm2625_vm2 }
 0x36c   :  { %v2620_v14 = vmul.f32 %v4409_v2, %v2619_v8 }
 0x36d   :  { %v2543_v7 = vadd.f32 %v2542_v36, %v2541_v35 }
 0x36e   :  { %v2621_v21 = vmul.f32 0.5, %v2620_v14 }
 0x36f   :  { %v2544_v40 = vrot.slane %v2543_v7, 1 }
 0x370   :  { %v2622_v23 = vsub.f32 1.5, %v2621_v21 }
 0x371   :  { %v2545_v43 = vadd.f32 %v2544_v40, %v2543_v7 }
 0x372   :  { %v2623_v29 = vmul.f32 %v4409_v2, %v2622_v23 }
 0x373   :  { %v2559_v63 = vmul.f32 0.125, %v2545_v43 }
 0x375   :  { %v5108_v46 = vsub.f32 %v2426_v33, %v2559_v63  ;;  %v2627_v33 = vsel %vm2626_vm4, %v4409_v2, %v2623_v29 }
 0x377   :  { %v2567_v47 = vmul.f32 %v5108_v46, %v5108_v46 }
 0x379   :  { %v2576_v49 = vrot.slane %v2567_v47, 4 }
 0x37b   :  { %v2577_v53 = vadd.f32 %v2576_v49, %v2567_v47 }
 0x37d   :  { %v2578_v56 = vrot.slane %v2577_v53, 2 }
 0x37f   :  { %v2579_v57 = vadd.f32 %v2578_v56, %v2577_v53 }
 0x381   :  { %v2580_v58 = vrot.slane %v2579_v57, 1 }
 0x382   :  { %v2438_v59 = vpop.f32.mrf.mxu0 }
 0x383   :  { %v2581_v61 = vadd.f32 %v2580_v58, %v2579_v57  ;;  %v2451_v0 = vpop.f32.mrf.mxu1 }
 0x384   :  { %v2452_v6 = vadd.f32 %v2451_v0, %v2438_v59 }
 0x385   :  { %v2595_v1 = vmul.f32 0.125, %v2581_v61 }
 0x387   :  { %v2609_v3 = vmul.f32 %v2601_v62, %v2595_v1  ;;  %v2602_v1 = vperm.slane %v5105_v42, 2 }
 0x389   :  { %v2615_v60 = vadd.f32 1e-05, %v2609_v3 }
 0x38a   :  { %v2464_v9 = vpop.f32.mrf.mxu2  ;;  %v2440_v10 = vpop.f32.mrf.mxu0 }
 0x38b   :  { %4410 = vrsqrt.f32 %v2615_v60  ;;  %v2465_v11 = vadd.f32 %v2464_v9, %v2452_v6  ;;  %v2477_v12 = vpop.f32.mrf.mxu3  ;;  %v2453_v50 = vpop.f32.mrf.mxu1  ;;  %vm2634_vm14 = vweird.f32 %v2615_v60 }
 0x38d   :  { %v2478_v13 = vadd.f32 %v2477_v12, %v2465_v11 }
 0x38f   :  { %v2546_v15 = vrot.slane %v2478_v13, 4 }
 0x391   :  { %v4411_v16 = vpop.eup %4410  ;;  %v2547_v17 = vadd.f32 %v2546_v15, %v2478_v13 }
 0x392   :  { %v2629_v18 = vmul.f32 %v4411_v16, %v2615_v60  ;;  %v2466_v37 = vpop.f32.mrf.mxu2  ;;  %vm2635_vm0 = vweird.f32 %v4411_v16 }
 0x393   :  { %v2548_v19 = vrot.slane %v2547_v17, 2  ;;  %v2479_v4 = vpop.f32.mrf.mxu3  ;;  %vm2636_vm3 = vmor %vm2634_vm14, %vm2635_vm0 }
 0x394   :  { %v2630_v51 = vmul.f32 %v4411_v16, %v2629_v18 }
 0x395   :  { %v2549_v22 = vadd.f32 %v2548_v19, %v2547_v17 }
 0x396   :  { %v2631_v24 = vmul.f32 0.5, %v2630_v51 }
 0x397   :  { %v2550_v25 = vrot.slane %v2549_v22, 1 }
 0x398   :  { %v2632_v26 = vsub.f32 1.5, %v2631_v24 }
 0x399   :  { %v2551_v27 = vadd.f32 %v2550_v25, %v2549_v22 }
 0x39a   :  { %v2633_v28 = vmul.f32 %v4411_v16, %v2632_v26 }
 0x39b   :  { %v2560_v31 = vmul.f32 0.125, %v2551_v27 }
 0x39c   :  { %v2637_v30 = vsel %vm2636_vm3, %v4411_v16, %v2633_v28  ;;  %v2603_v16 = vperm.slane %v5105_v42, 3  ;;  %v2612_v28 = vld [vmem:[#allocation19] sm:$0xf] }
 0x39d   :  { %v2662_v32 = vrot.slane %v2637_v30, 7  ;;  %v5116_v38 = vsub.f32 %v2478_v13, %v2560_v31  ;;  %v2613_v31 = vmul.f32 %v2612_v28, %v5101_v39 }
 0x39f   :  { %v5114_v34 = vsel %vm480_vm11, %v2627_v33, %v2662_v32  ;;  %v2568_v35 = vmul.f32 %v5116_v38, %v5116_v38 }
 0x3a1   :  { %v2582_v52 = vrot.slane %v2568_v35, 4 }
 0x3a3   :  { %v2583_v5 = vadd.f32 %v2582_v52, %v2568_v35  ;;  %v2683_v52 = vld [vmem:[%s5231_s9] sm:$0xf] }
 0x3a5   :  { %v2584_v40 = vrot.slane %v2583_v5, 2 }
 0x3a7   :  { %v2585_v47 = vadd.f32 %v2584_v40, %v2583_v5  ;;  %v2685_v5 = vperm.slane %v2683_v52, 0  ;;  %v2687_v40 = vperm.slane %v2683_v52, 2 }
 0x3a9   :  { %v2586_v53 = vrot.slane %v2585_v47, 1 }
 0x3aa   :  { %v2490_v36 = vpop.f32.mrf.mxu0 }
 0x3ab   :  { %v2503_v55 = vpop.f32.mrf.mxu1  ;;  %v2587_v59 = vadd.f32 %v2586_v53, %v2585_v47 }
 0x3ac   :  { %v2504_v7 = vadd.f32 %v2503_v55, %v2490_v36 }
 0x3ad   :  { %v2596_v0 = vmul.f32 0.125, %v2587_v59 }
 0x3af   :  { %v2610_v6 = vmul.f32 %v2602_v1, %v2596_v0 }
 0x3b1   :  { %v2616_v9 = vadd.f32 1e-05, %v2610_v6 }
 0x3b2   :  { %v2516_v41 = vpop.f32.mrf.mxu2  ;;  %v2492_v43 = vpop.f32.mrf.mxu0 }
 0x3b3   :  { %v2517_v63 = vadd.f32 %v2516_v41, %v2504_v7  ;;  %v2529_v44 = vpop.f32.mrf.mxu3  ;;  %v2505_v45 = vpop.f32.mrf.mxu1  ;;  %4412 = vrsqrt.f32 %v2616_v9  ;;  %vm2644_vm6 = vweird.f32 %v2616_v9  ;;  %v2686_v7 = vperm.slane %v2683_v52, 1 }
 0x3b4   :  { %v2688_v41 = vperm.slane %v2683_v52, 3 }
 0x3b5   :  { %v2530_v48 = vadd.f32 %v2529_v44, %v2517_v63 }
 0x3b7   :  { %v2552_v49 = vrot.slane %v2530_v48, 4 }
 0x3b9   :  { %v2553_v54 = vadd.f32 %v2552_v49, %v2530_v48  ;;  %v4413_v14 = vpop.eup %4412 }
 0x3ba   :  { %v2518_v56 = vpop.f32.mrf.mxu2  ;;  %v2639_v21 = vmul.f32 %v4413_v14, %v2616_v9  ;;  %vm2645_vm5 = vweird.f32 %v4413_v14 }
 0x3bb   :  { %v2554_v57 = vrot.slane %v2553_v54, 2  ;;  %v2531_v58 = vpop.f32.mrf.mxu3  ;;  %vm2646_vm8 = vmor %vm2644_vm6, %vm2645_vm5 }
 0x3bc   :  { %v2640_v19 = vmul.f32 %v4413_v14, %v2639_v21 }
 0x3bd   :  { %v2555_v61 = vadd.f32 %v2554_v57, %v2553_v54 }
 0x3be   :  { %v2641_v4 = vmul.f32 0.5, %v2640_v19 }
 0x3bf   :  { %v2556_v62 = vrot.slane %v2555_v61, 1 }
 0x3c0   :  { %v2642_v22 = vsub.f32 1.5, %v2641_v4 }
 0x3c1   :  { %v2557_v2 = vadd.f32 %v2556_v62, %v2555_v61 }
 0x3c2   :  { %v2643_v25 = vmul.f32 %v4413_v14, %v2642_v22 }
 0x3c3   :  { %v2561_v3 = vmul.f32 0.125, %v2557_v2 }
 0x3c4   :  { %v2647_v42 = vsel %vm2646_vm8, %v4413_v14, %v2643_v25 }
 0x3c5   :  { %v2565_v60 = vsub.f32 %v2530_v48, %v2561_v3  ;;  %v2663_v32 = vrot.slane %v2647_v42, 6 }
 0x3c7   :  { %v2569_v8 = vmul.f32 %v2565_v60, %v2565_v60 }
 0x3c9   :  { %v2588_v10 = vrot.slane %v2569_v8, 4 }
 0x3cb   :  { %v2589_v11 = vadd.f32 %v2588_v10, %v2569_v8 }
 0x3cd   :  { %v2590_v12 = vrot.slane %v2589_v11, 2 }
 0x3cf   :  { %v2591_v50 = vadd.f32 %v2590_v12, %v2589_v11 }
 0x3d1   :  { %v2592_v13 = vrot.slane %v2591_v50, 1 }
 0x3d3   :  { %v2593_v15 = vadd.f32 %v2592_v13, %v2591_v50 }
 0x3d5   :  { %v2597_v17 = vmul.f32 0.125, %v2593_v15 }
 0x3d7   :  { %v2611_v18 = vmul.f32 %v2603_v16, %v2597_v17 }
 0x3d9   :  { %v2617_v37 = vadd.f32 1e-05, %v2611_v18 }
 0x3db   :  { %4414 = vrsqrt.f32 %v2617_v37  ;;  %vm2654_vm9 = vweird.f32 %v2617_v37 }
 0x3e1   :  { %v4415_v51 = vpop.eup %4414 }
 0x3e2   :  { %v2649_v23 = vmul.f32 %v4415_v51, %v2617_v37  ;;  %vm2655_vm7 = vweird.f32 %v4415_v51 }
 0x3e3   :  { %vm2656_vm10 = vmor %vm2654_vm9, %vm2655_vm7 }
 0x3e4   :  { %v2650_v24 = vmul.f32 %v4415_v51, %v2649_v23 }
 0x3e6   :  { %v2651_v26 = vmul.f32 0.5, %v2650_v24 }
 0x3e8   :  { %v2652_v27 = vsub.f32 1.5, %v2651_v26 }
 0x3ea   :  { %v2653_v29 = vmul.f32 %v4415_v51, %v2652_v27 }
 0x3ec   :  { %v2657_v30 = vsel %vm2656_vm10, %v4415_v51, %v2653_v29 }
 0x3ed   :  { %v2664_v33 = vrot.slane %v2657_v30, 5 }
 0x3ef   :  { %v2666_v35 = vsel %vm482_vm13, %v2663_v32, %v2664_v33 }
 0x3f0   :  { %v2667_v36 = vsel %vm484_vm15, %v5114_v34, %v2666_v35 }
 0x3f1   :  { %v2669_v55 = vmul.f32 %v2667_v36, %v2613_v31 }
 0x3f3   :  { %v2671_v43 = vperm.slane %v2669_v55, 0  ;;  %v2672_v63 = vperm.slane %v2669_v55, 1  ;;  %v2673_v44 = vperm.slane %v2669_v55, 2  ;;  %v2674_v39 = vperm.slane %v2669_v55, 3 }
 0x3f5   :  { %v2679_v45 = vmul.f32 %v2671_v43, %v5097_v20  ;;  %v2680_v47 = vmul.f32 %v2672_v63, %v5108_v46  ;;  %v2681_v48 = vmul.f32 %v2673_v44, %v5116_v38  ;;  %v2682_v49 = vmul.f32 %v2674_v39, %v2565_v60 }
 0x3f7   :  { %v2693_v53 = vadd.f32 %v2685_v5, %v2679_v45  ;;  %v2694_v54 = vadd.f32 %v2686_v7, %v2680_v47  ;;  %v2695_v56 = vadd.f32 %v2687_v40, %v2681_v48  ;;  %v2696_v34 = vadd.f32 %v2688_v41, %v2682_v49 }
 0x3f9   :  { %v2697_v57 = vmul.f32 0.2, %v2693_v53  ;;  %v2698_v58 = vmul.f32 0.2, %v2694_v54  ;;  %v2699_v59 = vmul.f32 0.2, %v2695_v56 }
 0x3fa   :  { %v2700_v61 = vmul.f32 0.2, %v2696_v34 }
 0x3fb   :  { %v2701_v62 = vmax.f32 %v2693_v53, %v2697_v57  ;;  %v2702_v0 = vmax.f32 %v2694_v54, %v2698_v58  ;;  %v2703_v1 = vmax.f32 %v2695_v56, %v2699_v59 }
 0x3fc   :  { %v2704_v2 = vmax.f32 %v2696_v34, %v2700_v61 }
 0x3fd   :  { %v5132_v3 = vpack.c.bf16 %v2701_v62, %v2701_v62  ;;  %v5134_v20 = vpack.c.bf16 %v2702_v0, %v2702_v0  ;;  %v5136_v46 = vpack.c.bf16 %v2703_v1, %v2703_v1 }
 0x3fe   :  { %v5138_v38 = vpack.c.bf16 %v2704_v2, %v2704_v2 }
 0x3ff   :  { %4827 = dma.done.wait [#allocation6 + $0x2], 8192 }
 0x400   :  { %4828 = vsyncadd [#allocation6 + $0x2], 4294959104  ;;  %v2723_v6 = vld [vmem:[#allocation4 + $0x60] sm:$0xff] }
 0x401   :  { %v2739_v60 = vld [vmem:[#allocation4 + $0xe0] sm:$0xff]  ;;  %v2831_v9 = vunpack.c.2.s8 %v2723_v6  ;;  %v2835_v10 = vunpack.c.3.s8 %v2723_v6  ;;  %v2823_v25 = vunpack.c.0.s8 %v2723_v6  ;;  %v2827_v26 = vunpack.c.1.s8 %v2723_v6 }
 0x402   :  { %v2755_v8 = vld [vmem:[#allocation4 + $0x160] sm:$0xff]  ;;  %v2895_v11 = vunpack.c.2.s8 %v2739_v60  ;;  %v2899_v12 = vunpack.c.3.s8 %v2739_v60  ;;  %v2887_v42 = vunpack.c.0.s8 %v2739_v60  ;;  %v2891_v29 = vunpack.c.1.s8 %v2739_v60 }
 0x403   :  { %v2771_v50 = vld [vmem:[#allocation4 + $0x1e0] sm:$0xff]  ;;  %v2959_v13 = vunpack.c.2.s8 %v2755_v8  ;;  %v2963_v14 = vunpack.c.3.s8 %v2755_v8  ;;  %v3087_v17 = vcvt.s32.f32 %v2831_v9  ;;  %v3091_v21 = vcvt.s32.f32 %v2835_v10 }
 0x404   :  { %v3023_v15 = vunpack.c.2.s8 %v2771_v50  ;;  %v3027_v16 = vunpack.c.3.s8 %v2771_v50  ;;  %v3151_v18 = vcvt.s32.f32 %v2895_v11  ;;  %v3155_v37 = vcvt.s32.f32 %v2899_v12  ;;  %v2719_v30 = vld [vmem:[#allocation4 + $0x40] sm:$0xff] }
 0x405   :  { %v3215_v19 = vcvt.s32.f32 %v2959_v13  ;;  %v3219_v4 = vcvt.s32.f32 %v2963_v14  ;;  %v3315_v23 = vpack.c.bf16 %v3091_v21, %v3087_v17  ;;  %v3079_v31 = vcvt.s32.f32 %v2823_v25  ;;  %v2735_v7 = vld [vmem:[#allocation4 + $0xc0] sm:$0xff] }
 0x406   :  { %v3279_v51 = vcvt.s32.f32 %v3023_v15  ;;  %v3283_v22 = vcvt.s32.f32 %v3027_v16  ;;  %v3347_v24 = vpack.c.bf16 %v3155_v37, %v3151_v18  ;;  %v3083_v32 = vcvt.s32.f32 %v2827_v26  ;;  %v2751_v44 = vld [vmem:[#allocation4 + $0x140] sm:$0xff] }
 0x407   :  { %v3379_v27 = vpack.c.bf16 %v3219_v4, %v3215_v19  ;;  %3415 = vmatpush.bf16.msrb.mxu0 %v3315_v23  ;;  %v2951_v33 = vunpack.c.0.s8 %v2755_v8  ;;  %v2955_v35 = vunpack.c.1.s8 %v2755_v8  ;;  %v3143_v52 = vcvt.s32.f32 %v2887_v42  ;;  %v2767_v49 = vld [vmem:[#allocation4 + $0x1c0] sm:$0xff] }
 0x408   :  { %v3411_v28 = vpack.c.bf16 %v3283_v22, %v3279_v51  ;;  %3428 = vmatpush.bf16.msrb.mxu1 %v3347_v24  ;;  %v3147_v36 = vcvt.s32.f32 %v2891_v29  ;;  %v3015_v55 = vunpack.c.0.s8 %v2771_v50  ;;  %v3019_v5 = vunpack.c.1.s8 %v2771_v50  ;;  %v2715_v17 = vld [vmem:[#allocation4 + $0x20] sm:$0xff] }
 0x409   :  { %3441 = vmatpush.bf16.msrb.mxu2 %v3379_v27  ;;  %v3311_v40 = vpack.c.bf16 %v3083_v32, %v3079_v31  ;;  %v3207_v41 = vcvt.s32.f32 %v2951_v33  ;;  %v3211_v43 = vcvt.s32.f32 %v2955_v35  ;;  %v2815_v63 = vunpack.c.2.s8 %v2719_v30  ;;  %v2731_v24 = vld [vmem:[#allocation4 + $0xa0] sm:$0xff] }
 0x40a   :  { %3454 = vmatpush.bf16.msrb.mxu3 %v3411_v28  ;;  %v3343_v39 = vpack.c.bf16 %v3147_v36, %v3143_v52  ;;  %v3271_v45 = vcvt.s32.f32 %v3015_v55  ;;  %v3275_v47 = vcvt.s32.f32 %v3019_v5  ;;  %v2819_v48 = vunpack.c.3.s8 %v2719_v30  ;;  %v2747_v42 = vld [vmem:[#allocation4 + $0x120] sm:$0xff] }
 0x40b   :  { %3416 = vmatpush.bf16.msrb.mxu0 %v3311_v40  ;;  %v3375_v53 = vpack.c.bf16 %v3211_v43, %v3207_v41  ;;  %v3071_v54 = vcvt.s32.f32 %v2815_v63  ;;  %v2879_v56 = vunpack.c.2.s8 %v2735_v7  ;;  %v2883_v34 = vunpack.c.3.s8 %v2735_v7  ;;  %v2763_v33 = vld [vmem:[#allocation4 + $0x1a0] sm:$0xff] }
 0x40c   :  { %3429 = vmatpush.bf16.msrb.mxu1 %v3343_v39  ;;  %v3407_v57 = vpack.c.bf16 %v3275_v47, %v3271_v45  ;;  %v3075_v58 = vcvt.s32.f32 %v2819_v48  ;;  %v2943_v59 = vunpack.c.2.s8 %v2751_v44  ;;  %v2947_v61 = vunpack.c.3.s8 %v2751_v44 }
 0x40d   :  { %3442 = vmatpush.bf16.msrb.mxu2 %v3375_v53  ;;  %v3135_v62 = vcvt.s32.f32 %v2879_v56  ;;  %v3139_v0 = vcvt.s32.f32 %v2883_v34  ;;  %v3007_v1 = vunpack.c.2.s8 %v2767_v49  ;;  %v3011_v2 = vunpack.c.3.s8 %v2767_v49 }
 0x40e   :  { %3455 = vmatpush.bf16.msrb.mxu3 %v3407_v57  ;;  %v3307_v6 = vpack.c.bf16 %v3075_v58, %v3071_v54  ;;  %v3199_v60 = vcvt.s32.f32 %v2943_v59  ;;  %v3203_v8 = vcvt.s32.f32 %v2947_v61  ;;  %v2807_v9 = vunpack.c.0.s8 %v2719_v30 }
 0x40f   :  { %v3339_v10 = vpack.c.bf16 %v3139_v0, %v3135_v62  ;;  %v3263_v11 = vcvt.s32.f32 %v3007_v1  ;;  %v3267_v12 = vcvt.s32.f32 %v3011_v2  ;;  %v2811_v50 = vunpack.c.1.s8 %v2719_v30  ;;  %v2711_v62 = vld [vmem:[#allocation4] sm:$0xff] }
 0x410   :  { %3417 = vmatpush.bf16.msrb.mxu0 %v3307_v6  ;;  %v3371_v13 = vpack.c.bf16 %v3203_v8, %v3199_v60  ;;  %v3063_v14 = vcvt.s32.f32 %v2807_v9  ;;  %v2871_v15 = vunpack.c.0.s8 %v2735_v7  ;;  %v2875_v16 = vunpack.c.1.s8 %v2735_v7 }
 0x411   :  { %3430 = vmatpush.bf16.msrb.mxu1 %v3339_v10  ;;  %v3403_v21 = vpack.c.bf16 %v3267_v12, %v3263_v11  ;;  %v3067_v18 = vcvt.s32.f32 %v2811_v50  ;;  %v2935_v37 = vunpack.c.0.s8 %v2751_v44  ;;  %v2939_v19 = vunpack.c.1.s8 %v2751_v44  ;;  %v2727_v11 = vld [vmem:[#allocation4 + $0x80] sm:$0xff] }
 0x412   :  { %3443 = vmatpush.bf16.msrb.mxu2 %v3371_v13  ;;  %v3127_v4 = vcvt.s32.f32 %v2871_v15  ;;  %v3131_v51 = vcvt.s32.f32 %v2875_v16  ;;  %v2999_v22 = vunpack.c.0.s8 %v2767_v49  ;;  %v3003_v23 = vunpack.c.1.s8 %v2767_v49  ;;  %v2743_v15 = vld [vmem:[#allocation4 + $0x100] sm:$0xff] }
 0x413   :  { %3456 = vmatpush.bf16.msrb.mxu3 %v3403_v21  ;;  %v3303_v25 = vpack.c.bf16 %v3067_v18, %v3063_v14  ;;  %v3191_v26 = vcvt.s32.f32 %v2935_v37  ;;  %v3195_v27 = vcvt.s32.f32 %v2939_v19  ;;  %v2799_v28 = vunpack.c.2.s8 %v2715_v17  ;;  %v2759_v37 = vld [vmem:[#allocation4 + $0x180] sm:$0xff] }
 0x414   :  { %v3335_v29 = vpack.c.bf16 %v3131_v51, %v3127_v4  ;;  %v3255_v30 = vcvt.s32.f32 %v2999_v22  ;;  %v3259_v31 = vcvt.s32.f32 %v3003_v23  ;;  %v2803_v32 = vunpack.c.3.s8 %v2715_v17 }
 0x415   :  { %3418 = vmatpush.bf16.msrb.mxu0 %v3303_v25  ;;  %v3367_v35 = vpack.c.bf16 %v3195_v27, %v3191_v26  ;;  %v3055_v52 = vcvt.s32.f32 %v2799_v28  ;;  %v2863_v36 = vunpack.c.2.s8 %v2731_v24  ;;  %v2867_v55 = vunpack.c.3.s8 %v2731_v24 }
 0x416   :  { %3431 = vmatpush.bf16.msrb.mxu1 %v3335_v29  ;;  %v3399_v5 = vpack.c.bf16 %v3259_v31, %v3255_v30  ;;  %v3059_v7 = vcvt.s32.f32 %v2803_v32  ;;  %v2927_v40 = vunpack.c.2.s8 %v2747_v42  ;;  %v2931_v41 = vunpack.c.3.s8 %v2747_v42 }
 0x417   :  { %3444 = vmatpush.bf16.msrb.mxu2 %v3367_v35  ;;  %v3119_v43 = vcvt.s32.f32 %v2863_v36  ;;  %v3123_v63 = vcvt.s32.f32 %v2867_v55  ;;  %v2991_v44 = vunpack.c.2.s8 %v2763_v33  ;;  %v2995_v39 = vunpack.c.3.s8 %v2763_v33 }
 0x418   :  { %3457 = vmatpush.bf16.msrb.mxu3 %v3399_v5  ;;  %v3299_v45 = vpack.c.bf16 %v3059_v7, %v3055_v52  ;;  %v3183_v47 = vcvt.s32.f32 %v2927_v40  ;;  %v3187_v48 = vcvt.s32.f32 %v2931_v41  ;;  %v2791_v49 = vunpack.c.0.s8 %v2715_v17 }
 0x419   :  { %v3331_v53 = vpack.c.bf16 %v3123_v63, %v3119_v43  ;;  %v3247_v54 = vcvt.s32.f32 %v2991_v44  ;;  %v3251_v56 = vcvt.s32.f32 %v2995_v39  ;;  %v2795_v34 = vunpack.c.1.s8 %v2715_v17  ;;  %v2724_v43 = vld [vmem:[#allocation4 + $0x68] sm:$0xff] }
 0x41a   :  { %3419 = vmatpush.bf16.msrb.mxu0 %v3299_v45  ;;  %v3363_v57 = vpack.c.bf16 %v3187_v48, %v3183_v47  ;;  %v3047_v58 = vcvt.s32.f32 %v2791_v49  ;;  %v2855_v59 = vunpack.c.0.s8 %v2731_v24  ;;  %v2859_v61 = vunpack.c.1.s8 %v2731_v24 }
 0x41b   :  { %3432 = vmatpush.bf16.msrb.mxu1 %v3331_v53  ;;  %v3395_v0 = vpack.c.bf16 %v3251_v56, %v3247_v54  ;;  %v3051_v1 = vcvt.s32.f32 %v2795_v34  ;;  %v2919_v2 = vunpack.c.0.s8 %v2747_v42  ;;  %v2923_v6 = vunpack.c.1.s8 %v2747_v42  ;;  %v2740_v54 = vld [vmem:[#allocation4 + $0xe8] sm:$0xff] }
 0x41c   :  { %3445 = vmatpush.bf16.msrb.mxu2 %v3363_v57  ;;  %v3111_v60 = vcvt.s32.f32 %v2855_v59  ;;  %v3115_v8 = vcvt.s32.f32 %v2859_v61  ;;  %v2983_v9 = vunpack.c.0.s8 %v2763_v33  ;;  %v2987_v10 = vunpack.c.1.s8 %v2763_v33  ;;  %v2756_v59 = vld [vmem:[#allocation4 + $0x168] sm:$0xff] }
 0x41d   :  { %3458 = vmatpush.bf16.msrb.mxu3 %v3395_v0  ;;  %v3295_v12 = vpack.c.bf16 %v3051_v1, %v3047_v58  ;;  %v3175_v50 = vcvt.s32.f32 %v2919_v2  ;;  %v3179_v13 = vcvt.s32.f32 %v2923_v6  ;;  %v2783_v14 = vunpack.c.2.s8 %v2711_v62  ;;  %v2772_v2 = vld [vmem:[#allocation4 + $0x1e8] sm:$0xff] }
 0x41e   :  { %v3327_v16 = vpack.c.bf16 %v3115_v8, %v3111_v60  ;;  %v3239_v17 = vcvt.s32.f32 %v2983_v9  ;;  %v3243_v21 = vcvt.s32.f32 %v2987_v10  ;;  %v2787_v18 = vunpack.c.3.s8 %v2711_v62 }
 0x41f   :  { %3420 = vmatpush.bf16.msrb.mxu0 %v3295_v12  ;;  %v3359_v19 = vpack.c.bf16 %v3179_v13, %v3175_v50  ;;  %v3039_v4 = vcvt.s32.f32 %v2783_v14  ;;  %v2847_v51 = vunpack.c.2.s8 %v2727_v11  ;;  %v2851_v22 = vunpack.c.3.s8 %v2727_v11 }
 0x420   :  { %3433 = vmatpush.bf16.msrb.mxu1 %v3327_v16  ;;  %v3391_v23 = vpack.c.bf16 %v3243_v21, %v3239_v17  ;;  %v3043_v24 = vcvt.s32.f32 %v2787_v18  ;;  %v2911_v25 = vunpack.c.2.s8 %v2743_v15  ;;  %v2915_v26 = vunpack.c.3.s8 %v2743_v15 }
 0x421   :  { %3446 = vmatpush.bf16.msrb.mxu2 %v3359_v19  ;;  %v3103_v27 = vcvt.s32.f32 %v2847_v51  ;;  %v3107_v28 = vcvt.s32.f32 %v2851_v22  ;;  %v2975_v42 = vunpack.c.2.s8 %v2759_v37  ;;  %v2979_v29 = vunpack.c.3.s8 %v2759_v37 }
 0x422   :  { %3459 = vmatpush.bf16.msrb.mxu3 %v3391_v23  ;;  %v3291_v30 = vpack.c.bf16 %v3043_v24, %v3039_v4  ;;  %v3167_v31 = vcvt.s32.f32 %v2911_v25  ;;  %v3171_v32 = vcvt.s32.f32 %v2915_v26  ;;  %v2775_v33 = vunpack.c.0.s8 %v2711_v62 }
 0x423   :  { %v3323_v35 = vpack.c.bf16 %v3107_v28, %v3103_v27  ;;  %v3231_v52 = vcvt.s32.f32 %v2975_v42  ;;  %v3235_v36 = vcvt.s32.f32 %v2979_v29  ;;  %v2779_v55 = vunpack.c.1.s8 %v2711_v62  ;;  %v2720_v27 = vld [vmem:[#allocation4 + $0x48] sm:$0xff] }
 0x424   :  { %3421 = vmatpush.bf16.msrb.mxu0 %v3291_v30  ;;  %v3355_v5 = vpack.c.bf16 %v3171_v32, %v3167_v31  ;;  %v3031_v7 = vcvt.s32.f32 %v2775_v33  ;;  %v2839_v40 = vunpack.c.0.s8 %v2727_v11  ;;  %v2843_v41 = vunpack.c.1.s8 %v2727_v11 }
 0x425   :  { %3434 = vmatpush.bf16.msrb.mxu1 %v3323_v35  ;;  %v3387_v63 = vpack.c.bf16 %v3235_v36, %v3231_v52  ;;  %v3035_v44 = vcvt.s32.f32 %v2779_v55  ;;  %v2903_v39 = vunpack.c.0.s8 %v2743_v15  ;;  %v2907_v45 = vunpack.c.1.s8 %v2743_v15  ;;  %v2736_v52 = vld [vmem:[#allocation4 + $0xc8] sm:$0xff] }
 0x426   :  { %3447 = vmatpush.bf16.msrb.mxu2 %v3355_v5  ;;  %v3095_v47 = vcvt.s32.f32 %v2839_v40  ;;  %v3099_v48 = vcvt.s32.f32 %v2843_v41  ;;  %v2967_v49 = vunpack.c.0.s8 %v2759_v37  ;;  %v2971_v53 = vunpack.c.1.s8 %v2759_v37  ;;  %v2752_v40 = vld [vmem:[#allocation4 + $0x148] sm:$0xff] }
 0x427   :  { %3460 = vmatpush.bf16.msrb.mxu3 %v3387_v63  ;;  %v3287_v56 = vpack.c.bf16 %v3035_v44, %v3031_v7  ;;  %v3159_v34 = vcvt.s32.f32 %v2903_v39  ;;  %v3163_v57 = vcvt.s32.f32 %v2907_v45  ;;  %v2832_v58 = vunpack.c.2.s8 %v2724_v43  ;;  %v2768_v39 = vld [vmem:[#allocation4 + $0x1c8] sm:$0xff] }
 0x428   :  { %v3319_v61 = vpack.c.bf16 %v3099_v48, %v3095_v47  ;;  %v3223_v62 = vcvt.s32.f32 %v2967_v49  ;;  %v3227_v0 = vcvt.s32.f32 %v2971_v53  ;;  %v2836_v1 = vunpack.c.3.s8 %v2724_v43 }
 0x429   :  { %3422 = vmatpush.bf16.msrb.mxu0 %v3287_v56  ;;  %v3351_v6 = vpack.c.bf16 %v3163_v57, %v3159_v34  ;;  %v3088_v60 = vcvt.s32.f32 %v2832_v58  ;;  %v2896_v8 = vunpack.c.2.s8 %v2740_v54  ;;  %v2900_v9 = vunpack.c.3.s8 %v2740_v54 }
 0x42a   :  { %3435 = vmatpush.bf16.msrb.mxu1 %v3319_v61  ;;  %v3383_v10 = vpack.c.bf16 %v3227_v0, %v3223_v62  ;;  %v3092_v11 = vcvt.s32.f32 %v2836_v1  ;;  %v2960_v12 = vunpack.c.2.s8 %v2756_v59  ;;  %v2964_v50 = vunpack.c.3.s8 %v2756_v59 }
 0x42b   :  { %3448 = vmatpush.bf16.msrb.mxu2 %v3351_v6  ;;  %v3152_v13 = vcvt.s32.f32 %v2896_v8  ;;  %v3156_v14 = vcvt.s32.f32 %v2900_v9  ;;  %v3024_v15 = vunpack.c.2.s8 %v2772_v2  ;;  %v3028_v16 = vunpack.c.3.s8 %v2772_v2 }
 0x42c   :  { %3461 = vmatpush.bf16.msrb.mxu3 %v3383_v10  ;;  %v3316_v17 = vpack.c.bf16 %v3092_v11, %v3088_v60  ;;  %v3216_v21 = vcvt.s32.f32 %v2960_v12  ;;  %v3220_v18 = vcvt.s32.f32 %v2964_v50  ;;  %v2824_v37 = vunpack.c.0.s8 %v2724_v43  ;;  %3423 = vmatmul.bf16.vlgmr.msrb.gmra.mxu0 %v5132_v3 }
 0x42d   :  { %v3348_v19 = vpack.c.bf16 %v3156_v14, %v3152_v13  ;;  %v3280_v4 = vcvt.s32.f32 %v3024_v15  ;;  %v3284_v51 = vcvt.s32.f32 %v3028_v16  ;;  %v2828_v22 = vunpack.c.1.s8 %v2724_v43  ;;  %3436 = vmatmul.bf16.vlgmr.msrb.gmra.mxu1 %v5134_v20  ;;  %v2716_v13 = vld [vmem:[#allocation4 + $0x28] sm:$0xff] }
 0x42e   :  { %3467 = vmatpush.bf16.msra.mxu0 %v3316_v17  ;;  %v3380_v23 = vpack.c.bf16 %v3220_v18, %v3216_v21  ;;  %3449 = vmatmul.bf16.vlgmr.msrb.gmra.mxu2 %v5136_v46  ;;  %v3080_v24 = vcvt.s32.f32 %v2824_v37  ;;  %v2888_v25 = vunpack.c.0.s8 %v2740_v54  ;;  %v2892_v26 = vunpack.c.1.s8 %v2740_v54 }
 0x42f   :  { %3480 = vmatpush.bf16.msra.mxu1 %v3348_v19  ;;  %v3412_v28 = vpack.c.bf16 %v3284_v51, %v3280_v4  ;;  %3462 = vmatmul.bf16.vlgmr.msrb.gmra.mxu3 %v5138_v38  ;;  %v3084_v42 = vcvt.s32.f32 %v2828_v22  ;;  %v2952_v29 = vunpack.c.0.s8 %v2756_v59  ;;  %v2956_v30 = vunpack.c.1.s8 %v2756_v59  ;;  %v2732_v4 = vld [vmem:[#allocation4 + $0xa8] sm:$0xff] }
 0x430   :  { %3493 = vmatpush.bf16.msra.mxu2 %v3380_v23  ;;  %v3144_v31 = vcvt.s32.f32 %v2888_v25  ;;  %v3148_v32 = vcvt.s32.f32 %v2892_v26  ;;  %v3016_v33 = vunpack.c.0.s8 %v2772_v2  ;;  %v3020_v35 = vunpack.c.1.s8 %v2772_v2  ;;  %v2748_v25 = vld [vmem:[#allocation4 + $0x128] sm:$0xff] }
 0x431   :  { %3506 = vmatpush.bf16.msra.mxu3 %v3412_v28  ;;  %v3312_v36 = vpack.c.bf16 %v3084_v42, %v3080_v24  ;;  %v3208_v55 = vcvt.s32.f32 %v2952_v29  ;;  %v3212_v5 = vcvt.s32.f32 %v2956_v30  ;;  %v2816_v7 = vunpack.c.2.s8 %v2720_v27  ;;  %v2764_v29 = vld [vmem:[#allocation4 + $0x1a8] sm:$0xff] }
 0x432   :  { %v3344_v41 = vpack.c.bf16 %v3148_v32, %v3144_v31  ;;  %v3272_v43 = vcvt.s32.f32 %v3016_v33  ;;  %v3276_v63 = vcvt.s32.f32 %v3020_v35  ;;  %v2820_v44 = vunpack.c.3.s8 %v2720_v27 }
 0x433   :  { %3468 = vmatpush.bf16.msra.mxu0 %v3312_v36  ;;  %v3376_v45 = vpack.c.bf16 %v3212_v5, %v3208_v55  ;;  %v3072_v47 = vcvt.s32.f32 %v2816_v7  ;;  %v2880_v48 = vunpack.c.2.s8 %v2736_v52  ;;  %v2884_v49 = vunpack.c.3.s8 %v2736_v52 }
 0x434   :  { %3481 = vmatpush.bf16.msra.mxu1 %v3344_v41  ;;  %v3408_v53 = vpack.c.bf16 %v3276_v63, %v3272_v43  ;;  %v3076_v54 = vcvt.s32.f32 %v2820_v44  ;;  %v2944_v56 = vunpack.c.2.s8 %v2752_v40  ;;  %v2948_v34 = vunpack.c.3.s8 %v2752_v40 }
 0x435   :  { %3494 = vmatpush.bf16.msra.mxu2 %v3376_v45  ;;  %v3136_v57 = vcvt.s32.f32 %v2880_v48  ;;  %v3140_v58 = vcvt.s32.f32 %v2884_v49  ;;  %v3008_v59 = vunpack.c.2.s8 %v2768_v39  ;;  %v3012_v61 = vunpack.c.3.s8 %v2768_v39 }
 0x436   :  { %3507 = vmatpush.bf16.msra.mxu3 %v3408_v53  ;;  %v3308_v62 = vpack.c.bf16 %v3076_v54, %v3072_v47  ;;  %v3200_v0 = vcvt.s32.f32 %v2944_v56  ;;  %v3204_v1 = vcvt.s32.f32 %v2948_v34  ;;  %v2808_v2 = vunpack.c.0.s8 %v2720_v27 }
 0x437   :  { %v3340_v6 = vpack.c.bf16 %v3140_v58, %v3136_v57  ;;  %v3264_v60 = vcvt.s32.f32 %v3008_v59  ;;  %v3268_v8 = vcvt.s32.f32 %v3012_v61  ;;  %v2812_v9 = vunpack.c.1.s8 %v2720_v27  ;;  %v2712_v57 = vld [vmem:[#allocation4 + $0x8] sm:$0xff] }
 0x438   :  { %3469 = vmatpush.bf16.msra.mxu0 %v3308_v62  ;;  %v3372_v10 = vpack.c.bf16 %v3204_v1, %v3200_v0  ;;  %v3064_v11 = vcvt.s32.f32 %v2808_v2  ;;  %v2872_v12 = vunpack.c.0.s8 %v2736_v52  ;;  %v2876_v50 = vunpack.c.1.s8 %v2736_v52 }
 0x439   :  { %3482 = vmatpush.bf16.msra.mxu1 %v3340_v6  ;;  %v3404_v14 = vpack.c.bf16 %v3268_v8, %v3264_v60  ;;  %v3068_v15 = vcvt.s32.f32 %v2812_v9  ;;  %v2936_v16 = vunpack.c.0.s8 %v2752_v40  ;;  %v2940_v17 = vunpack.c.1.s8 %v2752_v40  ;;  %v2728_v60 = vld [vmem:[#allocation4 + $0x88] sm:$0xff] }
 0x43a   :  { %3495 = vmatpush.bf16.msra.mxu2 %v3372_v10  ;;  %v3128_v21 = vcvt.s32.f32 %v2872_v12  ;;  %v3132_v18 = vcvt.s32.f32 %v2876_v50  ;;  %v3000_v37 = vunpack.c.0.s8 %v2768_v39  ;;  %v3004_v19 = vunpack.c.1.s8 %v2768_v39  ;;  %v2744_v12 = vld [vmem:[#allocation4 + $0x108] sm:$0xff] }
 0x43b   :  { %3508 = vmatpush.bf16.msra.mxu3 %v3404_v14  ;;  %v3304_v51 = vpack.c.bf16 %v3068_v15, %v3064_v11  ;;  %v3192_v22 = vcvt.s32.f32 %v2936_v16  ;;  %v3196_v23 = vcvt.s32.f32 %v2940_v17  ;;  %v2800_v24 = vunpack.c.2.s8 %v2716_v13  ;;  %v2760_v16 = vld [vmem:[#allocation4 + $0x188] sm:$0xff] }
 0x43c   :  { %v3336_v26 = vpack.c.bf16 %v3132_v18, %v3128_v21  ;;  %v3256_v27 = vcvt.s32.f32 %v3000_v37  ;;  %v3260_v28 = vcvt.s32.f32 %v3004_v19  ;;  %v2804_v42 = vunpack.c.3.s8 %v2716_v13 }
 0x43d   :  { %3470 = vmatpush.bf16.msra.mxu0 %v3304_v51  ;;  %v3368_v30 = vpack.c.bf16 %v3196_v23, %v3192_v22  ;;  %v3056_v31 = vcvt.s32.f32 %v2800_v24  ;;  %v2864_v32 = vunpack.c.2.s8 %v2732_v4  ;;  %v2868_v33 = vunpack.c.3.s8 %v2732_v4 }
 0x43e   :  { %3483 = vmatpush.bf16.msra.mxu1 %v3336_v26  ;;  %v3400_v35 = vpack.c.bf16 %v3260_v28, %v3256_v27  ;;  %v3060_v52 = vcvt.s32.f32 %v2804_v42  ;;  %v2928_v36 = vunpack.c.2.s8 %v2748_v25  ;;  %v2932_v55 = vunpack.c.3.s8 %v2748_v25 }
 0x43f   :  { %3496 = vmatpush.bf16.msra.mxu2 %v3368_v30  ;;  %v3120_v5 = vcvt.s32.f32 %v2864_v32  ;;  %v3124_v7 = vcvt.s32.f32 %v2868_v33  ;;  %v2992_v40 = vunpack.c.2.s8 %v2764_v29  ;;  %v2996_v41 = vunpack.c.3.s8 %v2764_v29 }
 0x440   :  { %3509 = vmatpush.bf16.msra.mxu3 %v3400_v35  ;;  %v3300_v43 = vpack.c.bf16 %v3060_v52, %v3056_v31  ;;  %v3184_v63 = vcvt.s32.f32 %v2928_v36  ;;  %v3188_v44 = vcvt.s32.f32 %v2932_v55  ;;  %v2792_v39 = vunpack.c.0.s8 %v2716_v13 }
 0x441   :  { %v3332_v45 = vpack.c.bf16 %v3124_v7, %v3120_v5  ;;  %v3248_v47 = vcvt.s32.f32 %v2992_v40  ;;  %v3252_v48 = vcvt.s32.f32 %v2996_v41  ;;  %v2796_v49 = vunpack.c.1.s8 %v2716_v13  ;;  %v2725_v5 = vld [vmem:[#allocation4 + $0x70] sm:$0xff] }
 0x442   :  { %3471 = vmatpush.bf16.msra.mxu0 %v3300_v43  ;;  %v3364_v53 = vpack.c.bf16 %v3188_v44, %v3184_v63  ;;  %v3048_v54 = vcvt.s32.f32 %v2792_v39  ;;  %v2856_v56 = vunpack.c.0.s8 %v2732_v4  ;;  %v2860_v34 = vunpack.c.1.s8 %v2732_v4 }
 0x443   :  { %3484 = vmatpush.bf16.msra.mxu1 %v3332_v45  ;;  %v3396_v58 = vpack.c.bf16 %v3252_v48, %v3248_v47  ;;  %v3052_v59 = vcvt.s32.f32 %v2796_v49  ;;  %v2920_v61 = vunpack.c.0.s8 %v2748_v25  ;;  %v2924_v62 = vunpack.c.1.s8 %v2748_v25  ;;  %v2741_v47 = vld [vmem:[#allocation4 + $0xf0] sm:$0xff] }
 0x444   :  { %3497 = vmatpush.bf16.msra.mxu2 %v3364_v53  ;;  %v3112_v0 = vcvt.s32.f32 %v2856_v56  ;;  %v3116_v1 = vcvt.s32.f32 %v2860_v34  ;;  %v2984_v2 = vunpack.c.0.s8 %v2764_v29  ;;  %v2988_v6 = vunpack.c.1.s8 %v2764_v29  ;;  %v2757_v56 = vld [vmem:[#allocation4 + $0x170] sm:$0xff] }
 0x445   :  { %3510 = vmatpush.bf16.msra.mxu3 %v3396_v58  ;;  %v3296_v8 = vpack.c.bf16 %v3052_v59, %v3048_v54  ;;  %v3176_v9 = vcvt.s32.f32 %v2920_v61  ;;  %v3180_v10 = vcvt.s32.f32 %v2924_v62  ;;  %v2784_v11 = vunpack.c.2.s8 %v2712_v57  ;;  %v2773_v61 = vld [vmem:[#allocation4 + $0x1f0] sm:$0xff] }
 0x446   :  { %v3328_v50 = vpack.c.bf16 %v3116_v1, %v3112_v0  ;;  %v3240_v13 = vcvt.s32.f32 %v2984_v2  ;;  %v3244_v14 = vcvt.s32.f32 %v2988_v6  ;;  %v2788_v15 = vunpack.c.3.s8 %v2712_v57 }
 0x447   :  { %3472 = vmatpush.bf16.msra.mxu0 %v3296_v8  ;;  %v3360_v17 = vpack.c.bf16 %v3180_v10, %v3176_v9  ;;  %v3040_v21 = vcvt.s32.f32 %v2784_v11  ;;  %v2848_v18 = vunpack.c.2.s8 %v2728_v60  ;;  %v2852_v37 = vunpack.c.3.s8 %v2728_v60 }
 0x448   :  { %3485 = vmatpush.bf16.msra.mxu1 %v3328_v50  ;;  %v3392_v19 = vpack.c.bf16 %v3244_v14, %v3240_v13  ;;  %v3044_v4 = vcvt.s32.f32 %v2788_v15  ;;  %v2912_v51 = vunpack.c.2.s8 %v2744_v12  ;;  %v2916_v22 = vunpack.c.3.s8 %v2744_v12 }
 0x449   :  { %3498 = vmatpush.bf16.msra.mxu2 %v3360_v17  ;;  %v3104_v23 = vcvt.s32.f32 %v2848_v18  ;;  %v3108_v24 = vcvt.s32.f32 %v2852_v37  ;;  %v2976_v25 = vunpack.c.2.s8 %v2760_v16  ;;  %v2980_v26 = vunpack.c.3.s8 %v2760_v16 }
 0x44a   :  { %3511 = vmatpush.bf16.msra.mxu3 %v3392_v19  ;;  %v3292_v27 = vpack.c.bf16 %v3044_v4, %v3040_v21  ;;  %v3168_v28 = vcvt.s32.f32 %v2912_v51  ;;  %v3172_v42 = vcvt.s32.f32 %v2916_v22  ;;  %v2776_v29 = vunpack.c.0.s8 %v2712_v57 }
 0x44b   :  { %v3324_v30 = vpack.c.bf16 %v3108_v24, %v3104_v23  ;;  %v3232_v31 = vcvt.s32.f32 %v2976_v25  ;;  %v3236_v32 = vcvt.s32.f32 %v2980_v26  ;;  %v2780_v33 = vunpack.c.1.s8 %v2712_v57  ;;  %v2721_v23 = vld [vmem:[#allocation4 + $0x50] sm:$0xff] }
 0x44c   :  { %3473 = vmatpush.bf16.msra.mxu0 %v3292_v27  ;;  %v3356_v35 = vpack.c.bf16 %v3172_v42, %v3168_v28  ;;  %v3032_v52 = vcvt.s32.f32 %v2776_v29  ;;  %v2840_v36 = vunpack.c.0.s8 %v2728_v60  ;;  %v2844_v55 = vunpack.c.1.s8 %v2728_v60 }
 0x44d   :  { %3486 = vmatpush.bf16.msra.mxu1 %v3324_v30  ;;  %v3388_v7 = vpack.c.bf16 %v3236_v32, %v3232_v31  ;;  %v3036_v40 = vcvt.s32.f32 %v2780_v33  ;;  %v2904_v41 = vunpack.c.0.s8 %v2744_v12  ;;  %v2908_v43 = vunpack.c.1.s8 %v2744_v12  ;;  %v2737_v31 = vld [vmem:[#allocation4 + $0xd0] sm:$0xff] }
 0x44e   :  { %3499 = vmatpush.bf16.msra.mxu2 %v3356_v35  ;;  %v3096_v63 = vcvt.s32.f32 %v2840_v36  ;;  %v3100_v44 = vcvt.s32.f32 %v2844_v55  ;;  %v2968_v39 = vunpack.c.0.s8 %v2760_v16  ;;  %v2972_v45 = vunpack.c.1.s8 %v2760_v16  ;;  %v2753_v36 = vld [vmem:[#allocation4 + $0x150] sm:$0xff] }
 0x44f   :  { %3512 = vmatpush.bf16.msra.mxu3 %v3388_v7  ;;  %v3288_v48 = vpack.c.bf16 %v3036_v40, %v3032_v52  ;;  %v3160_v49 = vcvt.s32.f32 %v2904_v41  ;;  %v3164_v53 = vcvt.s32.f32 %v2908_v43  ;;  %v2833_v54 = vunpack.c.2.s8 %v2725_v5  ;;  %v2769_v41 = vld [vmem:[#allocation4 + $0x1d0] sm:$0xff] }
 0x450   :  { %v3320_v34 = vpack.c.bf16 %v3100_v44, %v3096_v63  ;;  %v3224_v57 = vcvt.s32.f32 %v2968_v39  ;;  %v3228_v58 = vcvt.s32.f32 %v2972_v45  ;;  %v2837_v59 = vunpack.c.3.s8 %v2725_v5 }
 0x451   :  { %3474 = vmatpush.bf16.msra.mxu0 %v3288_v48  ;;  %v3352_v62 = vpack.c.bf16 %v3164_v53, %v3160_v49  ;;  %v3089_v0 = vcvt.s32.f32 %v2833_v54  ;;  %v2897_v1 = vunpack.c.2.s8 %v2741_v47  ;;  %v2901_v2 = vunpack.c.3.s8 %v2741_v47 }
 0x452   :  { %3487 = vmatpush.bf16.msra.mxu1 %v3320_v34  ;;  %v3384_v6 = vpack.c.bf16 %v3228_v58, %v3224_v57  ;;  %v3093_v60 = vcvt.s32.f32 %v2837_v59  ;;  %v2961_v8 = vunpack.c.2.s8 %v2757_v56  ;;  %v2965_v9 = vunpack.c.3.s8 %v2757_v56 }
 0x453   :  { %3500 = vmatpush.bf16.msra.mxu2 %v3352_v62  ;;  %v3153_v10 = vcvt.s32.f32 %v2897_v1  ;;  %v3157_v11 = vcvt.s32.f32 %v2901_v2  ;;  %v3025_v12 = vunpack.c.2.s8 %v2773_v61  ;;  %v3029_v50 = vunpack.c.3.s8 %v2773_v61 }
 0x454   :  { %3513 = vmatpush.bf16.msra.mxu3 %v3384_v6  ;;  %v3317_v13 = vpack.c.bf16 %v3093_v60, %v3089_v0  ;;  %v3217_v14 = vcvt.s32.f32 %v2961_v8  ;;  %v3221_v15 = vcvt.s32.f32 %v2965_v9  ;;  %v2825_v16 = vunpack.c.0.s8 %v2725_v5  ;;  %3475 = vmatmul.bf16.vlgmr.msra.gmra.mxu0 %v5132_v3 }
 0x455   :  { %v3349_v17 = vpack.c.bf16 %v3157_v11, %v3153_v10  ;;  %v3281_v21 = vcvt.s32.f32 %v3025_v12  ;;  %v3285_v18 = vcvt.s32.f32 %v3029_v50  ;;  %v2829_v37 = vunpack.c.1.s8 %v2725_v5  ;;  %3488 = vmatmul.bf16.vlgmr.msra.gmra.mxu1 %v5134_v20  ;;  %v2717_v10 = vld [vmem:[#allocation4 + $0x30] sm:$0xff] }
 0x456   :  { %3519 = vmatpush.bf16.msrb.mxu0 %v3317_v13  ;;  %v3381_v19 = vpack.c.bf16 %v3221_v15, %v3217_v14  ;;  %3501 = vmatmul.bf16.vlgmr.msra.gmra.mxu2 %v5136_v46  ;;  %v3081_v4 = vcvt.s32.f32 %v2825_v16  ;;  %v2889_v51 = vunpack.c.0.s8 %v2741_v47  ;;  %v2893_v22 = vunpack.c.1.s8 %v2741_v47 }
 0x457   :  { %3532 = vmatpush.bf16.msrb.mxu1 %v3349_v17  ;;  %v3413_v24 = vpack.c.bf16 %v3285_v18, %v3281_v21  ;;  %3514 = vmatmul.bf16.vlgmr.msra.gmra.mxu3 %v5138_v38  ;;  %v3085_v25 = vcvt.s32.f32 %v2829_v37  ;;  %v2953_v26 = vunpack.c.0.s8 %v2757_v56  ;;  %v2957_v27 = vunpack.c.1.s8 %v2757_v56  ;;  %v2733_v21 = vld [vmem:[#allocation4 + $0xb0] sm:$0xff] }
 0x458   :  { %3545 = vmatpush.bf16.msrb.mxu2 %v3381_v19  ;;  %v3145_v28 = vcvt.s32.f32 %v2889_v51  ;;  %v3149_v42 = vcvt.s32.f32 %v2893_v22  ;;  %v3017_v29 = vunpack.c.0.s8 %v2773_v61  ;;  %v3021_v30 = vunpack.c.1.s8 %v2773_v61  ;;  %v2749_v51 = vld [vmem:[#allocation4 + $0x130] sm:$0xff] }
 0x459   :  { %3558 = vmatpush.bf16.msrb.mxu3 %v3413_v24  ;;  %v3313_v32 = vpack.c.bf16 %v3085_v25, %v3081_v4  ;;  %v3209_v33 = vcvt.s32.f32 %v2953_v26  ;;  %v3213_v35 = vcvt.s32.f32 %v2957_v27  ;;  %v2817_v52 = vunpack.c.2.s8 %v2721_v23  ;;  %v2765_v26 = vld [vmem:[#allocation4 + $0x1b0] sm:$0xff] }
 0x45a   :  { %v3345_v55 = vpack.c.bf16 %v3149_v42, %v3145_v28  ;;  %v3273_v5 = vcvt.s32.f32 %v3017_v29  ;;  %v3277_v7 = vcvt.s32.f32 %v3021_v30  ;;  %v2821_v40 = vunpack.c.3.s8 %v2721_v23 }
 0x45b   :  { %3520 = vmatpush.bf16.msrb.mxu0 %v3313_v32  ;;  %v3377_v43 = vpack.c.bf16 %v3213_v35, %v3209_v33  ;;  %v3073_v63 = vcvt.s32.f32 %v2817_v52  ;;  %v2881_v44 = vunpack.c.2.s8 %v2737_v31  ;;  %v2885_v39 = vunpack.c.3.s8 %v2737_v31 }
 0x45c   :  { %3533 = vmatpush.bf16.msrb.mxu1 %v3345_v55  ;;  %v3409_v45 = vpack.c.bf16 %v3277_v7, %v3273_v5  ;;  %v3077_v47 = vcvt.s32.f32 %v2821_v40  ;;  %v2945_v48 = vunpack.c.2.s8 %v2753_v36  ;;  %v2949_v49 = vunpack.c.3.s8 %v2753_v36 }
 0x45d   :  { %3546 = vmatpush.bf16.msrb.mxu2 %v3377_v43  ;;  %v3137_v53 = vcvt.s32.f32 %v2881_v44  ;;  %v3141_v54 = vcvt.s32.f32 %v2885_v39  ;;  %v3009_v56 = vunpack.c.2.s8 %v2769_v41  ;;  %v3013_v34 = vunpack.c.3.s8 %v2769_v41 }
 0x45e   :  { %3559 = vmatpush.bf16.msrb.mxu3 %v3409_v45  ;;  %v3309_v57 = vpack.c.bf16 %v3077_v47, %v3073_v63  ;;  %v3201_v58 = vcvt.s32.f32 %v2945_v48  ;;  %v3205_v59 = vcvt.s32.f32 %v2949_v49  ;;  %v2809_v61 = vunpack.c.0.s8 %v2721_v23 }
 0x45f   :  { %v3341_v62 = vpack.c.bf16 %v3141_v54, %v3137_v53  ;;  %v3265_v0 = vcvt.s32.f32 %v3009_v56  ;;  %v3269_v1 = vcvt.s32.f32 %v3013_v34  ;;  %v2813_v2 = vunpack.c.1.s8 %v2721_v23  ;;  %v2713_v53 = vld [vmem:[#allocation4 + $0x10] sm:$0xff] }
 0x460   :  { %3521 = vmatpush.bf16.msrb.mxu0 %v3309_v57  ;;  %v3373_v6 = vpack.c.bf16 %v3205_v59, %v3201_v58  ;;  %v3065_v60 = vcvt.s32.f32 %v2809_v61  ;;  %v2873_v8 = vunpack.c.0.s8 %v2737_v31  ;;  %v2877_v9 = vunpack.c.1.s8 %v2737_v31 }
 0x461   :  { %3534 = vmatpush.bf16.msrb.mxu1 %v3341_v62  ;;  %v3405_v11 = vpack.c.bf16 %v3269_v1, %v3265_v0  ;;  %v3069_v12 = vcvt.s32.f32 %v2813_v2  ;;  %v2937_v50 = vunpack.c.0.s8 %v2753_v36  ;;  %v2941_v13 = vunpack.c.1.s8 %v2753_v36  ;;  %v2729_v0 = vld [vmem:[#allocation4 + $0x90] sm:$0xff] }
 0x462   :  { %3547 = vmatpush.bf16.msrb.mxu2 %v3373_v6  ;;  %v3129_v14 = vcvt.s32.f32 %v2873_v8  ;;  %v3133_v15 = vcvt.s32.f32 %v2877_v9  ;;  %v3001_v16 = vunpack.c.0.s8 %v2769_v41  ;;  %v3005_v17 = vunpack.c.1.s8 %v2769_v41  ;;  %v2745_v8 = vld [vmem:[#allocation4 + $0x110] sm:$0xff] }
 0x463   :  { %3560 = vmatpush.bf16.msrb.mxu3 %v3405_v11  ;;  %v3305_v18 = vpack.c.bf16 %v3069_v12, %v3065_v60  ;;  %v3193_v37 = vcvt.s32.f32 %v2937_v50  ;;  %v3197_v19 = vcvt.s32.f32 %v2941_v13  ;;  %v2801_v4 = vunpack.c.2.s8 %v2717_v10  ;;  %v2761_v50 = vld [vmem:[#allocation4 + $0x190] sm:$0xff] }
 0x464   :  { %v3337_v22 = vpack.c.bf16 %v3133_v15, %v3129_v14  ;;  %v3257_v23 = vcvt.s32.f32 %v3001_v16  ;;  %v3261_v24 = vcvt.s32.f32 %v3005_v17  ;;  %v2805_v25 = vunpack.c.3.s8 %v2717_v10 }
 0x465   :  { %3522 = vmatpush.bf16.msrb.mxu0 %v3305_v18  ;;  %v3369_v27 = vpack.c.bf16 %v3197_v19, %v3193_v37  ;;  %v3057_v28 = vcvt.s32.f32 %v2801_v4  ;;  %v2865_v42 = vunpack.c.2.s8 %v2733_v21  ;;  %v2869_v29 = vunpack.c.3.s8 %v2733_v21 }
 0x466   :  { %3535 = vmatpush.bf16.msrb.mxu1 %v3337_v22  ;;  %v3401_v30 = vpack.c.bf16 %v3261_v24, %v3257_v23  ;;  %v3061_v31 = vcvt.s32.f32 %v2805_v25  ;;  %v2929_v32 = vunpack.c.2.s8 %v2749_v51  ;;  %v2933_v33 = vunpack.c.3.s8 %v2749_v51 }
 0x467   :  { %3548 = vmatpush.bf16.msrb.mxu2 %v3369_v27  ;;  %v3121_v35 = vcvt.s32.f32 %v2865_v42  ;;  %v3125_v52 = vcvt.s32.f32 %v2869_v29  ;;  %v2993_v36 = vunpack.c.2.s8 %v2765_v26  ;;  %v2997_v55 = vunpack.c.3.s8 %v2765_v26 }
 0x468   :  { %3561 = vmatpush.bf16.msrb.mxu3 %v3401_v30  ;;  %v3301_v5 = vpack.c.bf16 %v3061_v31, %v3057_v28  ;;  %v3185_v7 = vcvt.s32.f32 %v2929_v32  ;;  %v3189_v40 = vcvt.s32.f32 %v2933_v33  ;;  %v2793_v41 = vunpack.c.0.s8 %v2717_v10 }
 0x469   :  { %v3333_v43 = vpack.c.bf16 %v3125_v52, %v3121_v35  ;;  %v3249_v63 = vcvt.s32.f32 %v2993_v36  ;;  %v3253_v44 = vcvt.s32.f32 %v2997_v55  ;;  %v2797_v39 = vunpack.c.1.s8 %v2717_v10  ;;  %v2726_v35 = vld [vmem:[#allocation4 + $0x78] sm:$0xff] }
 0x46a   :  { %3523 = vmatpush.bf16.msrb.mxu0 %v3301_v5  ;;  %v3365_v45 = vpack.c.bf16 %v3189_v40, %v3185_v7  ;;  %v3049_v47 = vcvt.s32.f32 %v2793_v41  ;;  %v2857_v48 = vunpack.c.0.s8 %v2733_v21  ;;  %v2861_v49 = vunpack.c.1.s8 %v2733_v21 }
 0x46b   :  { %3536 = vmatpush.bf16.msrb.mxu1 %v3333_v43  ;;  %v3397_v54 = vpack.c.bf16 %v3253_v44, %v3249_v63  ;;  %v3053_v56 = vcvt.s32.f32 %v2797_v39  ;;  %v2921_v34 = vunpack.c.0.s8 %v2749_v51  ;;  %v2925_v57 = vunpack.c.1.s8 %v2749_v51  ;;  %v2742_v63 = vld [vmem:[#allocation4 + $0xf8] sm:$0xff] }
 0x46c   :  { %3549 = vmatpush.bf16.msrb.mxu2 %v3365_v45  ;;  %v3113_v58 = vcvt.s32.f32 %v2857_v48  ;;  %v3117_v59 = vcvt.s32.f32 %v2861_v49  ;;  %v2985_v61 = vunpack.c.0.s8 %v2765_v26  ;;  %v2989_v62 = vunpack.c.1.s8 %v2765_v26  ;;  %v2758_v48 = vld [vmem:[#allocation4 + $0x178] sm:$0xff] }
 0x46d   :  { %3562 = vmatpush.bf16.msrb.mxu3 %v3397_v54  ;;  %v3297_v1 = vpack.c.bf16 %v3053_v56, %v3049_v47  ;;  %v3177_v2 = vcvt.s32.f32 %v2921_v34  ;;  %v3181_v6 = vcvt.s32.f32 %v2925_v57  ;;  %v2785_v60 = vunpack.c.2.s8 %v2713_v53  ;;  %v2774_v34 = vld [vmem:[#allocation4 + $0x1f8] sm:$0xff] }
 0x46e   :  { %v3329_v9 = vpack.c.bf16 %v3117_v59, %v3113_v58  ;;  %v3241_v10 = vcvt.s32.f32 %v2985_v61  ;;  %v3245_v11 = vcvt.s32.f32 %v2989_v62  ;;  %v2789_v12 = vunpack.c.3.s8 %v2713_v53 }
 0x46f   :  { %3524 = vmatpush.bf16.msrb.mxu0 %v3297_v1  ;;  %v3361_v13 = vpack.c.bf16 %v3181_v6, %v3177_v2  ;;  %v3041_v14 = vcvt.s32.f32 %v2785_v60  ;;  %v2849_v15 = vunpack.c.2.s8 %v2729_v0  ;;  %v2853_v16 = vunpack.c.3.s8 %v2729_v0 }
 0x470   :  { %3537 = vmatpush.bf16.msrb.mxu1 %v3329_v9  ;;  %v3393_v17 = vpack.c.bf16 %v3245_v11, %v3241_v10  ;;  %v3045_v21 = vcvt.s32.f32 %v2789_v12  ;;  %v2913_v18 = vunpack.c.2.s8 %v2745_v8  ;;  %v2917_v37 = vunpack.c.3.s8 %v2745_v8 }
 0x471   :  { %3550 = vmatpush.bf16.msrb.mxu2 %v3361_v13  ;;  %v3105_v19 = vcvt.s32.f32 %v2849_v15  ;;  %v3109_v4 = vcvt.s32.f32 %v2853_v16  ;;  %v2977_v51 = vunpack.c.2.s8 %v2761_v50  ;;  %v2981_v22 = vunpack.c.3.s8 %v2761_v50 }
 0x472   :  { %3563 = vmatpush.bf16.msrb.mxu3 %v3393_v17  ;;  %v3293_v23 = vpack.c.bf16 %v3045_v21, %v3041_v14  ;;  %v3169_v24 = vcvt.s32.f32 %v2913_v18  ;;  %v3173_v25 = vcvt.s32.f32 %v2917_v37  ;;  %v2777_v26 = vunpack.c.0.s8 %v2713_v53 }
 0x473   :  { %v3325_v27 = vpack.c.bf16 %v3109_v4, %v3105_v19  ;;  %v3233_v28 = vcvt.s32.f32 %v2977_v51  ;;  %v3237_v42 = vcvt.s32.f32 %v2981_v22  ;;  %v2781_v29 = vunpack.c.1.s8 %v2713_v53  ;;  %v2722_v19 = vld [vmem:[#allocation4 + $0x58] sm:$0xff] }
 0x474   :  { %3525 = vmatpush.bf16.msrb.mxu0 %v3293_v23  ;;  %v3357_v30 = vpack.c.bf16 %v3173_v25, %v3169_v24  ;;  %v3033_v31 = vcvt.s32.f32 %v2777_v26  ;;  %v2841_v32 = vunpack.c.0.s8 %v2729_v0  ;;  %v2845_v33 = vunpack.c.1.s8 %v2729_v0 }
 0x475   :  { %3538 = vmatpush.bf16.msrb.mxu1 %v3325_v27  ;;  %v3389_v52 = vpack.c.bf16 %v3237_v42, %v3233_v28  ;;  %v3037_v36 = vcvt.s32.f32 %v2781_v29  ;;  %v2905_v55 = vunpack.c.0.s8 %v2745_v8  ;;  %v2909_v5 = vunpack.c.1.s8 %v2745_v8  ;;  %v2738_v28 = vld [vmem:[#allocation4 + $0xd8] sm:$0xff] }
 0x476   :  { %3551 = vmatpush.bf16.msrb.mxu2 %v3357_v30  ;;  %v3097_v7 = vcvt.s32.f32 %v2841_v32  ;;  %v3101_v40 = vcvt.s32.f32 %v2845_v33  ;;  %v2969_v41 = vunpack.c.0.s8 %v2761_v50  ;;  %v2973_v43 = vunpack.c.1.s8 %v2761_v50  ;;  %v2754_v32 = vld [vmem:[#allocation4 + $0x158] sm:$0xff] }
 0x477   :  { %3564 = vmatpush.bf16.msrb.mxu3 %v3389_v52  ;;  %v3289_v44 = vpack.c.bf16 %v3037_v36, %v3033_v31  ;;  %v3161_v39 = vcvt.s32.f32 %v2905_v55  ;;  %v3165_v45 = vcvt.s32.f32 %v2909_v5  ;;  %v2834_v47 = vunpack.c.2.s8 %v2726_v35  ;;  %v2770_v55 = vld [vmem:[#allocation4 + $0x1d8] sm:$0xff] }
 0x478   :  { %v3321_v49 = vpack.c.bf16 %v3101_v40, %v3097_v7  ;;  %v3225_v53 = vcvt.s32.f32 %v2969_v41  ;;  %v3229_v54 = vcvt.s32.f32 %v2973_v43  ;;  %v2838_v56 = vunpack.c.3.s8 %v2726_v35 }
 0x479   :  { %3526 = vmatpush.bf16.msrb.mxu0 %v3289_v44  ;;  %v3353_v57 = vpack.c.bf16 %v3165_v45, %v3161_v39  ;;  %v3090_v58 = vcvt.s32.f32 %v2834_v47  ;;  %v2898_v59 = vunpack.c.2.s8 %v2742_v63  ;;  %v2902_v61 = vunpack.c.3.s8 %v2742_v63 }
 0x47a   :  { %3539 = vmatpush.bf16.msrb.mxu1 %v3321_v49  ;;  %v3385_v62 = vpack.c.bf16 %v3229_v54, %v3225_v53  ;;  %v3094_v0 = vcvt.s32.f32 %v2838_v56  ;;  %v2962_v1 = vunpack.c.2.s8 %v2758_v48  ;;  %v2966_v2 = vunpack.c.3.s8 %v2758_v48 }
 0x47b   :  { %3552 = vmatpush.bf16.msrb.mxu2 %v3353_v57  ;;  %v3154_v6 = vcvt.s32.f32 %v2898_v59  ;;  %v3158_v60 = vcvt.s32.f32 %v2902_v61  ;;  %v3026_v8 = vunpack.c.2.s8 %v2774_v34  ;;  %v3030_v9 = vunpack.c.3.s8 %v2774_v34 }
 0x47c   :  { %3565 = vmatpush.bf16.msrb.mxu3 %v3385_v62  ;;  %v3318_v10 = vpack.c.bf16 %v3094_v0, %v3090_v58  ;;  %v3218_v11 = vcvt.s32.f32 %v2962_v1  ;;  %v3222_v12 = vcvt.s32.f32 %v2966_v2  ;;  %v2826_v50 = vunpack.c.0.s8 %v2726_v35  ;;  %3527 = vmatmul.bf16.vlgmr.msrb.gmra.mxu0 %v5132_v3 }
 0x47d   :  { %v3350_v13 = vpack.c.bf16 %v3158_v60, %v3154_v6  ;;  %v3282_v14 = vcvt.s32.f32 %v3026_v8  ;;  %v3286_v15 = vcvt.s32.f32 %v3030_v9  ;;  %v2830_v16 = vunpack.c.1.s8 %v2726_v35  ;;  %3540 = vmatmul.bf16.vlgmr.msrb.gmra.mxu1 %v5134_v20  ;;  %v2718_v6 = vld [vmem:[#allocation4 + $0x38] sm:$0xff] }
 0x47e   :  { %3571 = vmatpush.bf16.msra.mxu0 %v3318_v10  ;;  %v3382_v17 = vpack.c.bf16 %v3222_v12, %v3218_v11  ;;  %3553 = vmatmul.bf16.vlgmr.msrb.gmra.mxu2 %v5136_v46  ;;  %v3082_v21 = vcvt.s32.f32 %v2826_v50  ;;  %v2890_v18 = vunpack.c.0.s8 %v2742_v63  ;;  %v2894_v37 = vunpack.c.1.s8 %v2742_v63 }
 0x47f   :  { %3584 = vmatpush.bf16.msra.mxu1 %v3350_v13  ;;  %v3414_v4 = vpack.c.bf16 %v3286_v15, %v3282_v14  ;;  %3566 = vmatmul.bf16.vlgmr.msrb.gmra.mxu3 %v5138_v38  ;;  %v3086_v51 = vcvt.s32.f32 %v2830_v16  ;;  %v2954_v22 = vunpack.c.0.s8 %v2758_v48  ;;  %v2958_v23 = vunpack.c.1.s8 %v2758_v48  ;;  %v2734_v14 = vld [vmem:[#allocation4 + $0xb8] sm:$0xff] }
 0x480   :  { %3597 = vmatpush.bf16.msra.mxu2 %v3382_v17  ;;  %v3146_v24 = vcvt.s32.f32 %v2890_v18  ;;  %v3150_v25 = vcvt.s32.f32 %v2894_v37  ;;  %v3018_v26 = vunpack.c.0.s8 %v2774_v34  ;;  %v3022_v27 = vunpack.c.1.s8 %v2774_v34  ;;  %v2750_v18 = vld [vmem:[#allocation4 + $0x138] sm:$0xff] }
 0x481   :  { %3610 = vmatpush.bf16.msra.mxu3 %v3414_v4  ;;  %v3314_v42 = vpack.c.bf16 %v3086_v51, %v3082_v21  ;;  %v3210_v29 = vcvt.s32.f32 %v2954_v22  ;;  %v3214_v30 = vcvt.s32.f32 %v2958_v23  ;;  %v2818_v31 = vunpack.c.2.s8 %v2722_v19  ;;  %v2766_v22 = vld [vmem:[#allocation4 + $0x1b8] sm:$0xff] }
 0x482   :  { %v3346_v33 = vpack.c.bf16 %v3150_v25, %v3146_v24  ;;  %v3274_v35 = vcvt.s32.f32 %v3018_v26  ;;  %v3278_v52 = vcvt.s32.f32 %v3022_v27  ;;  %v2822_v36 = vunpack.c.3.s8 %v2722_v19 }
 0x483   :  { %3572 = vmatpush.bf16.msra.mxu0 %v3314_v42  ;;  %v3378_v5 = vpack.c.bf16 %v3214_v30, %v3210_v29  ;;  %v3074_v7 = vcvt.s32.f32 %v2818_v31  ;;  %v2882_v40 = vunpack.c.2.s8 %v2738_v28  ;;  %v2886_v41 = vunpack.c.3.s8 %v2738_v28 }
 0x484   :  { %3585 = vmatpush.bf16.msra.mxu1 %v3346_v33  ;;  %v3410_v43 = vpack.c.bf16 %v3278_v52, %v3274_v35  ;;  %v3078_v63 = vcvt.s32.f32 %v2822_v36  ;;  %v2946_v44 = vunpack.c.2.s8 %v2754_v32  ;;  %v2950_v39 = vunpack.c.3.s8 %v2754_v32 }
 0x485   :  { %3598 = vmatpush.bf16.msra.mxu2 %v3378_v5  ;;  %v3138_v45 = vcvt.s32.f32 %v2882_v40  ;;  %v3142_v47 = vcvt.s32.f32 %v2886_v41  ;;  %v3010_v48 = vunpack.c.2.s8 %v2770_v55  ;;  %v3014_v49 = vunpack.c.3.s8 %v2770_v55 }
 0x486   :  { %3611 = vmatpush.bf16.msra.mxu3 %v3410_v43  ;;  %v3310_v53 = vpack.c.bf16 %v3078_v63, %v3074_v7  ;;  %v3202_v54 = vcvt.s32.f32 %v2946_v44  ;;  %v3206_v56 = vcvt.s32.f32 %v2950_v39  ;;  %v2810_v34 = vunpack.c.0.s8 %v2722_v19 }
 0x487   :  { %v3342_v57 = vpack.c.bf16 %v3142_v47, %v3138_v45  ;;  %v3266_v58 = vcvt.s32.f32 %v3010_v48  ;;  %v3270_v59 = vcvt.s32.f32 %v3014_v49  ;;  %v2814_v61 = vunpack.c.1.s8 %v2722_v19  ;;  %v2714_v45 = vld [vmem:[#allocation4 + $0x18] sm:$0xff] }
 0x488   :  { %3573 = vmatpush.bf16.msra.mxu0 %v3310_v53  ;;  %v3374_v62 = vpack.c.bf16 %v3206_v56, %v3202_v54  ;;  %v3066_v0 = vcvt.s32.f32 %v2810_v34  ;;  %v2874_v1 = vunpack.c.0.s8 %v2738_v28  ;;  %v2878_v2 = vunpack.c.1.s8 %v2738_v28 }
 0x489   :  { %3586 = vmatpush.bf16.msra.mxu1 %v3342_v57  ;;  %v3406_v60 = vpack.c.bf16 %v3270_v59, %v3266_v58  ;;  %v3070_v8 = vcvt.s32.f32 %v2814_v61  ;;  %v2938_v9 = vunpack.c.0.s8 %v2754_v32  ;;  %v2942_v10 = vunpack.c.1.s8 %v2754_v32  ;;  %v2730_v58 = vld [vmem:[#allocation4 + $0x98] sm:$0xff] }
 0x48a   :  { %3599 = vmatpush.bf16.msra.mxu2 %v3374_v62  ;;  %v3130_v11 = vcvt.s32.f32 %v2874_v1  ;;  %v3134_v12 = vcvt.s32.f32 %v2878_v2  ;;  %v3002_v50 = vunpack.c.0.s8 %v2770_v55  ;;  %v3006_v13 = vunpack.c.1.s8 %v2770_v55  ;;  %v2746_v1 = vld [vmem:[#allocation4 + $0x118] sm:$0xff] }
 0x48b   :  { %3612 = vmatpush.bf16.msra.mxu3 %v3406_v60  ;;  %v3306_v15 = vpack.c.bf16 %v3070_v8, %v3066_v0  ;;  %v3194_v16 = vcvt.s32.f32 %v2938_v9  ;;  %v3198_v17 = vcvt.s32.f32 %v2942_v10  ;;  %v2802_v21 = vunpack.c.2.s8 %v2718_v6  ;;  %v2762_v9 = vld [vmem:[#allocation4 + $0x198] sm:$0xff] }
 0x48c   :  { %v3338_v37 = vpack.c.bf16 %v3134_v12, %v3130_v11  ;;  %v3258_v19 = vcvt.s32.f32 %v3002_v50  ;;  %v3262_v4 = vcvt.s32.f32 %v3006_v13  ;;  %v2806_v51 = vunpack.c.3.s8 %v2718_v6 }
 0x48d   :  { %3574 = vmatpush.bf16.msra.mxu0 %v3306_v15  ;;  %v3370_v23 = vpack.c.bf16 %v3198_v17, %v3194_v16  ;;  %v3058_v24 = vcvt.s32.f32 %v2802_v21  ;;  %v2866_v25 = vunpack.c.2.s8 %v2734_v14  ;;  %v2870_v26 = vunpack.c.3.s8 %v2734_v14 }
 0x48e   :  { %3587 = vmatpush.bf16.msra.mxu1 %v3338_v37  ;;  %v3402_v27 = vpack.c.bf16 %v3262_v4, %v3258_v19  ;;  %v3062_v28 = vcvt.s32.f32 %v2806_v51  ;;  %v2930_v42 = vunpack.c.2.s8 %v2750_v18  ;;  %v2934_v29 = vunpack.c.3.s8 %v2750_v18 }
 0x48f   :  { %3600 = vmatpush.bf16.msra.mxu2 %v3370_v23  ;;  %v3122_v30 = vcvt.s32.f32 %v2866_v25  ;;  %v3126_v31 = vcvt.s32.f32 %v2870_v26  ;;  %v2994_v32 = vunpack.c.2.s8 %v2766_v22  ;;  %v2998_v33 = vunpack.c.3.s8 %v2766_v22 }
 0x490   :  { %3613 = vmatpush.bf16.msra.mxu3 %v3402_v27  ;;  %v3302_v35 = vpack.c.bf16 %v3062_v28, %v3058_v24  ;;  %v3186_v52 = vcvt.s32.f32 %v2930_v42  ;;  %v3190_v36 = vcvt.s32.f32 %v2934_v29  ;;  %v2794_v55 = vunpack.c.0.s8 %v2718_v6 }
 0x491   :  { %v3334_v5 = vpack.c.bf16 %v3126_v31, %v3122_v30  ;;  %v3250_v7 = vcvt.s32.f32 %v2994_v32  ;;  %v3254_v40 = vcvt.s32.f32 %v2998_v33  ;;  %v2798_v41 = vunpack.c.1.s8 %v2718_v6 }
 0x492   :  { %3575 = vmatpush.bf16.msra.mxu0 %v3302_v35  ;;  %v3366_v43 = vpack.c.bf16 %v3190_v36, %v3186_v52  ;;  %v3050_v63 = vcvt.s32.f32 %v2794_v55  ;;  %v2858_v44 = vunpack.c.0.s8 %v2734_v14  ;;  %v2862_v39 = vunpack.c.1.s8 %v2734_v14 }
 0x493   :  { %3588 = vmatpush.bf16.msra.mxu1 %v3334_v5  ;;  %v3398_v47 = vpack.c.bf16 %v3254_v40, %v3250_v7  ;;  %v3054_v48 = vcvt.s32.f32 %v2798_v41  ;;  %v2922_v49 = vunpack.c.0.s8 %v2750_v18  ;;  %v2926_v53 = vunpack.c.1.s8 %v2750_v18 }
 0x494   :  { %3601 = vmatpush.bf16.msra.mxu2 %v3366_v43  ;;  %v3114_v54 = vcvt.s32.f32 %v2858_v44  ;;  %v3118_v56 = vcvt.s32.f32 %v2862_v39  ;;  %v2986_v34 = vunpack.c.0.s8 %v2766_v22  ;;  %v2990_v57 = vunpack.c.1.s8 %v2766_v22 }
 0x495   :  { %3614 = vmatpush.bf16.msra.mxu3 %v3398_v47  ;;  %v3298_v59 = vpack.c.bf16 %v3054_v48, %v3050_v63  ;;  %v3178_v61 = vcvt.s32.f32 %v2922_v49  ;;  %v3182_v62 = vcvt.s32.f32 %v2926_v53  ;;  %v2786_v0 = vunpack.c.2.s8 %v2714_v45 }
 0x496   :  { %v3330_v2 = vpack.c.bf16 %v3118_v56, %v3114_v54  ;;  %v3242_v6 = vcvt.s32.f32 %v2986_v34  ;;  %v3246_v60 = vcvt.s32.f32 %v2990_v57  ;;  %v2790_v8 = vunpack.c.3.s8 %v2714_v45 }
 0x497   :  { %3576 = vmatpush.bf16.msra.mxu0 %v3298_v59  ;;  %v3362_v10 = vpack.c.bf16 %v3182_v62, %v3178_v61  ;;  %v3042_v11 = vcvt.s32.f32 %v2786_v0  ;;  %v2850_v12 = vunpack.c.2.s8 %v2730_v58  ;;  %v2854_v50 = vunpack.c.3.s8 %v2730_v58 }
 0x498   :  { %3589 = vmatpush.bf16.msra.mxu1 %v3330_v2  ;;  %v3394_v13 = vpack.c.bf16 %v3246_v60, %v3242_v6  ;;  %v3046_v14 = vcvt.s32.f32 %v2790_v8  ;;  %v2914_v15 = vunpack.c.2.s8 %v2746_v1  ;;  %v2918_v16 = vunpack.c.3.s8 %v2746_v1 }
 0x499   :  { %3602 = vmatpush.bf16.msra.mxu2 %v3362_v10  ;;  %v3106_v17 = vcvt.s32.f32 %v2850_v12  ;;  %v3110_v21 = vcvt.s32.f32 %v2854_v50  ;;  %v2978_v18 = vunpack.c.2.s8 %v2762_v9  ;;  %v2982_v37 = vunpack.c.3.s8 %v2762_v9 }
 0x49a   :  { %3615 = vmatpush.bf16.msra.mxu3 %v3394_v13  ;;  %v3294_v19 = vpack.c.bf16 %v3046_v14, %v3042_v11  ;;  %v3170_v4 = vcvt.s32.f32 %v2914_v15  ;;  %v3174_v51 = vcvt.s32.f32 %v2918_v16  ;;  %v2778_v22 = vunpack.c.0.s8 %v2714_v45 }
 0x49b   :  { %v3326_v23 = vpack.c.bf16 %v3110_v21, %v3106_v17  ;;  %v3234_v24 = vcvt.s32.f32 %v2978_v18  ;;  %v3238_v25 = vcvt.s32.f32 %v2982_v37  ;;  %v2782_v26 = vunpack.c.1.s8 %v2714_v45 }
 0x49c   :  { %3577 = vmatpush.bf16.msra.mxu0 %v3294_v19  ;;  %v3358_v27 = vpack.c.bf16 %v3174_v51, %v3170_v4  ;;  %v3034_v28 = vcvt.s32.f32 %v2778_v22  ;;  %v2842_v42 = vunpack.c.0.s8 %v2730_v58  ;;  %v2846_v29 = vunpack.c.1.s8 %v2730_v58 }
 0x49d   :  { %3590 = vmatpush.bf16.msra.mxu1 %v3326_v23  ;;  %v3390_v30 = vpack.c.bf16 %v3238_v25, %v3234_v24  ;;  %v3038_v31 = vcvt.s32.f32 %v2782_v26  ;;  %v2906_v32 = vunpack.c.0.s8 %v2746_v1  ;;  %v2910_v33 = vunpack.c.1.s8 %v2746_v1  ;;  %v5160_v23 = vld [vmem:[#allocation21] sm:$0xf] }
 0x49e   :  { %3603 = vmatpush.bf16.msra.mxu2 %v3358_v27  ;;  %v3098_v35 = vcvt.s32.f32 %v2842_v42  ;;  %v3102_v52 = vcvt.s32.f32 %v2846_v29  ;;  %v2970_v36 = vunpack.c.0.s8 %v2762_v9  ;;  %v2974_v55 = vunpack.c.1.s8 %v2762_v9 }
 0x49f   :  { %3616 = vmatpush.bf16.msra.mxu3 %v3390_v30  ;;  %v3290_v5 = vpack.c.bf16 %v3038_v31, %v3034_v28  ;;  %v3162_v7 = vcvt.s32.f32 %v2906_v32  ;;  %v3166_v40 = vcvt.s32.f32 %v2910_v33  ;;  %v5164_v26 = vmul.f32 %v5160_v23, %v5160_v23 }
 0x4a0   :  { %v3322_v41 = vpack.c.bf16 %v3102_v52, %v3098_v35  ;;  %v3226_v43 = vcvt.s32.f32 %v2970_v36  ;;  %v3230_v63 = vcvt.s32.f32 %v2974_v55 }
 0x4a1   :  { %3578 = vmatpush.bf16.msra.mxu0 %v3290_v5  ;;  %v3354_v44 = vpack.c.bf16 %v3166_v40, %v3162_v7  ;;  %v3690_v29 = vperm.slane %v5164_v26, 0 }
 0x4a2   :  { %3591 = vmatpush.bf16.msra.mxu1 %v3322_v41  ;;  %v3386_v39 = vpack.c.bf16 %v3230_v63, %v3226_v43  ;;  %v3691_v41 = vperm.slane %v5164_v26, 1 }
 0x4a3   :  { %3604 = vmatpush.bf16.msra.mxu2 %v3354_v44 }
 0x4a4   :  { %3617 = vmatpush.bf16.msra.mxu3 %v3386_v39  ;;  %3579 = vmatmul.bf16.vlgmr.msra.gmra.mxu0 %v5132_v3 }
 0x4a5   :  { %3592 = vmatmul.bf16.vlgmr.msra.gmra.mxu1 %v5134_v20 }
 0x4a6   :  { %3605 = vmatmul.bf16.vlgmr.msra.gmra.mxu2 %v5136_v46 }
 0x4a7   :  { %3618 = vmatmul.bf16.vlgmr.msra.gmra.mxu3 %v5138_v38 }
 0x4a9   :  { %v3424_v45 = vpop.f32.mrf.mxu0 }
 0x4aa   :  { %v3437_v47 = vpop.f32.mrf.mxu1 }
 0x4ab   :  { %v3438_v48 = vadd.f32 %v3437_v47, %v3424_v45 }
 0x4b1   :  { %v3450_v49 = vpop.f32.mrf.mxu2  ;;  %v3426_v53 = vpop.f32.mrf.mxu0 }
 0x4b2   :  { %v3451_v54 = vadd.f32 %v3450_v49, %v3438_v48  ;;  %v3463_v56 = vpop.f32.mrf.mxu3  ;;  %v3439_v34 = vpop.f32.mrf.mxu1 }
 0x4b4   :  { %v3464_v57 = vadd.f32 %v3463_v56, %v3451_v54 }
 0x4b6   :  { %v3624_v58 = vrot.slane %v3464_v57, 4 }
 0x4b8   :  { %v3625_v59 = vadd.f32 %v3624_v58, %v3464_v57 }
 0x4b9   :  { %v3452_v61 = vpop.f32.mrf.mxu2 }
 0x4ba   :  { %v3626_v62 = vrot.slane %v3625_v59, 2  ;;  %v3465_v3 = vpop.f32.mrf.mxu3 }
 0x4bc   :  { %v3627_v0 = vadd.f32 %v3626_v62, %v3625_v59 }
 0x4be   :  { %v3628_v20 = vrot.slane %v3627_v0, 1 }
 0x4c0   :  { %v3629_v1 = vadd.f32 %v3628_v20, %v3627_v0 }
 0x4c2   :  { %v3648_v46 = vmul.f32 0.125, %v3629_v1 }
 0x4c4   :  { %v5156_v2 = vsub.f32 %v3464_v57, %v3648_v46 }
 0x4c6   :  { %v3656_v38 = vmul.f32 %v5156_v2, %v5156_v2 }
 0x4c8   :  { %v3660_v9 = vrot.slane %v3656_v38, 4 }
 0x4ca   :  { %v3661_v10 = vadd.f32 %v3660_v9, %v3656_v38 }
 0x4cc   :  { %v3662_v15 = vrot.slane %v3661_v10, 2 }
 0x4ce   :  { %v3663_v21 = vadd.f32 %v3662_v15, %v3661_v10 }
 0x4d0   :  { %v3664_v51 = vrot.slane %v3663_v21, 1 }
 0x4d1   :  { %v3476_v6 = vpop.f32.mrf.mxu0 }
 0x4d2   :  { %v3489_v60 = vpop.f32.mrf.mxu1  ;;  %v3665_v25 = vadd.f32 %v3664_v51, %v3663_v21 }
 0x4d3   :  { %v3490_v8 = vadd.f32 %v3489_v60, %v3476_v6 }
 0x4d4   :  { %v3684_v42 = vmul.f32 0.125, %v3665_v25 }
 0x4d6   :  { %v3698_v32 = vmul.f32 %v3690_v29, %v3684_v42 }
 0x4d8   :  { %v3704_v52 = vadd.f32 1e-05, %v3698_v32 }
 0x4d9   :  { %v3502_v11 = vpop.f32.mrf.mxu2  ;;  %v3478_v12 = vpop.f32.mrf.mxu0 }
 0x4da   :  { %v3503_v50 = vadd.f32 %v3502_v11, %v3490_v8  ;;  %v3515_v13 = vpop.f32.mrf.mxu3  ;;  %v3491_v14 = vpop.f32.mrf.mxu1  ;;  %4416 = vrsqrt.f32 %v3704_v52  ;;  %vm3714_vm0 = vweird.f32 %v3704_v52 }
 0x4dc   :  { %v3516_v16 = vadd.f32 %v3515_v13, %v3503_v50 }
 0x4de   :  { %v3630_v17 = vrot.slane %v3516_v16, 4 }
 0x4e0   :  { %v3631_v18 = vadd.f32 %v3630_v17, %v3516_v16  ;;  %v4417_v44 = vpop.eup %4416 }
 0x4e1   :  { %v3504_v37 = vpop.f32.mrf.mxu2  ;;  %v3709_v48 = vmul.f32 %v4417_v44, %v3704_v52  ;;  %vm3715_vm1 = vweird.f32 %v4417_v44 }
 0x4e2   :  { %v3632_v19 = vrot.slane %v3631_v18, 2  ;;  %v3517_v4 = vpop.f32.mrf.mxu3  ;;  %vm3716_vm3 = vmor %vm3714_vm0, %vm3715_vm1 }
 0x4e3   :  { %v3710_v58 = vmul.f32 %v4417_v44, %v3709_v48 }
 0x4e4   :  { %v3633_v22 = vadd.f32 %v3632_v19, %v3631_v18 }
 0x4e5   :  { %v3711_v3 = vmul.f32 0.5, %v3710_v58 }
 0x4e6   :  { %v3634_v24 = vrot.slane %v3633_v22, 1 }
 0x4e7   :  { %v3712_v60 = vsub.f32 1.5, %v3711_v3 }
 0x4e8   :  { %v3635_v27 = vadd.f32 %v3634_v24, %v3633_v22 }
 0x4e9   :  { %v3713_v50 = vmul.f32 %v4417_v44, %v3712_v60 }
 0x4ea   :  { %v3649_v28 = vmul.f32 0.125, %v3635_v27 }
 0x4ec   :  { %v5167_v30 = vsub.f32 %v3516_v16, %v3649_v28  ;;  %v3717_v16 = vsel %vm3716_vm3, %v4417_v44, %v3713_v50 }
 0x4ee   :  { %v3657_v31 = vmul.f32 %v5167_v30, %v5167_v30 }
 0x4f0   :  { %v3666_v33 = vrot.slane %v3657_v31, 4 }
 0x4f2   :  { %v3667_v35 = vadd.f32 %v3666_v33, %v3657_v31 }
 0x4f4   :  { %v3668_v36 = vrot.slane %v3667_v35, 2 }
 0x4f6   :  { %v3669_v55 = vadd.f32 %v3668_v36, %v3667_v35 }
 0x4f8   :  { %v3670_v5 = vrot.slane %v3669_v55, 1 }
 0x4f9   :  { %v3528_v7 = vpop.f32.mrf.mxu0 }
 0x4fa   :  { %v3671_v40 = vadd.f32 %v3670_v5, %v3669_v55  ;;  %v3541_v43 = vpop.f32.mrf.mxu1 }
 0x4fb   :  { %v3542_v45 = vadd.f32 %v3541_v43, %v3528_v7 }
 0x4fc   :  { %v3685_v63 = vmul.f32 0.125, %v3671_v40 }
 0x4fe   :  { %v3699_v39 = vmul.f32 %v3691_v41, %v3685_v63  ;;  %v3692_v63 = vperm.slane %v5164_v26, 2 }
 0x500   :  { %v3705_v47 = vadd.f32 1e-05, %v3699_v39 }
 0x501   :  { %v3554_v49 = vpop.f32.mrf.mxu2  ;;  %v3530_v53 = vpop.f32.mrf.mxu0 }
 0x502   :  { %4418 = vrsqrt.f32 %v3705_v47  ;;  %v3555_v54 = vadd.f32 %v3554_v49, %v3542_v45  ;;  %v3567_v56 = vpop.f32.mrf.mxu3  ;;  %v3543_v34 = vpop.f32.mrf.mxu1  ;;  %vm3724_vm12 = vweird.f32 %v3705_v47 }
 0x504   :  { %v3568_v57 = vadd.f32 %v3567_v56, %v3555_v54 }
 0x506   :  { %v3636_v59 = vrot.slane %v3568_v57, 4 }
 0x508   :  { %v4419_v61 = vpop.eup %4418  ;;  %v3637_v62 = vadd.f32 %v3636_v59, %v3568_v57 }
 0x509   :  { %v3719_v0 = vmul.f32 %v4419_v61, %v3705_v47  ;;  %v3556_v20 = vpop.f32.mrf.mxu2  ;;  %vm3725_vm14 = vweird.f32 %v4419_v61 }
 0x50a   :  { %v3638_v1 = vrot.slane %v3637_v62, 2  ;;  %v3569_v46 = vpop.f32.mrf.mxu3  ;;  %vm3726_vm2 = vmor %vm3724_vm12, %vm3725_vm14 }
 0x50b   :  { %v3720_v38 = vmul.f32 %v4419_v61, %v3719_v0 }
 0x50c   :  { %v3639_v6 = vadd.f32 %v3638_v1, %v3637_v62 }
 0x50d   :  { %v3721_v8 = vmul.f32 0.5, %v3720_v38 }
 0x50e   :  { %v3640_v9 = vrot.slane %v3639_v6, 1 }
 0x50f   :  { %v3722_v10 = vsub.f32 1.5, %v3721_v8 }
 0x510   :  { %v3641_v11 = vadd.f32 %v3640_v9, %v3639_v6 }
 0x511   :  { %v3723_v12 = vmul.f32 %v4419_v61, %v3722_v10 }
 0x512   :  { %v3650_v14 = vmul.f32 0.125, %v3641_v11 }
 0x513   :  { %v3727_v13 = vsel %vm3726_vm2, %v4419_v61, %v3723_v12  ;;  %v3693_v61 = vperm.slane %v5164_v26, 3  ;;  %v3702_v12 = vld [vmem:[#allocation22] sm:$0xf] }
 0x514   :  { %v3752_v15 = vrot.slane %v3727_v13, 7  ;;  %v5175_v21 = vsub.f32 %v3568_v57, %v3650_v14  ;;  %v3703_v14 = vmul.f32 %v3702_v12, %v5160_v23 }
 0x516   :  { %v5173_v17 = vsel %vm480_vm11, %v3717_v16, %v3752_v15  ;;  %v3658_v18 = vmul.f32 %v5175_v21, %v5175_v21 }
 0x518   :  { %v3672_v37 = vrot.slane %v3658_v18, 4 }
 0x51a   :  { %v3673_v51 = vadd.f32 %v3672_v37, %v3658_v18  ;;  %v3773_v37 = vld [vmem:[#allocation24] sm:$0xf] }
 0x51c   :  { %v3674_v24 = vrot.slane %v3673_v51, 2 }
 0x51e   :  { %v3675_v31 = vadd.f32 %v3674_v24, %v3673_v51  ;;  %v3775_v51 = vperm.slane %v3773_v37, 0  ;;  %v3777_v24 = vperm.slane %v3773_v37, 2 }
 0x520   :  { %v3676_v35 = vrot.slane %v3675_v31, 1 }
 0x521   :  { %v3580_v19 = vpop.f32.mrf.mxu0 }
 0x522   :  { %v3593_v4 = vpop.f32.mrf.mxu1  ;;  %v3677_v7 = vadd.f32 %v3676_v35, %v3675_v31 }
 0x523   :  { %v3594_v22 = vadd.f32 %v3593_v4, %v3580_v19 }
 0x524   :  { %v3686_v43 = vmul.f32 0.125, %v3677_v7 }
 0x526   :  { %v3700_v45 = vmul.f32 %v3692_v63, %v3686_v43 }
 0x528   :  { %v3706_v49 = vadd.f32 1e-05, %v3700_v45 }
 0x529   :  { %v3606_v25 = vpop.f32.mrf.mxu2  ;;  %v3582_v27 = vpop.f32.mrf.mxu0 }
 0x52a   :  { %v3607_v28 = vadd.f32 %v3606_v25, %v3594_v22  ;;  %v3619_v42 = vpop.f32.mrf.mxu3  ;;  %v3595_v29 = vpop.f32.mrf.mxu1  ;;  %4420 = vrsqrt.f32 %v3706_v49  ;;  %vm3734_vm4 = vweird.f32 %v3706_v49  ;;  %v3776_v22 = vperm.slane %v3773_v37, 1 }
 0x52b   :  { %v3778_v25 = vperm.slane %v3773_v37, 3 }
 0x52c   :  { %v3620_v32 = vadd.f32 %v3619_v42, %v3607_v28 }
 0x52e   :  { %v3642_v33 = vrot.slane %v3620_v32, 4 }
 0x530   :  { %v3643_v52 = vadd.f32 %v3642_v33, %v3620_v32  ;;  %v4421_v58 = vpop.eup %4420 }
 0x531   :  { %v3608_v36 = vpop.f32.mrf.mxu2  ;;  %v3729_v3 = vmul.f32 %v4421_v58, %v3706_v49  ;;  %vm3735_vm11 = vweird.f32 %v4421_v58 }
 0x532   :  { %v3644_v55 = vrot.slane %v3643_v52, 2  ;;  %v3621_v5 = vpop.f32.mrf.mxu3  ;;  %vm3736_vm6 = vmor %vm3734_vm4, %vm3735_vm11 }
 0x533   :  { %v3730_v1 = vmul.f32 %v4421_v58, %v3729_v3 }
 0x534   :  { %v3645_v40 = vadd.f32 %v3644_v55, %v3643_v52 }
 0x535   :  { %v3731_v46 = vmul.f32 0.5, %v3730_v1 }
 0x536   :  { %v3646_v41 = vrot.slane %v3645_v40, 1 }
 0x537   :  { %v3732_v6 = vsub.f32 1.5, %v3731_v46 }
 0x538   :  { %v3647_v44 = vadd.f32 %v3646_v41, %v3645_v40 }
 0x539   :  { %v3733_v9 = vmul.f32 %v4421_v58, %v3732_v6 }
 0x53a   :  { %v3651_v39 = vmul.f32 0.125, %v3647_v44 }
 0x53b   :  { %v3737_v26 = vsel %vm3736_vm6, %v4421_v58, %v3733_v9 }
 0x53c   :  { %v3655_v47 = vsub.f32 %v3620_v32, %v3651_v39  ;;  %v3753_v15 = vrot.slane %v3737_v26, 6 }
 0x53e   :  { %v3659_v48 = vmul.f32 %v3655_v47, %v3655_v47 }
 0x540   :  { %v3678_v53 = vrot.slane %v3659_v48, 4 }
 0x542   :  { %v3679_v54 = vadd.f32 %v3678_v53, %v3659_v48 }
 0x544   :  { %v3680_v56 = vrot.slane %v3679_v54, 2 }
 0x546   :  { %v3681_v34 = vadd.f32 %v3680_v56, %v3679_v54 }
 0x548   :  { %v3682_v57 = vrot.slane %v3681_v34, 1 }
 0x54a   :  { %v3683_v59 = vadd.f32 %v3682_v57, %v3681_v34 }
 0x54c   :  { %v3687_v62 = vmul.f32 0.125, %v3683_v59 }
 0x54e   :  { %v3701_v0 = vmul.f32 %v3693_v61, %v3687_v62 }
 0x550   :  { %v3707_v20 = vadd.f32 1e-05, %v3701_v0 }
 0x552   :  { %4422 = vrsqrt.f32 %v3707_v20  ;;  %vm3744_vm7 = vweird.f32 %v3707_v20 }
 0x558   :  { %v4423_v38 = vpop.eup %4422 }
 0x559   :  { %v3739_v60 = vmul.f32 %v4423_v38, %v3707_v20  ;;  %vm3745_vm5 = vweird.f32 %v4423_v38 }
 0x55a   :  { %vm3746_vm8 = vmor %vm3744_vm7, %vm3745_vm5 }
 0x55b   :  { %v3740_v8 = vmul.f32 %v4423_v38, %v3739_v60 }
 0x55d   :  { %v3741_v10 = vmul.f32 0.5, %v3740_v8 }
 0x55f   :  { %v3742_v11 = vsub.f32 1.5, %v3741_v10 }
 0x561   :  { %v3743_v50 = vmul.f32 %v4423_v38, %v3742_v11 }
 0x563   :  { %v3747_v13 = vsel %vm3746_vm8, %v4423_v38, %v3743_v50 }
 0x564   :  { %v3754_v16 = vrot.slane %v3747_v13, 5 }
 0x566   :  { %v3756_v18 = vsel %vm482_vm13, %v3753_v15, %v3754_v16 }
 0x567   :  { %v3757_v19 = vsel %vm484_vm15, %v5173_v17, %v3756_v18 }
 0x568   :  { %v3759_v4 = vmul.f32 %v3757_v19, %v3703_v14 }
 0x56a   :  { %v3761_v27 = vperm.slane %v3759_v4, 0  ;;  %v3762_v28 = vperm.slane %v3759_v4, 1  ;;  %v3763_v42 = vperm.slane %v3759_v4, 2  ;;  %v3764_v29 = vperm.slane %v3759_v4, 3 }
 0x56c   :  { %v3769_v31 = vmul.f32 %v3761_v27, %v5156_v2  ;;  %v3770_v23 = vmul.f32 %v3762_v28, %v5167_v30  ;;  %v3771_v32 = vmul.f32 %v3763_v42, %v5175_v21  ;;  %v3772_v33 = vmul.f32 %v3764_v29, %v3655_v47 }
 0x56e   :  { %v3783_v35 = vadd.f32 %v3775_v51, %v3769_v31  ;;  %v3784_v52 = vadd.f32 %v3776_v22, %v3770_v23  ;;  %v3785_v36 = vadd.f32 %v3777_v24, %v3771_v32  ;;  %v3786_v17 = vadd.f32 %v3778_v25, %v3772_v33 }
 0x570   :  { %v3787_v55 = vmul.f32 0.2, %v3783_v35  ;;  %v3788_v5 = vmul.f32 0.2, %v3784_v52  ;;  %v3789_v7 = vmul.f32 0.2, %v3785_v36 }
 0x571   :  { %v3790_v40 = vmul.f32 0.2, %v3786_v17 }
 0x572   :  { %v5188_v41 = vmax.f32 %v3783_v35, %v3787_v55  ;;  %v5190_v43 = vmax.f32 %v3784_v52, %v3788_v5  ;;  %v5192_v63 = vmax.f32 %v3785_v36, %v3789_v7 }
 0x573   :  { %v5194_v2 = vmax.f32 %v3786_v17, %v3790_v40 }
 0x574   :  { %v3795_v30 = vpack.c.bf16 %v5188_v41, %v5188_v41  ;;  %v3796_v21 = vpack.c.bf16 %v5190_v43, %v5190_v43  ;;  %v3797_v44 = vpack.c.bf16 %v5192_v63, %v5192_v63 }
 0x575   :  { %v3798_v39 = vpack.c.bf16 %v5194_v2, %v5194_v2 }
 0x576   :  { %4829 = dma.done.wait [#allocation6 + $0x3], 4096 }
 0x577   :  { %4830 = vsyncadd [#allocation6 + $0x3], 4294963200  ;;  %v4349_v45 = vld [vmem:[#allocation5 + $0x38] sm:$0xff]  ;;  %v4348_v53 = vld [vmem:[#allocation5 + $0x30] sm:$0xff]  ;;  %s4850_s27 = smov [#allocation25]   ;;  %s5248_s10 = sld [smem:[#allocation50_spill]] }
 0x578   :  { %v4357_v47 = vld [vmem:[#allocation5 + $0x78] sm:$0xff]  ;;  %4063 = vmatpush.bf16.msrb.mxu0 %v4349_v45  ;;  %v4356_v54 = vld [vmem:[#allocation5 + $0x70] sm:$0xff]  ;;  %v4347_v57 = vld [vmem:[#allocation5 + $0x28] sm:$0xff]  ;;  %s4122_s28 = sshll.u32 %s4850_s27, 4  ;;  %s4123_s28 = int_to_ptr.vmem [resolvable:$true] %s4122_s28 }
 0x579   :  { %v4365_v48 = vld [vmem:[#allocation5 + $0xb8] sm:$0xff]  ;;  %4076 = vmatpush.bf16.msrb.mxu1 %v4357_v47  ;;  %v4364_v56 = vld [vmem:[#allocation5 + $0xb0] sm:$0xff]  ;;  %v4355_v58 = vld [vmem:[#allocation5 + $0x68] sm:$0xff] }
 0x57a   :  { %v4373_v49 = vld [vmem:[#allocation5 + $0xf8] sm:$0xff]  ;;  %4089 = vmatpush.bf16.msrb.mxu2 %v4365_v48  ;;  %v4372_v34 = vld [vmem:[#allocation5 + $0xf0] sm:$0xff]  ;;  %v4363_v59 = vld [vmem:[#allocation5 + $0xa8] sm:$0xff] }
 0x57b   :  { %4102 = vmatpush.bf16.msrb.mxu3 %v4373_v49  ;;  %v4371_v61 = vld [vmem:[#allocation5 + $0xe8] sm:$0xff]  ;;  %v4346_v62 = vld [vmem:[#allocation5 + $0x20] sm:$0xff]  ;;  %v4345_v1 = vld [vmem:[#allocation5 + $0x18] sm:$0xff] }
 0x57c   :  { %4064 = vmatpush.bf16.msrb.mxu0 %v4348_v53  ;;  %v4354_v3 = vld [vmem:[#allocation5 + $0x60] sm:$0xff]  ;;  %v4353_v46 = vld [vmem:[#allocation5 + $0x58] sm:$0xff]  ;;  %v4344_v60 = vld [vmem:[#allocation5 + $0x10] sm:$0xff] }
 0x57d   :  { %4077 = vmatpush.bf16.msrb.mxu1 %v4356_v54  ;;  %v4362_v0 = vld [vmem:[#allocation5 + $0xa0] sm:$0xff]  ;;  %v4361_v38 = vld [vmem:[#allocation5 + $0x98] sm:$0xff]  ;;  %v4352_v8 = vld [vmem:[#allocation5 + $0x50] sm:$0xff]  ;;  %s4124_s12 = sshll.u32 %s5248_s10, 4  ;;  %s4125_s12 = int_to_ptr.hbm [resolvable:$true] %s4124_s12 }
 0x57e   :  { %4090 = vmatpush.bf16.msrb.mxu2 %v4364_v56  ;;  %v4370_v20 = vld [vmem:[#allocation5 + $0xe0] sm:$0xff]  ;;  %v4369_v6 = vld [vmem:[#allocation5 + $0xd8] sm:$0xff]  ;;  %v4360_v9 = vld [vmem:[#allocation5 + $0x90] sm:$0xff] }
 0x57f   :  { %4103 = vmatpush.bf16.msrb.mxu3 %v4372_v34  ;;  %v4368_v10 = vld [vmem:[#allocation5 + $0xd0] sm:$0xff]  ;;  %v4343_v11 = vld [vmem:[#allocation5 + $0x8] sm:$0xff]  ;;  %v4342_v13 = vld [vmem:[#allocation5] sm:$0xff] }
 0x580   :  { %4065 = vmatpush.bf16.msrb.mxu0 %v4347_v57  ;;  %v4351_v12 = vld [vmem:[#allocation5 + $0x48] sm:$0xff]  ;;  %v4350_v14 = vld [vmem:[#allocation5 + $0x40] sm:$0xff] }
 0x581   :  { %4078 = vmatpush.bf16.msrb.mxu1 %v4355_v58  ;;  %v4359_v26 = vld [vmem:[#allocation5 + $0x88] sm:$0xff]  ;;  %v4358_v15 = vld [vmem:[#allocation5 + $0x80] sm:$0xff] }
 0x582   :  { %4091 = vmatpush.bf16.msrb.mxu2 %v4363_v59  ;;  %v4367_v50 = vld [vmem:[#allocation5 + $0xc8] sm:$0xff]  ;;  %v4366_v16 = vld [vmem:[#allocation5 + $0xc0] sm:$0xff] }
 0x583   :  { %4104 = vmatpush.bf16.msrb.mxu3 %v4371_v61  ;;  %v4424_v18 = vld [vmem:[%s5235_s13] ss:$0 sm:$0xff] }
 0x584   :  { %4066 = vmatpush.bf16.msrb.mxu0 %v4346_v62 }
 0x585   :  { %4079 = vmatpush.bf16.msrb.mxu1 %v4354_v3 }
 0x586   :  { %4092 = vmatpush.bf16.msrb.mxu2 %v4362_v0 }
 0x587   :  { %4105 = vmatpush.bf16.msrb.mxu3 %v4370_v20 }
 0x588   :  { %4067 = vmatpush.bf16.msrb.mxu0 %v4345_v1 }
 0x589   :  { %4080 = vmatpush.bf16.msrb.mxu1 %v4353_v46 }
 0x58a   :  { %4093 = vmatpush.bf16.msrb.mxu2 %v4361_v38 }
 0x58b   :  { %4106 = vmatpush.bf16.msrb.mxu3 %v4369_v6 }
 0x58c   :  { %4068 = vmatpush.bf16.msrb.mxu0 %v4344_v60 }
 0x58d   :  { %4081 = vmatpush.bf16.msrb.mxu1 %v4352_v8 }
 0x58e   :  { %4094 = vmatpush.bf16.msrb.mxu2 %v4360_v9 }
 0x58f   :  { %4107 = vmatpush.bf16.msrb.mxu3 %v4368_v10 }
 0x590   :  { %4069 = vmatpush.bf16.msrb.mxu0 %v4343_v11 }
 0x591   :  { %4082 = vmatpush.bf16.msrb.mxu1 %v4351_v12 }
 0x592   :  { %4095 = vmatpush.bf16.msrb.mxu2 %v4359_v26 }
 0x593   :  { %4108 = vmatpush.bf16.msrb.mxu3 %v4367_v50 }
 0x594   :  { %4070 = vmatpush.bf16.msrb.mxu0 %v4342_v13 }
 0x595   :  { %4083 = vmatpush.bf16.msrb.mxu1 %v4350_v14 }
 0x596   :  { %4096 = vmatpush.bf16.msrb.mxu2 %v4358_v15 }
 0x597   :  { %4109 = vmatpush.bf16.msrb.mxu3 %v4366_v16  ;;  %4071 = vmatmul.bf16.vlgmr.msrb.gmra.mxu0 %v3795_v30 }
 0x598   :  { %4084 = vmatmul.bf16.vlgmr.msrb.gmra.mxu1 %v3796_v21 }
 0x599   :  { %4097 = vmatmul.bf16.vlgmr.msrb.gmra.mxu2 %v3797_v44 }
 0x59a   :  { %4110 = vmatmul.bf16.vlgmr.msrb.gmra.mxu3 %v3798_v39 }
 0x614   :  { %v4072_v37 = vpop.f32.mrf.mxu0 }
 0x615   :  { %v4085_v19 = vpop.f32.mrf.mxu1  ;;  %v4073_v4 = vadd.f32 %v4424_v18, %v4072_v37 }
 0x617   :  { %v4086_v51 = vadd.f32 %v4085_v19, %v4073_v4 }
 0x61c   :  { %v4098_v22 = vpop.f32.mrf.mxu2  ;;  %v4074_v27 = vpop.f32.mrf.mxu0 }
 0x61d   :  { %v4111_v24 = vpop.f32.mrf.mxu3  ;;  %v4099_v25 = vadd.f32 %v4098_v22, %v4086_v51  ;;  %v4087_v28 = vpop.f32.mrf.mxu1 }
 0x61f   :  { %v4112_v42 = vadd.f32 %v4111_v24, %v4099_v25 }
 0x621   :  { %4425 = vtanh.f32 %v4112_v42 }
 0x624   :  { %v4100_v29 = vpop.f32.mrf.mxu2 }
 0x625   :  { %v4113_v31 = vpop.f32.mrf.mxu3 }
 0x627   :  { %v4426_v23 = vpop.eup %4425 }
 0x628   :  { %4116 = vst [vmem:[#allocation25] sm:$0xff] %v4426_v23 }
 0x629   :  { %4127 = dma.vmem_to_hbm [thread:$0]  %s4123_s28, 128, %s4125_s12, [#allocation9]  }
 0x62a   :  { %4831 = dma.done.wait [#allocation9], 128  }
 0x62b   :  { %4832 = vsyncadd [#allocation9], 4294967168 }
 0x62c   :  { %4132 = vsyncpa [#allocation8], 1 }
 0x62d   :  { %4133 = vsyncpa [#allocation11], 1 }
 0x62e   :  { %4134 = vsyncpa [#allocation14], 1 }
 0x62f   :  { %4135 = vsyncpa [#allocation17], 1 }
 0x630   :  { %4136 = vsyncpa [#allocation20], 1 }
 0x631   :  { %4137 = vsyncpa [#allocation23], 1 }
 0x632   :  { %4138 = vsyncpa [#allocation9], 1 }
 0x633   :  { %4139 = vsyncmov [#allocation6] }
 0x636   :  { %s4140_s13 = vpop.sfrf %4139 }
 0x637   :  { %p4330_p0 = scmp.ne.s32.totalorder %s4140_s13, 0 }
 0x639   :  { %4144 = shalt.err (%p4330_p0)  }
 0x63a   :  { %4146 = vsyncmov [#allocation6 + $0x1] }
 0x63d   :  { %s4147_s11 = vpop.sfrf %4146 }
 0x63e   :  { %p4331_p1 = scmp.ne.s32.totalorder %s4147_s11, 0 }
 0x640   :  { %4151 = shalt.err (%p4331_p1)  }
 0x641   :  { %4153 = vsyncmov [#allocation6 + $0x2] }
 0x644   :  { %s4154_s0 = vpop.sfrf %4153 }
 0x645   :  { %p4332_p2 = scmp.ne.s32.totalorder %s4154_s0, 0 }
 0x647   :  { %4158 = shalt.err (%p4332_p2)  }
 0x648   :  { %4160 = vsyncmov [#allocation6 + $0x3] }
 0x64b   :  { %s4161_s1 = vpop.sfrf %4160 }
 0x64c   :  { %p4333_p3 = scmp.ne.s32.totalorder %s4161_s1, 0 }
 0x64e   :  { %4165 = shalt.err (%p4333_p3)  }

</bundles_post_ra>
